<compile_context>
chip_gen: v7x
topology: tpu7x:2x2x1
jax: 0.10.0
libtpu: 0.0.40
codegen_flags: <defaults>
</compile_context>

<pallas_src>
import functools

import jax
import jax.numpy as jnp
from jax.experimental import pallas as pl
from jax.experimental.pallas import tpu as pltpu


def _sigmoid(x):
    # single EUP tanh instead of exp + divide
    return 0.5 * jnp.tanh(0.5 * x) + 0.5


def _fused_lstm_kernel(*refs, num_layers, seq_len, batch, hidden_size):
    """All LSTM layers over the full sequence in a single kernel invocation.

    refs layout:
      refs[0]                : x       (T*B, F0)
      refs[1 + 3*l + 0]      : W_ih^T  (4, F_l, H)  gate-stacked, pre-transposed
      refs[1 + 3*l + 1]      : W_hh^T  (4, H,  H)
      refs[1 + 3*l + 2]      : bias    (4, 1,  H)   (b_ih + b_hh)
      refs[1 + 3*num_layers] : out     (T*B, H)
      refs[2 + 3*num_layers] : act     (T*B, H)     VMEM scratch (inter-layer)
    """
    x_ref = refs[0]
    w_refs = refs[1:1 + 3 * num_layers]
    out_ref = refs[1 + 3 * num_layers]
    act_ref = refs[2 + 3 * num_layers]

    H = hidden_size
    layer_in = x_ref[...]  # (T*B, F0) value

    for layer in range(num_layers):
        wih_ref = w_refs[3 * layer + 0]
        whh_ref = w_refs[3 * layer + 1]
        b_ref = w_refs[3 * layer + 2]

        # ---- hoisted input projection for the WHOLE sequence, per gate ----
        gx = [
            jnp.dot(layer_in, wih_ref[g], preferred_element_type=jnp.float32)
            + b_ref[g]
            for g in range(4)
        ]  # 4 x (T*B, H)

        # Recurrence weights loaded once per layer (stay resident in vregs).
        whh = [whh_ref[g] for g in range(4)]  # 4 x (H, H)

        # Last layer writes its rows straight into the output block.
        dst_ref = out_ref if layer == num_layers - 1 else act_ref

        h = jnp.zeros((batch, H), jnp.float32)
        c = jnp.zeros((batch, H), jnp.float32)

        # Serial recurrence; seq_len is small & static -> fully unrolled.
        # Only the tiny (B,H)x(H,H) recurrent dots sit on the critical path.
        for t in range(seq_len):
            r0 = t * batch
            pre_i = gx[0][r0:r0 + batch] + jnp.dot(
                h, whh[0], preferred_element_type=jnp.float32)
            pre_f = gx[1][r0:r0 + batch] + jnp.dot(
                h, whh[1], preferred_element_type=jnp.float32)
            pre_g = gx[2][r0:r0 + batch] + jnp.dot(
                h, whh[2], preferred_element_type=jnp.float32)
            pre_o = gx[3][r0:r0 + batch] + jnp.dot(
                h, whh[3], preferred_element_type=jnp.float32)

            i_g = _sigmoid(pre_i)
            f_g = _sigmoid(pre_f)
            g_g = jnp.tanh(pre_g)
            o_g = _sigmoid(pre_o)

            c = f_g * c + i_g * g_g
            h = o_g * jnp.tanh(c)

            dst_ref[r0:r0 + batch, :] = h.astype(dst_ref.dtype)

        if layer < num_layers - 1:
            layer_in = act_ref[...]  # (T*B, H): input of the next layer


def _prep_layer_weights(w_ih, w_hh, b_ih, b_hh):
    """PyTorch layout -> gate-stacked, pre-transposed kernel layout."""
    four_h, in_sz = w_ih.shape
    H = four_h // 4
    # PyTorch packs gates along dim 0 in order (i, f, g, o), chunks of H.
    wih = jnp.transpose(
        jnp.reshape(w_ih.astype(jnp.float32), (4, H, in_sz)), (0, 2, 1))  # (4, F, H)
    whh = jnp.transpose(
        jnp.reshape(w_hh.astype(jnp.float32), (4, H, H)), (0, 2, 1))      # (4, H, H)
    b = jnp.reshape((b_ih + b_hh).astype(jnp.float32), (4, 1, H))          # (4, 1, H)
    return wih, whh, b


def apparition_forward(inputs, params):
    """ApparitionModel.forward: stacked LSTM, zero init state, returns the
    top-layer output sequence (cell_output) of shape (T, B, H)."""
    T, B, F0 = inputs.shape
    num_layers = len(params)
    H = params[0][1].shape[1]  # w_hh: (4H, H)
    TB = T * B

    x2d = jnp.reshape(inputs.astype(jnp.float32), (TB, F0))

    weight_args = []
    in_specs = [pl.BlockSpec((TB, F0), lambda i: (0, 0))]
    for (w_ih, w_hh, b_ih, b_hh) in params:
        wih, whh, b = _prep_layer_weights(w_ih, w_hh, b_ih, b_hh)
        in_sz = wih.shape[1]
        weight_args += [wih, whh, b]
        in_specs += [
            pl.BlockSpec((4, in_sz, H), lambda i: (0, 0, 0)),
            pl.BlockSpec((4, H, H), lambda i: (0, 0, 0)),
            pl.BlockSpec((4, 1, H), lambda i: (0, 0, 0)),
        ]

    kernel = functools.partial(
        _fused_lstm_kernel,
        num_layers=num_layers, seq_len=T, batch=B, hidden_size=H)

    out2d = pl.pallas_call(
        kernel,
        out_shape=jax.ShapeDtypeStruct((TB, H), jnp.float32),
        grid=(1,),  # whole problem in one step; recurrence lives in-kernel
        in_specs=in_specs,
        out_specs=pl.BlockSpec((TB, H), lambda i: (0, 0)),
        scratch_shapes=[pltpu.VMEM((TB, H), jnp.float32)],  # inter-layer acts
        compiler_params=pltpu.CompilerParams(
            dimension_semantics=("arbitrary",),
        ),
    )(x2d, *weight_args)

    return jnp.reshape(out2d, (T, B, H))


# ------------------------- pure-JAX reference ------------------------- #
def _lstm_ref(inputs, params):
    x = inputs
    for (w_ih, w_hh, b_ih, b_hh) in params:
        T, B, _ = x.shape
        H = w_hh.shape[1]
        h = jnp.zeros((B, H), jnp.float32)
        c = jnp.zeros((B, H), jnp.float32)
        outs = []
        for t in range(T):
            gates = x[t] @ w_ih.T + h @ w_hh.T + b_ih + b_hh
            i = jax.nn.sigmoid(gates[:, 0 * H:1 * H])
            f = jax.nn.sigmoid(gates[:, 1 * H:2 * H])
            g = jnp.tanh(gates[:, 2 * H:3 * H])
            o = jax.nn.sigmoid(gates[:, 3 * H:4 * H])
            c = f * c + i * g
            h = o * jnp.tanh(c)
            outs.append(h)
        x = jnp.stack(outs, axis=0)
    return x


if __name__ == "__main__":
    # Small config consistent with the module:
    #   num_features=16, hidden_size=32, num_layers=2, batch=1 (init_hidden
    #   fixes the state batch dim to 1), seq_len=8.
    SEQ, BATCH, NUM_FEATURES, HIDDEN, NUM_LAYERS = 8, 1, 16, 32, 2

    key = jax.random.PRNGKey(0)
    key, xk = jax.random.split(key)
    inputs = jax.random.normal(xk, (SEQ, BATCH, NUM_FEATURES), dtype=jnp.float32)

    # Deterministic parameter init: uniform(-1/sqrt(H), 1/sqrt(H)), like PyTorch.
    bound = 1.0 / (HIDDEN ** 0.5)
    params = []
    in_sz = NUM_FEATURES
    for layer in range(NUM_LAYERS):
        key, k1, k2, k3, k4 = jax.random.split(key, 5)
        w_ih = jax.random.uniform(k1, (4 * HIDDEN, in_sz), jnp.float32, -bound, bound)
        w_hh = jax.random.uniform(k2, (4 * HIDDEN, HIDDEN), jnp.float32, -bound, bound)
        b_ih = jax.random.uniform(k3, (4 * HIDDEN,), jnp.float32, -bound, bound)
        b_hh = jax.random.uniform(k4, (4 * HIDDEN,), jnp.float32, -bound, bound)
        params.append((w_ih, w_hh, b_ih, b_hh))
        in_sz = HIDDEN

    cell_output = apparition_forward(inputs, params)
    cell_output = jax.block_until_ready(cell_output)

    ref = _lstm_ref(inputs, params)
    assert cell_output.shape == (SEQ, BATCH, HIDDEN)
    # tolerance slightly relaxed: kernel uses sigmoid(x)=0.5*tanh(0.5x)+0.5 and
    # per-gate dots, which differ from the reference by a few f32 ulps.
    assert jnp.allclose(cell_output, ref, atol=1e-4, rtol=1e-4), "mismatch vs reference"

    print("KERNEL_OK")
</pallas_src>

<mosaic_0001>
module attributes {stable_mosaic.version = 11 : i64} {
  func.func @_fused_lstm_kernel(%arg0: i32, %arg1: memref<8x16xf32, #tpu.memory_space<vmem>>, %arg2: memref<4x16x32xf32, #tpu.memory_space<vmem>>, %arg3: memref<4x32x32xf32, #tpu.memory_space<vmem>>, %arg4: memref<4x1x32xf32, #tpu.memory_space<vmem>>, %arg5: memref<4x32x32xf32, #tpu.memory_space<vmem>>, %arg6: memref<4x32x32xf32, #tpu.memory_space<vmem>>, %arg7: memref<4x1x32xf32, #tpu.memory_space<vmem>>, %arg8: memref<8x32xf32, #tpu.memory_space<vmem>>, %arg9: memref<8x32xf32, #tpu.memory_space<vmem>>) attributes {dimension_semantics = [#tpu.dimension_semantics<arbitrary>], iteration_bounds = array<i64: 1>, scalar_prefetch = 0 : i64, scratch_operands = 1 : i64, tpu.core_type = #tpu.core_type<tc>, window_params = [{pipeline_mode = #tpu.pipeline_mode<synchronous>, transform_indices = @transform_0, window_bounds = array<i64: 8, 16>}, {pipeline_mode = #tpu.pipeline_mode<synchronous>, transform_indices = @transform_1, window_bounds = array<i64: 4, 16, 32>}, {pipeline_mode = #tpu.pipeline_mode<synchronous>, transform_indices = @transform_2, window_bounds = array<i64: 4, 32, 32>}, {pipeline_mode = #tpu.pipeline_mode<synchronous>, transform_indices = @transform_3, window_bounds = array<i64: 4, 1, 32>}, {pipeline_mode = #tpu.pipeline_mode<synchronous>, transform_indices = @transform_4, window_bounds = array<i64: 4, 32, 32>}, {pipeline_mode = #tpu.pipeline_mode<synchronous>, transform_indices = @transform_5, window_bounds = array<i64: 4, 32, 32>}, {pipeline_mode = #tpu.pipeline_mode<synchronous>, transform_indices = @transform_6, window_bounds = array<i64: 4, 1, 32>}, {pipeline_mode = #tpu.pipeline_mode<synchronous>, transform_indices = @transform_7, window_bounds = array<i64: 8, 32>}]} {
    %c0 = arith.constant 0 : index
    %c0_0 = arith.constant 0 : index
    %0 = vector.load %arg1[%c0, %c0_0] : memref<8x16xf32, #tpu.memory_space<vmem>>, vector<8x16xf32>
    %c0_1 = arith.constant 0 : index
    %c0_2 = arith.constant 0 : index
    %c0_3 = arith.constant 0 : index
    %1 = vector.load %arg2[%c0_1, %c0_2, %c0_3] : memref<4x16x32xf32, #tpu.memory_space<vmem>>, vector<1x16x32xf32>
    %2 = vector.shape_cast %1 : vector<1x16x32xf32> to vector<16x32xf32>
    %cst = arith.constant dense<0.000000e+00> : vector<8x32xf32>
    %3 = tpu.matmul %0, %2, %cst {dimension_numbers = #tpu.dot_dimension_numbers<[1], [0], [0], [1], [0, 0, 1, 1], [], []>} : vector<8x16xf32>, vector<16x32xf32>, vector<8x32xf32> -> vector<8x32xf32>
    %c0_4 = arith.constant 0 : index
    %c0_5 = arith.constant 0 : index
    %c0_6 = arith.constant 0 : index
    %4 = vector.load %arg4[%c0_4, %c0_5, %c0_6] : memref<4x1x32xf32, #tpu.memory_space<vmem>>, vector<1x1x32xf32>
    %5 = vector.shape_cast %4 : vector<1x1x32xf32> to vector<1x32xf32>
    %6 = vector.broadcast %5 : vector<1x32xf32> to vector<8x32xf32>
    %7 = arith.addf %3, %6 : vector<8x32xf32>
    %c1 = arith.constant 1 : index
    %c0_7 = arith.constant 0 : index
    %c0_8 = arith.constant 0 : index
    %8 = vector.load %arg2[%c1, %c0_7, %c0_8] : memref<4x16x32xf32, #tpu.memory_space<vmem>>, vector<1x16x32xf32>
    %9 = vector.shape_cast %8 : vector<1x16x32xf32> to vector<16x32xf32>
    %cst_9 = arith.constant dense<0.000000e+00> : vector<8x32xf32>
    %10 = tpu.matmul %0, %9, %cst_9 {dimension_numbers = #tpu.dot_dimension_numbers<[1], [0], [0], [1], [0, 0, 1, 1], [], []>} : vector<8x16xf32>, vector<16x32xf32>, vector<8x32xf32> -> vector<8x32xf32>
    %c1_10 = arith.constant 1 : index
    %c0_11 = arith.constant 0 : index
    %c0_12 = arith.constant 0 : index
    %11 = vector.load %arg4[%c1_10, %c0_11, %c0_12] : memref<4x1x32xf32, #tpu.memory_space<vmem>>, vector<1x1x32xf32>
    %12 = vector.shape_cast %11 : vector<1x1x32xf32> to vector<1x32xf32>
    %13 = vector.broadcast %12 : vector<1x32xf32> to vector<8x32xf32>
    %14 = arith.addf %10, %13 : vector<8x32xf32>
    %c2 = arith.constant 2 : index
    %c0_13 = arith.constant 0 : index
    %c0_14 = arith.constant 0 : index
    %15 = vector.load %arg2[%c2, %c0_13, %c0_14] : memref<4x16x32xf32, #tpu.memory_space<vmem>>, vector<1x16x32xf32>
    %16 = vector.shape_cast %15 : vector<1x16x32xf32> to vector<16x32xf32>
    %cst_15 = arith.constant dense<0.000000e+00> : vector<8x32xf32>
    %17 = tpu.matmul %0, %16, %cst_15 {dimension_numbers = #tpu.dot_dimension_numbers<[1], [0], [0], [1], [0, 0, 1, 1], [], []>} : vector<8x16xf32>, vector<16x32xf32>, vector<8x32xf32> -> vector<8x32xf32>
    %c2_16 = arith.constant 2 : index
    %c0_17 = arith.constant 0 : index
    %c0_18 = arith.constant 0 : index
    %18 = vector.load %arg4[%c2_16, %c0_17, %c0_18] : memref<4x1x32xf32, #tpu.memory_space<vmem>>, vector<1x1x32xf32>
    %19 = vector.shape_cast %18 : vector<1x1x32xf32> to vector<1x32xf32>
    %20 = vector.broadcast %19 : vector<1x32xf32> to vector<8x32xf32>
    %21 = arith.addf %17, %20 : vector<8x32xf32>
    %c3 = arith.constant 3 : index
    %c0_19 = arith.constant 0 : index
    %c0_20 = arith.constant 0 : index
    %22 = vector.load %arg2[%c3, %c0_19, %c0_20] : memref<4x16x32xf32, #tpu.memory_space<vmem>>, vector<1x16x32xf32>
    %23 = vector.shape_cast %22 : vector<1x16x32xf32> to vector<16x32xf32>
    %cst_21 = arith.constant dense<0.000000e+00> : vector<8x32xf32>
    %24 = tpu.matmul %0, %23, %cst_21 {dimension_numbers = #tpu.dot_dimension_numbers<[1], [0], [0], [1], [0, 0, 1, 1], [], []>} : vector<8x16xf32>, vector<16x32xf32>, vector<8x32xf32> -> vector<8x32xf32>
    %c3_22 = arith.constant 3 : index
    %c0_23 = arith.constant 0 : index
    %c0_24 = arith.constant 0 : index
    %25 = vector.load %arg4[%c3_22, %c0_23, %c0_24] : memref<4x1x32xf32, #tpu.memory_space<vmem>>, vector<1x1x32xf32>
    %26 = vector.shape_cast %25 : vector<1x1x32xf32> to vector<1x32xf32>
    %27 = vector.broadcast %26 : vector<1x32xf32> to vector<8x32xf32>
    %28 = arith.addf %24, %27 : vector<8x32xf32>
    %c0_25 = arith.constant 0 : index
    %c0_26 = arith.constant 0 : index
    %c0_27 = arith.constant 0 : index
    %29 = vector.load %arg3[%c0_25, %c0_26, %c0_27] : memref<4x32x32xf32, #tpu.memory_space<vmem>>, vector<1x32x32xf32>
    %30 = vector.shape_cast %29 : vector<1x32x32xf32> to vector<32x32xf32>
    %c1_28 = arith.constant 1 : index
    %c0_29 = arith.constant 0 : index
    %c0_30 = arith.constant 0 : index
    %31 = vector.load %arg3[%c1_28, %c0_29, %c0_30] : memref<4x32x32xf32, #tpu.memory_space<vmem>>, vector<1x32x32xf32>
    %32 = vector.shape_cast %31 : vector<1x32x32xf32> to vector<32x32xf32>
    %c2_31 = arith.constant 2 : index
    %c0_32 = arith.constant 0 : index
    %c0_33 = arith.constant 0 : index
    %33 = vector.load %arg3[%c2_31, %c0_32, %c0_33] : memref<4x32x32xf32, #tpu.memory_space<vmem>>, vector<1x32x32xf32>
    %34 = vector.shape_cast %33 : vector<1x32x32xf32> to vector<32x32xf32>
    %c3_34 = arith.constant 3 : index
    %c0_35 = arith.constant 0 : index
    %c0_36 = arith.constant 0 : index
    %35 = vector.load %arg3[%c3_34, %c0_35, %c0_36] : memref<4x32x32xf32, #tpu.memory_space<vmem>>, vector<1x32x32xf32>
    %36 = vector.shape_cast %35 : vector<1x32x32xf32> to vector<32x32xf32>
    %cst_37 = arith.constant 0.000000e+00 : f32
    %37 = vector.broadcast %cst_37 : f32 to vector<1x32xf32>
    %cst_38 = arith.constant 0.000000e+00 : f32
    %38 = vector.broadcast %cst_38 : f32 to vector<1x32xf32>
    %39 = vector.extract_strided_slice %7 {offsets = [0, 0], sizes = [1, 32], strides = [1, 1]} : vector<8x32xf32> to vector<1x32xf32>
    %cst_39 = arith.constant dense<0.000000e+00> : vector<1x32xf32>
    %40 = tpu.matmul %37, %30, %cst_39 {dimension_numbers = #tpu.dot_dimension_numbers<[1], [0], [0], [1], [0, 0, 1, 1], [], []>} : vector<1x32xf32>, vector<32x32xf32>, vector<1x32xf32> -> vector<1x32xf32>
    %41 = arith.addf %39, %40 : vector<1x32xf32>
    %42 = vector.extract_strided_slice %14 {offsets = [0, 0], sizes = [1, 32], strides = [1, 1]} : vector<8x32xf32> to vector<1x32xf32>
    %cst_40 = arith.constant dense<0.000000e+00> : vector<1x32xf32>
    %43 = tpu.matmul %37, %32, %cst_40 {dimension_numbers = #tpu.dot_dimension_numbers<[1], [0], [0], [1], [0, 0, 1, 1], [], []>} : vector<1x32xf32>, vector<32x32xf32>, vector<1x32xf32> -> vector<1x32xf32>
    %44 = arith.addf %42, %43 : vector<1x32xf32>
    %45 = vector.extract_strided_slice %21 {offsets = [0, 0], sizes = [1, 32], strides = [1, 1]} : vector<8x32xf32> to vector<1x32xf32>
    %cst_41 = arith.constant dense<0.000000e+00> : vector<1x32xf32>
    %46 = tpu.matmul %37, %34, %cst_41 {dimension_numbers = #tpu.dot_dimension_numbers<[1], [0], [0], [1], [0, 0, 1, 1], [], []>} : vector<1x32xf32>, vector<32x32xf32>, vector<1x32xf32> -> vector<1x32xf32>
    %47 = arith.addf %45, %46 : vector<1x32xf32>
    %48 = vector.extract_strided_slice %28 {offsets = [0, 0], sizes = [1, 32], strides = [1, 1]} : vector<8x32xf32> to vector<1x32xf32>
    %cst_42 = arith.constant dense<0.000000e+00> : vector<1x32xf32>
    %49 = tpu.matmul %37, %36, %cst_42 {dimension_numbers = #tpu.dot_dimension_numbers<[1], [0], [0], [1], [0, 0, 1, 1], [], []>} : vector<1x32xf32>, vector<32x32xf32>, vector<1x32xf32> -> vector<1x32xf32>
    %50 = arith.addf %48, %49 : vector<1x32xf32>
    %cst_43 = arith.constant 5.000000e-01 : f32
    %51 = vector.broadcast %cst_43 : f32 to vector<1x32xf32>
    %52 = arith.mulf %51, %41 : vector<1x32xf32>
    %53 = math.tanh %52 : vector<1x32xf32>
    %cst_44 = arith.constant 5.000000e-01 : f32
    %54 = vector.broadcast %cst_44 : f32 to vector<1x32xf32>
    %55 = arith.mulf %54, %53 : vector<1x32xf32>
    %cst_45 = arith.constant 5.000000e-01 : f32
    %56 = vector.broadcast %cst_45 : f32 to vector<1x32xf32>
    %57 = arith.addf %55, %56 : vector<1x32xf32>
    %cst_46 = arith.constant 5.000000e-01 : f32
    %58 = vector.broadcast %cst_46 : f32 to vector<1x32xf32>
    %59 = arith.mulf %58, %44 : vector<1x32xf32>
    %60 = math.tanh %59 : vector<1x32xf32>
    %cst_47 = arith.constant 5.000000e-01 : f32
    %61 = vector.broadcast %cst_47 : f32 to vector<1x32xf32>
    %62 = arith.mulf %61, %60 : vector<1x32xf32>
    %cst_48 = arith.constant 5.000000e-01 : f32
    %63 = vector.broadcast %cst_48 : f32 to vector<1x32xf32>
    %64 = arith.addf %62, %63 : vector<1x32xf32>
    %65 = math.tanh %47 : vector<1x32xf32>
    %cst_49 = arith.constant 5.000000e-01 : f32
    %66 = vector.broadcast %cst_49 : f32 to vector<1x32xf32>
    %67 = arith.mulf %66, %50 : vector<1x32xf32>
    %68 = math.tanh %67 : vector<1x32xf32>
    %cst_50 = arith.constant 5.000000e-01 : f32
    %69 = vector.broadcast %cst_50 : f32 to vector<1x32xf32>
    %70 = arith.mulf %69, %68 : vector<1x32xf32>
    %cst_51 = arith.constant 5.000000e-01 : f32
    %71 = vector.broadcast %cst_51 : f32 to vector<1x32xf32>
    %72 = arith.addf %70, %71 : vector<1x32xf32>
    %73 = arith.mulf %64, %38 : vector<1x32xf32>
    %74 = arith.mulf %57, %65 : vector<1x32xf32>
    %75 = arith.addf %73, %74 : vector<1x32xf32>
    %76 = math.tanh %75 : vector<1x32xf32>
    %77 = arith.mulf %72, %76 : vector<1x32xf32>
    %c0_52 = arith.constant 0 : index
    %c0_53 = arith.constant 0 : index
    %78 = vector.load %arg9[%c0_52, %c0_53] : memref<8x32xf32, #tpu.memory_space<vmem>>, vector<1x32xf32>
    tpu.vector_store %arg9[%c0_52, %c0_53], %77 {strides = array<i32>} : memref<8x32xf32, #tpu.memory_space<vmem>>, vector<1x32xf32>,
    %79 = vector.extract_strided_slice %7 {offsets = [1, 0], sizes = [1, 32], strides = [1, 1]} : vector<8x32xf32> to vector<1x32xf32>
    %cst_54 = arith.constant dense<0.000000e+00> : vector<1x32xf32>
    %80 = tpu.matmul %77, %30, %cst_54 {dimension_numbers = #tpu.dot_dimension_numbers<[1], [0], [0], [1], [0, 0, 1, 1], [], []>} : vector<1x32xf32>, vector<32x32xf32>, vector<1x32xf32> -> vector<1x32xf32>
    %81 = arith.addf %79, %80 : vector<1x32xf32>
    %82 = vector.extract_strided_slice %14 {offsets = [1, 0], sizes = [1, 32], strides = [1, 1]} : vector<8x32xf32> to vector<1x32xf32>
    %cst_55 = arith.constant dense<0.000000e+00> : vector<1x32xf32>
    %83 = tpu.matmul %77, %32, %cst_55 {dimension_numbers = #tpu.dot_dimension_numbers<[1], [0], [0], [1], [0, 0, 1, 1], [], []>} : vector<1x32xf32>, vector<32x32xf32>, vector<1x32xf32> -> vector<1x32xf32>
    %84 = arith.addf %82, %83 : vector<1x32xf32>
    %85 = vector.extract_strided_slice %21 {offsets = [1, 0], sizes = [1, 32], strides = [1, 1]} : vector<8x32xf32> to vector<1x32xf32>
    %cst_56 = arith.constant dense<0.000000e+00> : vector<1x32xf32>
    %86 = tpu.matmul %77, %34, %cst_56 {dimension_numbers = #tpu.dot_dimension_numbers<[1], [0], [0], [1], [0, 0, 1, 1], [], []>} : vector<1x32xf32>, vector<32x32xf32>, vector<1x32xf32> -> vector<1x32xf32>
    %87 = arith.addf %85, %86 : vector<1x32xf32>
    %88 = vector.extract_strided_slice %28 {offsets = [1, 0], sizes = [1, 32], strides = [1, 1]} : vector<8x32xf32> to vector<1x32xf32>
    %cst_57 = arith.constant dense<0.000000e+00> : vector<1x32xf32>
    %89 = tpu.matmul %77, %36, %cst_57 {dimension_numbers = #tpu.dot_dimension_numbers<[1], [0], [0], [1], [0, 0, 1, 1], [], []>} : vector<1x32xf32>, vector<32x32xf32>, vector<1x32xf32> -> vector<1x32xf32>
    %90 = arith.addf %88, %89 : vector<1x32xf32>
    %cst_58 = arith.constant 5.000000e-01 : f32
    %91 = vector.broadcast %cst_58 : f32 to vector<1x32xf32>
    %92 = arith.mulf %91, %81 : vector<1x32xf32>
    %93 = math.tanh %92 : vector<1x32xf32>
    %cst_59 = arith.constant 5.000000e-01 : f32
    %94 = vector.broadcast %cst_59 : f32 to vector<1x32xf32>
    %95 = arith.mulf %94, %93 : vector<1x32xf32>
    %cst_60 = arith.constant 5.000000e-01 : f32
    %96 = vector.broadcast %cst_60 : f32 to vector<1x32xf32>
    %97 = arith.addf %95, %96 : vector<1x32xf32>
    %cst_61 = arith.constant 5.000000e-01 : f32
    %98 = vector.broadcast %cst_61 : f32 to vector<1x32xf32>
    %99 = arith.mulf %98, %84 : vector<1x32xf32>
    %100 = math.tanh %99 : vector<1x32xf32>
    %cst_62 = arith.constant 5.000000e-01 : f32
    %101 = vector.broadcast %cst_62 : f32 to vector<1x32xf32>
    %102 = arith.mulf %101, %100 : vector<1x32xf32>
    %cst_63 = arith.constant 5.000000e-01 : f32
    %103 = vector.broadcast %cst_63 : f32 to vector<1x32xf32>
    %104 = arith.addf %102, %103 : vector<1x32xf32>
    %105 = math.tanh %87 : vector<1x32xf32>
    %cst_64 = arith.constant 5.000000e-01 : f32
    %106 = vector.broadcast %cst_64 : f32 to vector<1x32xf32>
    %107 = arith.mulf %106, %90 : vector<1x32xf32>
    %108 = math.tanh %107 : vector<1x32xf32>
    %cst_65 = arith.constant 5.000000e-01 : f32
    %109 = vector.broadcast %cst_65 : f32 to vector<1x32xf32>
    %110 = arith.mulf %109, %108 : vector<1x32xf32>
    %cst_66 = arith.constant 5.000000e-01 : f32
    %111 = vector.broadcast %cst_66 : f32 to vector<1x32xf32>
    %112 = arith.addf %110, %111 : vector<1x32xf32>
    %113 = arith.mulf %104, %75 : vector<1x32xf32>
    %114 = arith.mulf %97, %105 : vector<1x32xf32>
    %115 = arith.addf %113, %114 : vector<1x32xf32>
    %116 = math.tanh %115 : vector<1x32xf32>
    %117 = arith.mulf %112, %116 : vector<1x32xf32>
    %c1_67 = arith.constant 1 : index
    %c0_68 = arith.constant 0 : index
    %118 = vector.load %arg9[%c1_67, %c0_68] : memref<8x32xf32, #tpu.memory_space<vmem>>, vector<1x32xf32>
    tpu.vector_store %arg9[%c1_67, %c0_68], %117 {strides = array<i32>} : memref<8x32xf32, #tpu.memory_space<vmem>>, vector<1x32xf32>,
    %119 = vector.extract_strided_slice %7 {offsets = [2, 0], sizes = [1, 32], strides = [1, 1]} : vector<8x32xf32> to vector<1x32xf32>
    %cst_69 = arith.constant dense<0.000000e+00> : vector<1x32xf32>
    %120 = tpu.matmul %117, %30, %cst_69 {dimension_numbers = #tpu.dot_dimension_numbers<[1], [0], [0], [1], [0, 0, 1, 1], [], []>} : vector<1x32xf32>, vector<32x32xf32>, vector<1x32xf32> -> vector<1x32xf32>
    %121 = arith.addf %119, %120 : vector<1x32xf32>
    %122 = vector.extract_strided_slice %14 {offsets = [2, 0], sizes = [1, 32], strides = [1, 1]} : vector<8x32xf32> to vector<1x32xf32>
    %cst_70 = arith.constant dense<0.000000e+00> : vector<1x32xf32>
    %123 = tpu.matmul %117, %32, %cst_70 {dimension_numbers = #tpu.dot_dimension_numbers<[1], [0], [0], [1], [0, 0, 1, 1], [], []>} : vector<1x32xf32>, vector<32x32xf32>, vector<1x32xf32> -> vector<1x32xf32>
    %124 = arith.addf %122, %123 : vector<1x32xf32>
    %125 = vector.extract_strided_slice %21 {offsets = [2, 0], sizes = [1, 32], strides = [1, 1]} : vector<8x32xf32> to vector<1x32xf32>
    %cst_71 = arith.constant dense<0.000000e+00> : vector<1x32xf32>
    %126 = tpu.matmul %117, %34, %cst_71 {dimension_numbers = #tpu.dot_dimension_numbers<[1], [0], [0], [1], [0, 0, 1, 1], [], []>} : vector<1x32xf32>, vector<32x32xf32>, vector<1x32xf32> -> vector<1x32xf32>
    %127 = arith.addf %125, %126 : vector<1x32xf32>
    %128 = vector.extract_strided_slice %28 {offsets = [2, 0], sizes = [1, 32], strides = [1, 1]} : vector<8x32xf32> to vector<1x32xf32>
    %cst_72 = arith.constant dense<0.000000e+00> : vector<1x32xf32>
    %129 = tpu.matmul %117, %36, %cst_72 {dimension_numbers = #tpu.dot_dimension_numbers<[1], [0], [0], [1], [0, 0, 1, 1], [], []>} : vector<1x32xf32>, vector<32x32xf32>, vector<1x32xf32> -> vector<1x32xf32>
    %130 = arith.addf %128, %129 : vector<1x32xf32>
    %cst_73 = arith.constant 5.000000e-01 : f32
    %131 = vector.broadcast %cst_73 : f32 to vector<1x32xf32>
    %132 = arith.mulf %131, %121 : vector<1x32xf32>
    %133 = math.tanh %132 : vector<1x32xf32>
    %cst_74 = arith.constant 5.000000e-01 : f32
    %134 = vector.broadcast %cst_74 : f32 to vector<1x32xf32>
    %135 = arith.mulf %134, %133 : vector<1x32xf32>
    %cst_75 = arith.constant 5.000000e-01 : f32
    %136 = vector.broadcast %cst_75 : f32 to vector<1x32xf32>
    %137 = arith.addf %135, %136 : vector<1x32xf32>
    %cst_76 = arith.constant 5.000000e-01 : f32
    %138 = vector.broadcast %cst_76 : f32 to vector<1x32xf32>
    %139 = arith.mulf %138, %124 : vector<1x32xf32>
    %140 = math.tanh %139 : vector<1x32xf32>
    %cst_77 = arith.constant 5.000000e-01 : f32
    %141 = vector.broadcast %cst_77 : f32 to vector<1x32xf32>
    %142 = arith.mulf %141, %140 : vector<1x32xf32>
    %cst_78 = arith.constant 5.000000e-01 : f32
    %143 = vector.broadcast %cst_78 : f32 to vector<1x32xf32>
    %144 = arith.addf %142, %143 : vector<1x32xf32>
    %145 = math.tanh %127 : vector<1x32xf32>
    %cst_79 = arith.constant 5.000000e-01 : f32
    %146 = vector.broadcast %cst_79 : f32 to vector<1x32xf32>
    %147 = arith.mulf %146, %130 : vector<1x32xf32>
    %148 = math.tanh %147 : vector<1x32xf32>
    %cst_80 = arith.constant 5.000000e-01 : f32
    %149 = vector.broadcast %cst_80 : f32 to vector<1x32xf32>
    %150 = arith.mulf %149, %148 : vector<1x32xf32>
    %cst_81 = arith.constant 5.000000e-01 : f32
    %151 = vector.broadcast %cst_81 : f32 to vector<1x32xf32>
    %152 = arith.addf %150, %151 : vector<1x32xf32>
    %153 = arith.mulf %144, %115 : vector<1x32xf32>
    %154 = arith.mulf %137, %145 : vector<1x32xf32>
    %155 = arith.addf %153, %154 : vector<1x32xf32>
    %156 = math.tanh %155 : vector<1x32xf32>
    %157 = arith.mulf %152, %156 : vector<1x32xf32>
    %c2_82 = arith.constant 2 : index
    %c0_83 = arith.constant 0 : index
    %158 = vector.load %arg9[%c2_82, %c0_83] : memref<8x32xf32, #tpu.memory_space<vmem>>, vector<1x32xf32>
    tpu.vector_store %arg9[%c2_82, %c0_83], %157 {strides = array<i32>} : memref<8x32xf32, #tpu.memory_space<vmem>>, vector<1x32xf32>,
    %159 = vector.extract_strided_slice %7 {offsets = [3, 0], sizes = [1, 32], strides = [1, 1]} : vector<8x32xf32> to vector<1x32xf32>
    %cst_84 = arith.constant dense<0.000000e+00> : vector<1x32xf32>
    %160 = tpu.matmul %157, %30, %cst_84 {dimension_numbers = #tpu.dot_dimension_numbers<[1], [0], [0], [1], [0, 0, 1, 1], [], []>} : vector<1x32xf32>, vector<32x32xf32>, vector<1x32xf32> -> vector<1x32xf32>
    %161 = arith.addf %159, %160 : vector<1x32xf32>
    %162 = vector.extract_strided_slice %14 {offsets = [3, 0], sizes = [1, 32], strides = [1, 1]} : vector<8x32xf32> to vector<1x32xf32>
    %cst_85 = arith.constant dense<0.000000e+00> : vector<1x32xf32>
    %163 = tpu.matmul %157, %32, %cst_85 {dimension_numbers = #tpu.dot_dimension_numbers<[1], [0], [0], [1], [0, 0, 1, 1], [], []>} : vector<1x32xf32>, vector<32x32xf32>, vector<1x32xf32> -> vector<1x32xf32>
    %164 = arith.addf %162, %163 : vector<1x32xf32>
    %165 = vector.extract_strided_slice %21 {offsets = [3, 0], sizes = [1, 32], strides = [1, 1]} : vector<8x32xf32> to vector<1x32xf32>
    %cst_86 = arith.constant dense<0.000000e+00> : vector<1x32xf32>
    %166 = tpu.matmul %157, %34, %cst_86 {dimension_numbers = #tpu.dot_dimension_numbers<[1], [0], [0], [1], [0, 0, 1, 1], [], []>} : vector<1x32xf32>, vector<32x32xf32>, vector<1x32xf32> -> vector<1x32xf32>
    %167 = arith.addf %165, %166 : vector<1x32xf32>
    %168 = vector.extract_strided_slice %28 {offsets = [3, 0], sizes = [1, 32], strides = [1, 1]} : vector<8x32xf32> to vector<1x32xf32>
    %cst_87 = arith.constant dense<0.000000e+00> : vector<1x32xf32>
    %169 = tpu.matmul %157, %36, %cst_87 {dimension_numbers = #tpu.dot_dimension_numbers<[1], [0], [0], [1], [0, 0, 1, 1], [], []>} : vector<1x32xf32>, vector<32x32xf32>, vector<1x32xf32> -> vector<1x32xf32>
    %170 = arith.addf %168, %169 : vector<1x32xf32>
    %cst_88 = arith.constant 5.000000e-01 : f32
    %171 = vector.broadcast %cst_88 : f32 to vector<1x32xf32>
    %172 = arith.mulf %171, %161 : vector<1x32xf32>
    %173 = math.tanh %172 : vector<1x32xf32>
    %cst_89 = arith.constant 5.000000e-01 : f32
    %174 = vector.broadcast %cst_89 : f32 to vector<1x32xf32>
    %175 = arith.mulf %174, %173 : vector<1x32xf32>
    %cst_90 = arith.constant 5.000000e-01 : f32
    %176 = vector.broadcast %cst_90 : f32 to vector<1x32xf32>
    %177 = arith.addf %175, %176 : vector<1x32xf32>
    %cst_91 = arith.constant 5.000000e-01 : f32
    %178 = vector.broadcast %cst_91 : f32 to vector<1x32xf32>
    %179 = arith.mulf %178, %164 : vector<1x32xf32>
    %180 = math.tanh %179 : vector<1x32xf32>
    %cst_92 = arith.constant 5.000000e-01 : f32
    %181 = vector.broadcast %cst_92 : f32 to vector<1x32xf32>
    %182 = arith.mulf %181, %180 : vector<1x32xf32>
    %cst_93 = arith.constant 5.000000e-01 : f32
    %183 = vector.broadcast %cst_93 : f32 to vector<1x32xf32>
    %184 = arith.addf %182, %183 : vector<1x32xf32>
    %185 = math.tanh %167 : vector<1x32xf32>
    %cst_94 = arith.constant 5.000000e-01 : f32
    %186 = vector.broadcast %cst_94 : f32 to vector<1x32xf32>
    %187 = arith.mulf %186, %170 : vector<1x32xf32>
    %188 = math.tanh %187 : vector<1x32xf32>
    %cst_95 = arith.constant 5.000000e-01 : f32
    %189 = vector.broadcast %cst_95 : f32 to vector<1x32xf32>
    %190 = arith.mulf %189, %188 : vector<1x32xf32>
    %cst_96 = arith.constant 5.000000e-01 : f32
    %191 = vector.broadcast %cst_96 : f32 to vector<1x32xf32>
    %192 = arith.addf %190, %191 : vector<1x32xf32>
    %193 = arith.mulf %184, %155 : vector<1x32xf32>
    %194 = arith.mulf %177, %185 : vector<1x32xf32>
    %195 = arith.addf %193, %194 : vector<1x32xf32>
    %196 = math.tanh %195 : vector<1x32xf32>
    %197 = arith.mulf %192, %196 : vector<1x32xf32>
    %c3_97 = arith.constant 3 : index
    %c0_98 = arith.constant 0 : index
    %198 = vector.load %arg9[%c3_97, %c0_98] : memref<8x32xf32, #tpu.memory_space<vmem>>, vector<1x32xf32>
    tpu.vector_store %arg9[%c3_97, %c0_98], %197 {strides = array<i32>} : memref<8x32xf32, #tpu.memory_space<vmem>>, vector<1x32xf32>,
    %199 = vector.extract_strided_slice %7 {offsets = [4, 0], sizes = [1, 32], strides = [1, 1]} : vector<8x32xf32> to vector<1x32xf32>
    %cst_99 = arith.constant dense<0.000000e+00> : vector<1x32xf32>
    %200 = tpu.matmul %197, %30, %cst_99 {dimension_numbers = #tpu.dot_dimension_numbers<[1], [0], [0], [1], [0, 0, 1, 1], [], []>} : vector<1x32xf32>, vector<32x32xf32>, vector<1x32xf32> -> vector<1x32xf32>
    %201 = arith.addf %199, %200 : vector<1x32xf32>
    %202 = vector.extract_strided_slice %14 {offsets = [4, 0], sizes = [1, 32], strides = [1, 1]} : vector<8x32xf32> to vector<1x32xf32>
    %cst_100 = arith.constant dense<0.000000e+00> : vector<1x32xf32>
    %203 = tpu.matmul %197, %32, %cst_100 {dimension_numbers = #tpu.dot_dimension_numbers<[1], [0], [0], [1], [0, 0, 1, 1], [], []>} : vector<1x32xf32>, vector<32x32xf32>, vector<1x32xf32> -> vector<1x32xf32>
    %204 = arith.addf %202, %203 : vector<1x32xf32>
    %205 = vector.extract_strided_slice %21 {offsets = [4, 0], sizes = [1, 32], strides = [1, 1]} : vector<8x32xf32> to vector<1x32xf32>
    %cst_101 = arith.constant dense<0.000000e+00> : vector<1x32xf32>
    %206 = tpu.matmul %197, %34, %cst_101 {dimension_numbers = #tpu.dot_dimension_numbers<[1], [0], [0], [1], [0, 0, 1, 1], [], []>} : vector<1x32xf32>, vector<32x32xf32>, vector<1x32xf32> -> vector<1x32xf32>
    %207 = arith.addf %205, %206 : vector<1x32xf32>
    %208 = vector.extract_strided_slice %28 {offsets = [4, 0], sizes = [1, 32], strides = [1, 1]} : vector<8x32xf32> to vector<1x32xf32>
    %cst_102 = arith.constant dense<0.000000e+00> : vector<1x32xf32>
    %209 = tpu.matmul %197, %36, %cst_102 {dimension_numbers = #tpu.dot_dimension_numbers<[1], [0], [0], [1], [0, 0, 1, 1], [], []>} : vector<1x32xf32>, vector<32x32xf32>, vector<1x32xf32> -> vector<1x32xf32>
    %210 = arith.addf %208, %209 : vector<1x32xf32>
    %cst_103 = arith.constant 5.000000e-01 : f32
    %211 = vector.broadcast %cst_103 : f32 to vector<1x32xf32>
    %212 = arith.mulf %211, %201 : vector<1x32xf32>
    %213 = math.tanh %212 : vector<1x32xf32>
    %cst_104 = arith.constant 5.000000e-01 : f32
    %214 = vector.broadcast %cst_104 : f32 to vector<1x32xf32>
    %215 = arith.mulf %214, %213 : vector<1x32xf32>
    %cst_105 = arith.constant 5.000000e-01 : f32
    %216 = vector.broadcast %cst_105 : f32 to vector<1x32xf32>
    %217 = arith.addf %215, %216 : vector<1x32xf32>
    %cst_106 = arith.constant 5.000000e-01 : f32
    %218 = vector.broadcast %cst_106 : f32 to vector<1x32xf32>
    %219 = arith.mulf %218, %204 : vector<1x32xf32>
    %220 = math.tanh %219 : vector<1x32xf32>
    %cst_107 = arith.constant 5.000000e-01 : f32
    %221 = vector.broadcast %cst_107 : f32 to vector<1x32xf32>
    %222 = arith.mulf %221, %220 : vector<1x32xf32>
    %cst_108 = arith.constant 5.000000e-01 : f32
    %223 = vector.broadcast %cst_108 : f32 to vector<1x32xf32>
    %224 = arith.addf %222, %223 : vector<1x32xf32>
    %225 = math.tanh %207 : vector<1x32xf32>
    %cst_109 = arith.constant 5.000000e-01 : f32
    %226 = vector.broadcast %cst_109 : f32 to vector<1x32xf32>
    %227 = arith.mulf %226, %210 : vector<1x32xf32>
    %228 = math.tanh %227 : vector<1x32xf32>
    %cst_110 = arith.constant 5.000000e-01 : f32
    %229 = vector.broadcast %cst_110 : f32 to vector<1x32xf32>
    %230 = arith.mulf %229, %228 : vector<1x32xf32>
    %cst_111 = arith.constant 5.000000e-01 : f32
    %231 = vector.broadcast %cst_111 : f32 to vector<1x32xf32>
    %232 = arith.addf %230, %231 : vector<1x32xf32>
    %233 = arith.mulf %224, %195 : vector<1x32xf32>
    %234 = arith.mulf %217, %225 : vector<1x32xf32>
    %235 = arith.addf %233, %234 : vector<1x32xf32>
    %236 = math.tanh %235 : vector<1x32xf32>
    %237 = arith.mulf %232, %236 : vector<1x32xf32>
    %c4 = arith.constant 4 : index
    %c0_112 = arith.constant 0 : index
    %238 = vector.load %arg9[%c4, %c0_112] : memref<8x32xf32, #tpu.memory_space<vmem>>, vector<1x32xf32>
    tpu.vector_store %arg9[%c4, %c0_112], %237 {strides = array<i32>} : memref<8x32xf32, #tpu.memory_space<vmem>>, vector<1x32xf32>,
    %239 = vector.extract_strided_slice %7 {offsets = [5, 0], sizes = [1, 32], strides = [1, 1]} : vector<8x32xf32> to vector<1x32xf32>
    %cst_113 = arith.constant dense<0.000000e+00> : vector<1x32xf32>
    %240 = tpu.matmul %237, %30, %cst_113 {dimension_numbers = #tpu.dot_dimension_numbers<[1], [0], [0], [1], [0, 0, 1, 1], [], []>} : vector<1x32xf32>, vector<32x32xf32>, vector<1x32xf32> -> vector<1x32xf32>
    %241 = arith.addf %239, %240 : vector<1x32xf32>
    %242 = vector.extract_strided_slice %14 {offsets = [5, 0], sizes = [1, 32], strides = [1, 1]} : vector<8x32xf32> to vector<1x32xf32>
    %cst_114 = arith.constant dense<0.000000e+00> : vector<1x32xf32>
    %243 = tpu.matmul %237, %32, %cst_114 {dimension_numbers = #tpu.dot_dimension_numbers<[1], [0], [0], [1], [0, 0, 1, 1], [], []>} : vector<1x32xf32>, vector<32x32xf32>, vector<1x32xf32> -> vector<1x32xf32>
    %244 = arith.addf %242, %243 : vector<1x32xf32>
    %245 = vector.extract_strided_slice %21 {offsets = [5, 0], sizes = [1, 32], strides = [1, 1]} : vector<8x32xf32> to vector<1x32xf32>
    %cst_115 = arith.constant dense<0.000000e+00> : vector<1x32xf32>
    %246 = tpu.matmul %237, %34, %cst_115 {dimension_numbers = #tpu.dot_dimension_numbers<[1], [0], [0], [1], [0, 0, 1, 1], [], []>} : vector<1x32xf32>, vector<32x32xf32>, vector<1x32xf32> -> vector<1x32xf32>
    %247 = arith.addf %245, %246 : vector<1x32xf32>
    %248 = vector.extract_strided_slice %28 {offsets = [5, 0], sizes = [1, 32], strides = [1, 1]} : vector<8x32xf32> to vector<1x32xf32>
    %cst_116 = arith.constant dense<0.000000e+00> : vector<1x32xf32>
    %249 = tpu.matmul %237, %36, %cst_116 {dimension_numbers = #tpu.dot_dimension_numbers<[1], [0], [0], [1], [0, 0, 1, 1], [], []>} : vector<1x32xf32>, vector<32x32xf32>, vector<1x32xf32> -> vector<1x32xf32>
    %250 = arith.addf %248, %249 : vector<1x32xf32>
    %cst_117 = arith.constant 5.000000e-01 : f32
    %251 = vector.broadcast %cst_117 : f32 to vector<1x32xf32>
    %252 = arith.mulf %251, %241 : vector<1x32xf32>
    %253 = math.tanh %252 : vector<1x32xf32>
    %cst_118 = arith.constant 5.000000e-01 : f32
    %254 = vector.broadcast %cst_118 : f32 to vector<1x32xf32>
    %255 = arith.mulf %254, %253 : vector<1x32xf32>
    %cst_119 = arith.constant 5.000000e-01 : f32
    %256 = vector.broadcast %cst_119 : f32 to vector<1x32xf32>
    %257 = arith.addf %255, %256 : vector<1x32xf32>
    %cst_120 = arith.constant 5.000000e-01 : f32
    %258 = vector.broadcast %cst_120 : f32 to vector<1x32xf32>
    %259 = arith.mulf %258, %244 : vector<1x32xf32>
    %260 = math.tanh %259 : vector<1x32xf32>
    %cst_121 = arith.constant 5.000000e-01 : f32
    %261 = vector.broadcast %cst_121 : f32 to vector<1x32xf32>
    %262 = arith.mulf %261, %260 : vector<1x32xf32>
    %cst_122 = arith.constant 5.000000e-01 : f32
    %263 = vector.broadcast %cst_122 : f32 to vector<1x32xf32>
    %264 = arith.addf %262, %263 : vector<1x32xf32>
    %265 = math.tanh %247 : vector<1x32xf32>
    %cst_123 = arith.constant 5.000000e-01 : f32
    %266 = vector.broadcast %cst_123 : f32 to vector<1x32xf32>
    %267 = arith.mulf %266, %250 : vector<1x32xf32>
    %268 = math.tanh %267 : vector<1x32xf32>
    %cst_124 = arith.constant 5.000000e-01 : f32
    %269 = vector.broadcast %cst_124 : f32 to vector<1x32xf32>
    %270 = arith.mulf %269, %268 : vector<1x32xf32>
    %cst_125 = arith.constant 5.000000e-01 : f32
    %271 = vector.broadcast %cst_125 : f32 to vector<1x32xf32>
    %272 = arith.addf %270, %271 : vector<1x32xf32>
    %273 = arith.mulf %264, %235 : vector<1x32xf32>
    %274 = arith.mulf %257, %265 : vector<1x32xf32>
    %275 = arith.addf %273, %274 : vector<1x32xf32>
    %276 = math.tanh %275 : vector<1x32xf32>
    %277 = arith.mulf %272, %276 : vector<1x32xf32>
    %c5 = arith.constant 5 : index
    %c0_126 = arith.constant 0 : index
    %278 = vector.load %arg9[%c5, %c0_126] : memref<8x32xf32, #tpu.memory_space<vmem>>, vector<1x32xf32>
    tpu.vector_store %arg9[%c5, %c0_126], %277 {strides = array<i32>} : memref<8x32xf32, #tpu.memory_space<vmem>>, vector<1x32xf32>,
    %279 = vector.extract_strided_slice %7 {offsets = [6, 0], sizes = [1, 32], strides = [1, 1]} : vector<8x32xf32> to vector<1x32xf32>
    %cst_127 = arith.constant dense<0.000000e+00> : vector<1x32xf32>
    %280 = tpu.matmul %277, %30, %cst_127 {dimension_numbers = #tpu.dot_dimension_numbers<[1], [0], [0], [1], [0, 0, 1, 1], [], []>} : vector<1x32xf32>, vector<32x32xf32>, vector<1x32xf32> -> vector<1x32xf32>
    %281 = arith.addf %279, %280 : vector<1x32xf32>
    %282 = vector.extract_strided_slice %14 {offsets = [6, 0], sizes = [1, 32], strides = [1, 1]} : vector<8x32xf32> to vector<1x32xf32>
    %cst_128 = arith.constant dense<0.000000e+00> : vector<1x32xf32>
    %283 = tpu.matmul %277, %32, %cst_128 {dimension_numbers = #tpu.dot_dimension_numbers<[1], [0], [0], [1], [0, 0, 1, 1], [], []>} : vector<1x32xf32>, vector<32x32xf32>, vector<1x32xf32> -> vector<1x32xf32>
    %284 = arith.addf %282, %283 : vector<1x32xf32>
    %285 = vector.extract_strided_slice %21 {offsets = [6, 0], sizes = [1, 32], strides = [1, 1]} : vector<8x32xf32> to vector<1x32xf32>
    %cst_129 = arith.constant dense<0.000000e+00> : vector<1x32xf32>
    %286 = tpu.matmul %277, %34, %cst_129 {dimension_numbers = #tpu.dot_dimension_numbers<[1], [0], [0], [1], [0, 0, 1, 1], [], []>} : vector<1x32xf32>, vector<32x32xf32>, vector<1x32xf32> -> vector<1x32xf32>
    %287 = arith.addf %285, %286 : vector<1x32xf32>
    %288 = vector.extract_strided_slice %28 {offsets = [6, 0], sizes = [1, 32], strides = [1, 1]} : vector<8x32xf32> to vector<1x32xf32>
    %cst_130 = arith.constant dense<0.000000e+00> : vector<1x32xf32>
    %289 = tpu.matmul %277, %36, %cst_130 {dimension_numbers = #tpu.dot_dimension_numbers<[1], [0], [0], [1], [0, 0, 1, 1], [], []>} : vector<1x32xf32>, vector<32x32xf32>, vector<1x32xf32> -> vector<1x32xf32>
    %290 = arith.addf %288, %289 : vector<1x32xf32>
    %cst_131 = arith.constant 5.000000e-01 : f32
    %291 = vector.broadcast %cst_131 : f32 to vector<1x32xf32>
    %292 = arith.mulf %291, %281 : vector<1x32xf32>
    %293 = math.tanh %292 : vector<1x32xf32>
    %cst_132 = arith.constant 5.000000e-01 : f32
    %294 = vector.broadcast %cst_132 : f32 to vector<1x32xf32>
    %295 = arith.mulf %294, %293 : vector<1x32xf32>
    %cst_133 = arith.constant 5.000000e-01 : f32
    %296 = vector.broadcast %cst_133 : f32 to vector<1x32xf32>
    %297 = arith.addf %295, %296 : vector<1x32xf32>
    %cst_134 = arith.constant 5.000000e-01 : f32
    %298 = vector.broadcast %cst_134 : f32 to vector<1x32xf32>
    %299 = arith.mulf %298, %284 : vector<1x32xf32>
    %300 = math.tanh %299 : vector<1x32xf32>
    %cst_135 = arith.constant 5.000000e-01 : f32
    %301 = vector.broadcast %cst_135 : f32 to vector<1x32xf32>
    %302 = arith.mulf %301, %300 : vector<1x32xf32>
    %cst_136 = arith.constant 5.000000e-01 : f32
    %303 = vector.broadcast %cst_136 : f32 to vector<1x32xf32>
    %304 = arith.addf %302, %303 : vector<1x32xf32>
    %305 = math.tanh %287 : vector<1x32xf32>
    %cst_137 = arith.constant 5.000000e-01 : f32
    %306 = vector.broadcast %cst_137 : f32 to vector<1x32xf32>
    %307 = arith.mulf %306, %290 : vector<1x32xf32>
    %308 = math.tanh %307 : vector<1x32xf32>
    %cst_138 = arith.constant 5.000000e-01 : f32
    %309 = vector.broadcast %cst_138 : f32 to vector<1x32xf32>
    %310 = arith.mulf %309, %308 : vector<1x32xf32>
    %cst_139 = arith.constant 5.000000e-01 : f32
    %311 = vector.broadcast %cst_139 : f32 to vector<1x32xf32>
    %312 = arith.addf %310, %311 : vector<1x32xf32>
    %313 = arith.mulf %304, %275 : vector<1x32xf32>
    %314 = arith.mulf %297, %305 : vector<1x32xf32>
    %315 = arith.addf %313, %314 : vector<1x32xf32>
    %316 = math.tanh %315 : vector<1x32xf32>
    %317 = arith.mulf %312, %316 : vector<1x32xf32>
    %c6 = arith.constant 6 : index
    %c0_140 = arith.constant 0 : index
    %318 = vector.load %arg9[%c6, %c0_140] : memref<8x32xf32, #tpu.memory_space<vmem>>, vector<1x32xf32>
    tpu.vector_store %arg9[%c6, %c0_140], %317 {strides = array<i32>} : memref<8x32xf32, #tpu.memory_space<vmem>>, vector<1x32xf32>,
    %319 = vector.extract_strided_slice %7 {offsets = [7, 0], sizes = [1, 32], strides = [1, 1]} : vector<8x32xf32> to vector<1x32xf32>
    %cst_141 = arith.constant dense<0.000000e+00> : vector<1x32xf32>
    %320 = tpu.matmul %317, %30, %cst_141 {dimension_numbers = #tpu.dot_dimension_numbers<[1], [0], [0], [1], [0, 0, 1, 1], [], []>} : vector<1x32xf32>, vector<32x32xf32>, vector<1x32xf32> -> vector<1x32xf32>
    %321 = arith.addf %319, %320 : vector<1x32xf32>
    %322 = vector.extract_strided_slice %14 {offsets = [7, 0], sizes = [1, 32], strides = [1, 1]} : vector<8x32xf32> to vector<1x32xf32>
    %cst_142 = arith.constant dense<0.000000e+00> : vector<1x32xf32>
    %323 = tpu.matmul %317, %32, %cst_142 {dimension_numbers = #tpu.dot_dimension_numbers<[1], [0], [0], [1], [0, 0, 1, 1], [], []>} : vector<1x32xf32>, vector<32x32xf32>, vector<1x32xf32> -> vector<1x32xf32>
    %324 = arith.addf %322, %323 : vector<1x32xf32>
    %325 = vector.extract_strided_slice %21 {offsets = [7, 0], sizes = [1, 32], strides = [1, 1]} : vector<8x32xf32> to vector<1x32xf32>
    %cst_143 = arith.constant dense<0.000000e+00> : vector<1x32xf32>
    %326 = tpu.matmul %317, %34, %cst_143 {dimension_numbers = #tpu.dot_dimension_numbers<[1], [0], [0], [1], [0, 0, 1, 1], [], []>} : vector<1x32xf32>, vector<32x32xf32>, vector<1x32xf32> -> vector<1x32xf32>
    %327 = arith.addf %325, %326 : vector<1x32xf32>
    %328 = vector.extract_strided_slice %28 {offsets = [7, 0], sizes = [1, 32], strides = [1, 1]} : vector<8x32xf32> to vector<1x32xf32>
    %cst_144 = arith.constant dense<0.000000e+00> : vector<1x32xf32>
    %329 = tpu.matmul %317, %36, %cst_144 {dimension_numbers = #tpu.dot_dimension_numbers<[1], [0], [0], [1], [0, 0, 1, 1], [], []>} : vector<1x32xf32>, vector<32x32xf32>, vector<1x32xf32> -> vector<1x32xf32>
    %330 = arith.addf %328, %329 : vector<1x32xf32>
    %cst_145 = arith.constant 5.000000e-01 : f32
    %331 = vector.broadcast %cst_145 : f32 to vector<1x32xf32>
    %332 = arith.mulf %331, %321 : vector<1x32xf32>
    %333 = math.tanh %332 : vector<1x32xf32>
    %cst_146 = arith.constant 5.000000e-01 : f32
    %334 = vector.broadcast %cst_146 : f32 to vector<1x32xf32>
    %335 = arith.mulf %334, %333 : vector<1x32xf32>
    %cst_147 = arith.constant 5.000000e-01 : f32
    %336 = vector.broadcast %cst_147 : f32 to vector<1x32xf32>
    %337 = arith.addf %335, %336 : vector<1x32xf32>
    %cst_148 = arith.constant 5.000000e-01 : f32
    %338 = vector.broadcast %cst_148 : f32 to vector<1x32xf32>
    %339 = arith.mulf %338, %324 : vector<1x32xf32>
    %340 = math.tanh %339 : vector<1x32xf32>
    %cst_149 = arith.constant 5.000000e-01 : f32
    %341 = vector.broadcast %cst_149 : f32 to vector<1x32xf32>
    %342 = arith.mulf %341, %340 : vector<1x32xf32>
    %cst_150 = arith.constant 5.000000e-01 : f32
    %343 = vector.broadcast %cst_150 : f32 to vector<1x32xf32>
    %344 = arith.addf %342, %343 : vector<1x32xf32>
    %345 = math.tanh %327 : vector<1x32xf32>
    %cst_151 = arith.constant 5.000000e-01 : f32
    %346 = vector.broadcast %cst_151 : f32 to vector<1x32xf32>
    %347 = arith.mulf %346, %330 : vector<1x32xf32>
    %348 = math.tanh %347 : vector<1x32xf32>
    %cst_152 = arith.constant 5.000000e-01 : f32
    %349 = vector.broadcast %cst_152 : f32 to vector<1x32xf32>
    %350 = arith.mulf %349, %348 : vector<1x32xf32>
    %cst_153 = arith.constant 5.000000e-01 : f32
    %351 = vector.broadcast %cst_153 : f32 to vector<1x32xf32>
    %352 = arith.addf %350, %351 : vector<1x32xf32>
    %353 = arith.mulf %344, %315 : vector<1x32xf32>
    %354 = arith.mulf %337, %345 : vector<1x32xf32>
    %355 = arith.addf %353, %354 : vector<1x32xf32>
    %356 = math.tanh %355 : vector<1x32xf32>
    %357 = arith.mulf %352, %356 : vector<1x32xf32>
    %c7 = arith.constant 7 : index
    %c0_154 = arith.constant 0 : index
    %358 = vector.load %arg9[%c7, %c0_154] : memref<8x32xf32, #tpu.memory_space<vmem>>, vector<1x32xf32>
    tpu.vector_store %arg9[%c7, %c0_154], %357 {strides = array<i32>} : memref<8x32xf32, #tpu.memory_space<vmem>>, vector<1x32xf32>,
    %c0_155 = arith.constant 0 : index
    %c0_156 = arith.constant 0 : index
    %359 = vector.load %arg9[%c0_155, %c0_156] : memref<8x32xf32, #tpu.memory_space<vmem>>, vector<8x32xf32>
    %c0_157 = arith.constant 0 : index
    %c0_158 = arith.constant 0 : index
    %c0_159 = arith.constant 0 : index
    %360 = vector.load %arg5[%c0_157, %c0_158, %c0_159] : memref<4x32x32xf32, #tpu.memory_space<vmem>>, vector<1x32x32xf32>
    %361 = vector.shape_cast %360 : vector<1x32x32xf32> to vector<32x32xf32>
    %cst_160 = arith.constant dense<0.000000e+00> : vector<8x32xf32>
    %362 = tpu.matmul %359, %361, %cst_160 {dimension_numbers = #tpu.dot_dimension_numbers<[1], [0], [0], [1], [0, 0, 1, 1], [], []>} : vector<8x32xf32>, vector<32x32xf32>, vector<8x32xf32> -> vector<8x32xf32>
    %c0_161 = arith.constant 0 : index
    %c0_162 = arith.constant 0 : index
    %c0_163 = arith.constant 0 : index
    %363 = vector.load %arg7[%c0_161, %c0_162, %c0_163] : memref<4x1x32xf32, #tpu.memory_space<vmem>>, vector<1x1x32xf32>
    %364 = vector.shape_cast %363 : vector<1x1x32xf32> to vector<1x32xf32>
    %365 = vector.broadcast %364 : vector<1x32xf32> to vector<8x32xf32>
    %366 = arith.addf %362, %365 : vector<8x32xf32>
    %c1_164 = arith.constant 1 : index
    %c0_165 = arith.constant 0 : index
    %c0_166 = arith.constant 0 : index
    %367 = vector.load %arg5[%c1_164, %c0_165, %c0_166] : memref<4x32x32xf32, #tpu.memory_space<vmem>>, vector<1x32x32xf32>
    %368 = vector.shape_cast %367 : vector<1x32x32xf32> to vector<32x32xf32>
    %cst_167 = arith.constant dense<0.000000e+00> : vector<8x32xf32>
    %369 = tpu.matmul %359, %368, %cst_167 {dimension_numbers = #tpu.dot_dimension_numbers<[1], [0], [0], [1], [0, 0, 1, 1], [], []>} : vector<8x32xf32>, vector<32x32xf32>, vector<8x32xf32> -> vector<8x32xf32>
    %c1_168 = arith.constant 1 : index
    %c0_169 = arith.constant 0 : index
    %c0_170 = arith.constant 0 : index
    %370 = vector.load %arg7[%c1_168, %c0_169, %c0_170] : memref<4x1x32xf32, #tpu.memory_space<vmem>>, vector<1x1x32xf32>
    %371 = vector.shape_cast %370 : vector<1x1x32xf32> to vector<1x32xf32>
    %372 = vector.broadcast %371 : vector<1x32xf32> to vector<8x32xf32>
    %373 = arith.addf %369, %372 : vector<8x32xf32>
    %c2_171 = arith.constant 2 : index
    %c0_172 = arith.constant 0 : index
    %c0_173 = arith.constant 0 : index
    %374 = vector.load %arg5[%c2_171, %c0_172, %c0_173] : memref<4x32x32xf32, #tpu.memory_space<vmem>>, vector<1x32x32xf32>
    %375 = vector.shape_cast %374 : vector<1x32x32xf32> to vector<32x32xf32>
    %cst_174 = arith.constant dense<0.000000e+00> : vector<8x32xf32>
    %376 = tpu.matmul %359, %375, %cst_174 {dimension_numbers = #tpu.dot_dimension_numbers<[1], [0], [0], [1], [0, 0, 1, 1], [], []>} : vector<8x32xf32>, vector<32x32xf32>, vector<8x32xf32> -> vector<8x32xf32>
    %c2_175 = arith.constant 2 : index
    %c0_176 = arith.constant 0 : index
    %c0_177 = arith.constant 0 : index
    %377 = vector.load %arg7[%c2_175, %c0_176, %c0_177] : memref<4x1x32xf32, #tpu.memory_space<vmem>>, vector<1x1x32xf32>
    %378 = vector.shape_cast %377 : vector<1x1x32xf32> to vector<1x32xf32>
    %379 = vector.broadcast %378 : vector<1x32xf32> to vector<8x32xf32>
    %380 = arith.addf %376, %379 : vector<8x32xf32>
    %c3_178 = arith.constant 3 : index
    %c0_179 = arith.constant 0 : index
    %c0_180 = arith.constant 0 : index
    %381 = vector.load %arg5[%c3_178, %c0_179, %c0_180] : memref<4x32x32xf32, #tpu.memory_space<vmem>>, vector<1x32x32xf32>
    %382 = vector.shape_cast %381 : vector<1x32x32xf32> to vector<32x32xf32>
    %cst_181 = arith.constant dense<0.000000e+00> : vector<8x32xf32>
    %383 = tpu.matmul %359, %382, %cst_181 {dimension_numbers = #tpu.dot_dimension_numbers<[1], [0], [0], [1], [0, 0, 1, 1], [], []>} : vector<8x32xf32>, vector<32x32xf32>, vector<8x32xf32> -> vector<8x32xf32>
    %c3_182 = arith.constant 3 : index
    %c0_183 = arith.constant 0 : index
    %c0_184 = arith.constant 0 : index
    %384 = vector.load %arg7[%c3_182, %c0_183, %c0_184] : memref<4x1x32xf32, #tpu.memory_space<vmem>>, vector<1x1x32xf32>
    %385 = vector.shape_cast %384 : vector<1x1x32xf32> to vector<1x32xf32>
    %386 = vector.broadcast %385 : vector<1x32xf32> to vector<8x32xf32>
    %387 = arith.addf %383, %386 : vector<8x32xf32>
    %c0_185 = arith.constant 0 : index
    %c0_186 = arith.constant 0 : index
    %c0_187 = arith.constant 0 : index
    %388 = vector.load %arg6[%c0_185, %c0_186, %c0_187] : memref<4x32x32xf32, #tpu.memory_space<vmem>>, vector<1x32x32xf32>
    %389 = vector.shape_cast %388 : vector<1x32x32xf32> to vector<32x32xf32>
    %c1_188 = arith.constant 1 : index
    %c0_189 = arith.constant 0 : index
    %c0_190 = arith.constant 0 : index
    %390 = vector.load %arg6[%c1_188, %c0_189, %c0_190] : memref<4x32x32xf32, #tpu.memory_space<vmem>>, vector<1x32x32xf32>
    %391 = vector.shape_cast %390 : vector<1x32x32xf32> to vector<32x32xf32>
    %c2_191 = arith.constant 2 : index
    %c0_192 = arith.constant 0 : index
    %c0_193 = arith.constant 0 : index
    %392 = vector.load %arg6[%c2_191, %c0_192, %c0_193] : memref<4x32x32xf32, #tpu.memory_space<vmem>>, vector<1x32x32xf32>
    %393 = vector.shape_cast %392 : vector<1x32x32xf32> to vector<32x32xf32>
    %c3_194 = arith.constant 3 : index
    %c0_195 = arith.constant 0 : index
    %c0_196 = arith.constant 0 : index
    %394 = vector.load %arg6[%c3_194, %c0_195, %c0_196] : memref<4x32x32xf32, #tpu.memory_space<vmem>>, vector<1x32x32xf32>
    %395 = vector.shape_cast %394 : vector<1x32x32xf32> to vector<32x32xf32>
    %cst_197 = arith.constant 0.000000e+00 : f32
    %396 = vector.broadcast %cst_197 : f32 to vector<1x32xf32>
    %cst_198 = arith.constant 0.000000e+00 : f32
    %397 = vector.broadcast %cst_198 : f32 to vector<1x32xf32>
    %398 = vector.extract_strided_slice %366 {offsets = [0, 0], sizes = [1, 32], strides = [1, 1]} : vector<8x32xf32> to vector<1x32xf32>
    %cst_199 = arith.constant dense<0.000000e+00> : vector<1x32xf32>
    %399 = tpu.matmul %396, %389, %cst_199 {dimension_numbers = #tpu.dot_dimension_numbers<[1], [0], [0], [1], [0, 0, 1, 1], [], []>} : vector<1x32xf32>, vector<32x32xf32>, vector<1x32xf32> -> vector<1x32xf32>
    %400 = arith.addf %398, %399 : vector<1x32xf32>
    %401 = vector.extract_strided_slice %373 {offsets = [0, 0], sizes = [1, 32], strides = [1, 1]} : vector<8x32xf32> to vector<1x32xf32>
    %cst_200 = arith.constant dense<0.000000e+00> : vector<1x32xf32>
    %402 = tpu.matmul %396, %391, %cst_200 {dimension_numbers = #tpu.dot_dimension_numbers<[1], [0], [0], [1], [0, 0, 1, 1], [], []>} : vector<1x32xf32>, vector<32x32xf32>, vector<1x32xf32> -> vector<1x32xf32>
    %403 = arith.addf %401, %402 : vector<1x32xf32>
    %404 = vector.extract_strided_slice %380 {offsets = [0, 0], sizes = [1, 32], strides = [1, 1]} : vector<8x32xf32> to vector<1x32xf32>
    %cst_201 = arith.constant dense<0.000000e+00> : vector<1x32xf32>
    %405 = tpu.matmul %396, %393, %cst_201 {dimension_numbers = #tpu.dot_dimension_numbers<[1], [0], [0], [1], [0, 0, 1, 1], [], []>} : vector<1x32xf32>, vector<32x32xf32>, vector<1x32xf32> -> vector<1x32xf32>
    %406 = arith.addf %404, %405 : vector<1x32xf32>
    %407 = vector.extract_strided_slice %387 {offsets = [0, 0], sizes = [1, 32], strides = [1, 1]} : vector<8x32xf32> to vector<1x32xf32>
    %cst_202 = arith.constant dense<0.000000e+00> : vector<1x32xf32>
    %408 = tpu.matmul %396, %395, %cst_202 {dimension_numbers = #tpu.dot_dimension_numbers<[1], [0], [0], [1], [0, 0, 1, 1], [], []>} : vector<1x32xf32>, vector<32x32xf32>, vector<1x32xf32> -> vector<1x32xf32>
    %409 = arith.addf %407, %408 : vector<1x32xf32>
    %cst_203 = arith.constant 5.000000e-01 : f32
    %410 = vector.broadcast %cst_203 : f32 to vector<1x32xf32>
    %411 = arith.mulf %410, %400 : vector<1x32xf32>
    %412 = math.tanh %411 : vector<1x32xf32>
    %cst_204 = arith.constant 5.000000e-01 : f32
    %413 = vector.broadcast %cst_204 : f32 to vector<1x32xf32>
    %414 = arith.mulf %413, %412 : vector<1x32xf32>
    %cst_205 = arith.constant 5.000000e-01 : f32
    %415 = vector.broadcast %cst_205 : f32 to vector<1x32xf32>
    %416 = arith.addf %414, %415 : vector<1x32xf32>
    %cst_206 = arith.constant 5.000000e-01 : f32
    %417 = vector.broadcast %cst_206 : f32 to vector<1x32xf32>
    %418 = arith.mulf %417, %403 : vector<1x32xf32>
    %419 = math.tanh %418 : vector<1x32xf32>
    %cst_207 = arith.constant 5.000000e-01 : f32
    %420 = vector.broadcast %cst_207 : f32 to vector<1x32xf32>
    %421 = arith.mulf %420, %419 : vector<1x32xf32>
    %cst_208 = arith.constant 5.000000e-01 : f32
    %422 = vector.broadcast %cst_208 : f32 to vector<1x32xf32>
    %423 = arith.addf %421, %422 : vector<1x32xf32>
    %424 = math.tanh %406 : vector<1x32xf32>
    %cst_209 = arith.constant 5.000000e-01 : f32
    %425 = vector.broadcast %cst_209 : f32 to vector<1x32xf32>
    %426 = arith.mulf %425, %409 : vector<1x32xf32>
    %427 = math.tanh %426 : vector<1x32xf32>
    %cst_210 = arith.constant 5.000000e-01 : f32
    %428 = vector.broadcast %cst_210 : f32 to vector<1x32xf32>
    %429 = arith.mulf %428, %427 : vector<1x32xf32>
    %cst_211 = arith.constant 5.000000e-01 : f32
    %430 = vector.broadcast %cst_211 : f32 to vector<1x32xf32>
    %431 = arith.addf %429, %430 : vector<1x32xf32>
    %432 = arith.mulf %423, %397 : vector<1x32xf32>
    %433 = arith.mulf %416, %424 : vector<1x32xf32>
    %434 = arith.addf %432, %433 : vector<1x32xf32>
    %435 = math.tanh %434 : vector<1x32xf32>
    %436 = arith.mulf %431, %435 : vector<1x32xf32>
    %c0_212 = arith.constant 0 : index
    %c0_213 = arith.constant 0 : index
    %437 = vector.load %arg8[%c0_212, %c0_213] : memref<8x32xf32, #tpu.memory_space<vmem>>, vector<1x32xf32>
    tpu.vector_store %arg8[%c0_212, %c0_213], %436 {strides = array<i32>} : memref<8x32xf32, #tpu.memory_space<vmem>>, vector<1x32xf32>,
    %438 = vector.extract_strided_slice %366 {offsets = [1, 0], sizes = [1, 32], strides = [1, 1]} : vector<8x32xf32> to vector<1x32xf32>
    %cst_214 = arith.constant dense<0.000000e+00> : vector<1x32xf32>
    %439 = tpu.matmul %436, %389, %cst_214 {dimension_numbers = #tpu.dot_dimension_numbers<[1], [0], [0], [1], [0, 0, 1, 1], [], []>} : vector<1x32xf32>, vector<32x32xf32>, vector<1x32xf32> -> vector<1x32xf32>
    %440 = arith.addf %438, %439 : vector<1x32xf32>
    %441 = vector.extract_strided_slice %373 {offsets = [1, 0], sizes = [1, 32], strides = [1, 1]} : vector<8x32xf32> to vector<1x32xf32>
    %cst_215 = arith.constant dense<0.000000e+00> : vector<1x32xf32>
    %442 = tpu.matmul %436, %391, %cst_215 {dimension_numbers = #tpu.dot_dimension_numbers<[1], [0], [0], [1], [0, 0, 1, 1], [], []>} : vector<1x32xf32>, vector<32x32xf32>, vector<1x32xf32> -> vector<1x32xf32>
    %443 = arith.addf %441, %442 : vector<1x32xf32>
    %444 = vector.extract_strided_slice %380 {offsets = [1, 0], sizes = [1, 32], strides = [1, 1]} : vector<8x32xf32> to vector<1x32xf32>
    %cst_216 = arith.constant dense<0.000000e+00> : vector<1x32xf32>
    %445 = tpu.matmul %436, %393, %cst_216 {dimension_numbers = #tpu.dot_dimension_numbers<[1], [0], [0], [1], [0, 0, 1, 1], [], []>} : vector<1x32xf32>, vector<32x32xf32>, vector<1x32xf32> -> vector<1x32xf32>
    %446 = arith.addf %444, %445 : vector<1x32xf32>
    %447 = vector.extract_strided_slice %387 {offsets = [1, 0], sizes = [1, 32], strides = [1, 1]} : vector<8x32xf32> to vector<1x32xf32>
    %cst_217 = arith.constant dense<0.000000e+00> : vector<1x32xf32>
    %448 = tpu.matmul %436, %395, %cst_217 {dimension_numbers = #tpu.dot_dimension_numbers<[1], [0], [0], [1], [0, 0, 1, 1], [], []>} : vector<1x32xf32>, vector<32x32xf32>, vector<1x32xf32> -> vector<1x32xf32>
    %449 = arith.addf %447, %448 : vector<1x32xf32>
    %cst_218 = arith.constant 5.000000e-01 : f32
    %450 = vector.broadcast %cst_218 : f32 to vector<1x32xf32>
    %451 = arith.mulf %450, %440 : vector<1x32xf32>
    %452 = math.tanh %451 : vector<1x32xf32>
    %cst_219 = arith.constant 5.000000e-01 : f32
    %453 = vector.broadcast %cst_219 : f32 to vector<1x32xf32>
    %454 = arith.mulf %453, %452 : vector<1x32xf32>
    %cst_220 = arith.constant 5.000000e-01 : f32
    %455 = vector.broadcast %cst_220 : f32 to vector<1x32xf32>
    %456 = arith.addf %454, %455 : vector<1x32xf32>
    %cst_221 = arith.constant 5.000000e-01 : f32
    %457 = vector.broadcast %cst_221 : f32 to vector<1x32xf32>
    %458 = arith.mulf %457, %443 : vector<1x32xf32>
    %459 = math.tanh %458 : vector<1x32xf32>
    %cst_222 = arith.constant 5.000000e-01 : f32
    %460 = vector.broadcast %cst_222 : f32 to vector<1x32xf32>
    %461 = arith.mulf %460, %459 : vector<1x32xf32>
    %cst_223 = arith.constant 5.000000e-01 : f32
    %462 = vector.broadcast %cst_223 : f32 to vector<1x32xf32>
    %463 = arith.addf %461, %462 : vector<1x32xf32>
    %464 = math.tanh %446 : vector<1x32xf32>
    %cst_224 = arith.constant 5.000000e-01 : f32
    %465 = vector.broadcast %cst_224 : f32 to vector<1x32xf32>
    %466 = arith.mulf %465, %449 : vector<1x32xf32>
    %467 = math.tanh %466 : vector<1x32xf32>
    %cst_225 = arith.constant 5.000000e-01 : f32
    %468 = vector.broadcast %cst_225 : f32 to vector<1x32xf32>
    %469 = arith.mulf %468, %467 : vector<1x32xf32>
    %cst_226 = arith.constant 5.000000e-01 : f32
    %470 = vector.broadcast %cst_226 : f32 to vector<1x32xf32>
    %471 = arith.addf %469, %470 : vector<1x32xf32>
    %472 = arith.mulf %463, %434 : vector<1x32xf32>
    %473 = arith.mulf %456, %464 : vector<1x32xf32>
    %474 = arith.addf %472, %473 : vector<1x32xf32>
    %475 = math.tanh %474 : vector<1x32xf32>
    %476 = arith.mulf %471, %475 : vector<1x32xf32>
    %c1_227 = arith.constant 1 : index
    %c0_228 = arith.constant 0 : index
    %477 = vector.load %arg8[%c1_227, %c0_228] : memref<8x32xf32, #tpu.memory_space<vmem>>, vector<1x32xf32>
    tpu.vector_store %arg8[%c1_227, %c0_228], %476 {strides = array<i32>} : memref<8x32xf32, #tpu.memory_space<vmem>>, vector<1x32xf32>,
    %478 = vector.extract_strided_slice %366 {offsets = [2, 0], sizes = [1, 32], strides = [1, 1]} : vector<8x32xf32> to vector<1x32xf32>
    %cst_229 = arith.constant dense<0.000000e+00> : vector<1x32xf32>
    %479 = tpu.matmul %476, %389, %cst_229 {dimension_numbers = #tpu.dot_dimension_numbers<[1], [0], [0], [1], [0, 0, 1, 1], [], []>} : vector<1x32xf32>, vector<32x32xf32>, vector<1x32xf32> -> vector<1x32xf32>
    %480 = arith.addf %478, %479 : vector<1x32xf32>
    %481 = vector.extract_strided_slice %373 {offsets = [2, 0], sizes = [1, 32], strides = [1, 1]} : vector<8x32xf32> to vector<1x32xf32>
    %cst_230 = arith.constant dense<0.000000e+00> : vector<1x32xf32>
    %482 = tpu.matmul %476, %391, %cst_230 {dimension_numbers = #tpu.dot_dimension_numbers<[1], [0], [0], [1], [0, 0, 1, 1], [], []>} : vector<1x32xf32>, vector<32x32xf32>, vector<1x32xf32> -> vector<1x32xf32>
    %483 = arith.addf %481, %482 : vector<1x32xf32>
    %484 = vector.extract_strided_slice %380 {offsets = [2, 0], sizes = [1, 32], strides = [1, 1]} : vector<8x32xf32> to vector<1x32xf32>
    %cst_231 = arith.constant dense<0.000000e+00> : vector<1x32xf32>
    %485 = tpu.matmul %476, %393, %cst_231 {dimension_numbers = #tpu.dot_dimension_numbers<[1], [0], [0], [1], [0, 0, 1, 1], [], []>} : vector<1x32xf32>, vector<32x32xf32>, vector<1x32xf32> -> vector<1x32xf32>
    %486 = arith.addf %484, %485 : vector<1x32xf32>
    %487 = vector.extract_strided_slice %387 {offsets = [2, 0], sizes = [1, 32], strides = [1, 1]} : vector<8x32xf32> to vector<1x32xf32>
    %cst_232 = arith.constant dense<0.000000e+00> : vector<1x32xf32>
    %488 = tpu.matmul %476, %395, %cst_232 {dimension_numbers = #tpu.dot_dimension_numbers<[1], [0], [0], [1], [0, 0, 1, 1], [], []>} : vector<1x32xf32>, vector<32x32xf32>, vector<1x32xf32> -> vector<1x32xf32>
    %489 = arith.addf %487, %488 : vector<1x32xf32>
    %cst_233 = arith.constant 5.000000e-01 : f32
    %490 = vector.broadcast %cst_233 : f32 to vector<1x32xf32>
    %491 = arith.mulf %490, %480 : vector<1x32xf32>
    %492 = math.tanh %491 : vector<1x32xf32>
    %cst_234 = arith.constant 5.000000e-01 : f32
    %493 = vector.broadcast %cst_234 : f32 to vector<1x32xf32>
    %494 = arith.mulf %493, %492 : vector<1x32xf32>
    %cst_235 = arith.constant 5.000000e-01 : f32
    %495 = vector.broadcast %cst_235 : f32 to vector<1x32xf32>
    %496 = arith.addf %494, %495 : vector<1x32xf32>
    %cst_236 = arith.constant 5.000000e-01 : f32
    %497 = vector.broadcast %cst_236 : f32 to vector<1x32xf32>
    %498 = arith.mulf %497, %483 : vector<1x32xf32>
    %499 = math.tanh %498 : vector<1x32xf32>
    %cst_237 = arith.constant 5.000000e-01 : f32
    %500 = vector.broadcast %cst_237 : f32 to vector<1x32xf32>
    %501 = arith.mulf %500, %499 : vector<1x32xf32>
    %cst_238 = arith.constant 5.000000e-01 : f32
    %502 = vector.broadcast %cst_238 : f32 to vector<1x32xf32>
    %503 = arith.addf %501, %502 : vector<1x32xf32>
    %504 = math.tanh %486 : vector<1x32xf32>
    %cst_239 = arith.constant 5.000000e-01 : f32
    %505 = vector.broadcast %cst_239 : f32 to vector<1x32xf32>
    %506 = arith.mulf %505, %489 : vector<1x32xf32>
    %507 = math.tanh %506 : vector<1x32xf32>
    %cst_240 = arith.constant 5.000000e-01 : f32
    %508 = vector.broadcast %cst_240 : f32 to vector<1x32xf32>
    %509 = arith.mulf %508, %507 : vector<1x32xf32>
    %cst_241 = arith.constant 5.000000e-01 : f32
    %510 = vector.broadcast %cst_241 : f32 to vector<1x32xf32>
    %511 = arith.addf %509, %510 : vector<1x32xf32>
    %512 = arith.mulf %503, %474 : vector<1x32xf32>
    %513 = arith.mulf %496, %504 : vector<1x32xf32>
    %514 = arith.addf %512, %513 : vector<1x32xf32>
    %515 = math.tanh %514 : vector<1x32xf32>
    %516 = arith.mulf %511, %515 : vector<1x32xf32>
    %c2_242 = arith.constant 2 : index
    %c0_243 = arith.constant 0 : index
    %517 = vector.load %arg8[%c2_242, %c0_243] : memref<8x32xf32, #tpu.memory_space<vmem>>, vector<1x32xf32>
    tpu.vector_store %arg8[%c2_242, %c0_243], %516 {strides = array<i32>} : memref<8x32xf32, #tpu.memory_space<vmem>>, vector<1x32xf32>,
    %518 = vector.extract_strided_slice %366 {offsets = [3, 0], sizes = [1, 32], strides = [1, 1]} : vector<8x32xf32> to vector<1x32xf32>
    %cst_244 = arith.constant dense<0.000000e+00> : vector<1x32xf32>
    %519 = tpu.matmul %516, %389, %cst_244 {dimension_numbers = #tpu.dot_dimension_numbers<[1], [0], [0], [1], [0, 0, 1, 1], [], []>} : vector<1x32xf32>, vector<32x32xf32>, vector<1x32xf32> -> vector<1x32xf32>
    %520 = arith.addf %518, %519 : vector<1x32xf32>
    %521 = vector.extract_strided_slice %373 {offsets = [3, 0], sizes = [1, 32], strides = [1, 1]} : vector<8x32xf32> to vector<1x32xf32>
    %cst_245 = arith.constant dense<0.000000e+00> : vector<1x32xf32>
    %522 = tpu.matmul %516, %391, %cst_245 {dimension_numbers = #tpu.dot_dimension_numbers<[1], [0], [0], [1], [0, 0, 1, 1], [], []>} : vector<1x32xf32>, vector<32x32xf32>, vector<1x32xf32> -> vector<1x32xf32>
    %523 = arith.addf %521, %522 : vector<1x32xf32>
    %524 = vector.extract_strided_slice %380 {offsets = [3, 0], sizes = [1, 32], strides = [1, 1]} : vector<8x32xf32> to vector<1x32xf32>
    %cst_246 = arith.constant dense<0.000000e+00> : vector<1x32xf32>
    %525 = tpu.matmul %516, %393, %cst_246 {dimension_numbers = #tpu.dot_dimension_numbers<[1], [0], [0], [1], [0, 0, 1, 1], [], []>} : vector<1x32xf32>, vector<32x32xf32>, vector<1x32xf32> -> vector<1x32xf32>
    %526 = arith.addf %524, %525 : vector<1x32xf32>
    %527 = vector.extract_strided_slice %387 {offsets = [3, 0], sizes = [1, 32], strides = [1, 1]} : vector<8x32xf32> to vector<1x32xf32>
    %cst_247 = arith.constant dense<0.000000e+00> : vector<1x32xf32>
    %528 = tpu.matmul %516, %395, %cst_247 {dimension_numbers = #tpu.dot_dimension_numbers<[1], [0], [0], [1], [0, 0, 1, 1], [], []>} : vector<1x32xf32>, vector<32x32xf32>, vector<1x32xf32> -> vector<1x32xf32>
    %529 = arith.addf %527, %528 : vector<1x32xf32>
    %cst_248 = arith.constant 5.000000e-01 : f32
    %530 = vector.broadcast %cst_248 : f32 to vector<1x32xf32>
    %531 = arith.mulf %530, %520 : vector<1x32xf32>
    %532 = math.tanh %531 : vector<1x32xf32>
    %cst_249 = arith.constant 5.000000e-01 : f32
    %533 = vector.broadcast %cst_249 : f32 to vector<1x32xf32>
    %534 = arith.mulf %533, %532 : vector<1x32xf32>
    %cst_250 = arith.constant 5.000000e-01 : f32
    %535 = vector.broadcast %cst_250 : f32 to vector<1x32xf32>
    %536 = arith.addf %534, %535 : vector<1x32xf32>
    %cst_251 = arith.constant 5.000000e-01 : f32
    %537 = vector.broadcast %cst_251 : f32 to vector<1x32xf32>
    %538 = arith.mulf %537, %523 : vector<1x32xf32>
    %539 = math.tanh %538 : vector<1x32xf32>
    %cst_252 = arith.constant 5.000000e-01 : f32
    %540 = vector.broadcast %cst_252 : f32 to vector<1x32xf32>
    %541 = arith.mulf %540, %539 : vector<1x32xf32>
    %cst_253 = arith.constant 5.000000e-01 : f32
    %542 = vector.broadcast %cst_253 : f32 to vector<1x32xf32>
    %543 = arith.addf %541, %542 : vector<1x32xf32>
    %544 = math.tanh %526 : vector<1x32xf32>
    %cst_254 = arith.constant 5.000000e-01 : f32
    %545 = vector.broadcast %cst_254 : f32 to vector<1x32xf32>
    %546 = arith.mulf %545, %529 : vector<1x32xf32>
    %547 = math.tanh %546 : vector<1x32xf32>
    %cst_255 = arith.constant 5.000000e-01 : f32
    %548 = vector.broadcast %cst_255 : f32 to vector<1x32xf32>
    %549 = arith.mulf %548, %547 : vector<1x32xf32>
    %cst_256 = arith.constant 5.000000e-01 : f32
    %550 = vector.broadcast %cst_256 : f32 to vector<1x32xf32>
    %551 = arith.addf %549, %550 : vector<1x32xf32>
    %552 = arith.mulf %543, %514 : vector<1x32xf32>
    %553 = arith.mulf %536, %544 : vector<1x32xf32>
    %554 = arith.addf %552, %553 : vector<1x32xf32>
    %555 = math.tanh %554 : vector<1x32xf32>
    %556 = arith.mulf %551, %555 : vector<1x32xf32>
    %c3_257 = arith.constant 3 : index
    %c0_258 = arith.constant 0 : index
    %557 = vector.load %arg8[%c3_257, %c0_258] : memref<8x32xf32, #tpu.memory_space<vmem>>, vector<1x32xf32>
    tpu.vector_store %arg8[%c3_257, %c0_258], %556 {strides = array<i32>} : memref<8x32xf32, #tpu.memory_space<vmem>>, vector<1x32xf32>,
    %558 = vector.extract_strided_slice %366 {offsets = [4, 0], sizes = [1, 32], strides = [1, 1]} : vector<8x32xf32> to vector<1x32xf32>
    %cst_259 = arith.constant dense<0.000000e+00> : vector<1x32xf32>
    %559 = tpu.matmul %556, %389, %cst_259 {dimension_numbers = #tpu.dot_dimension_numbers<[1], [0], [0], [1], [0, 0, 1, 1], [], []>} : vector<1x32xf32>, vector<32x32xf32>, vector<1x32xf32> -> vector<1x32xf32>
    %560 = arith.addf %558, %559 : vector<1x32xf32>
    %561 = vector.extract_strided_slice %373 {offsets = [4, 0], sizes = [1, 32], strides = [1, 1]} : vector<8x32xf32> to vector<1x32xf32>
    %cst_260 = arith.constant dense<0.000000e+00> : vector<1x32xf32>
    %562 = tpu.matmul %556, %391, %cst_260 {dimension_numbers = #tpu.dot_dimension_numbers<[1], [0], [0], [1], [0, 0, 1, 1], [], []>} : vector<1x32xf32>, vector<32x32xf32>, vector<1x32xf32> -> vector<1x32xf32>
    %563 = arith.addf %561, %562 : vector<1x32xf32>
    %564 = vector.extract_strided_slice %380 {offsets = [4, 0], sizes = [1, 32], strides = [1, 1]} : vector<8x32xf32> to vector<1x32xf32>
    %cst_261 = arith.constant dense<0.000000e+00> : vector<1x32xf32>
    %565 = tpu.matmul %556, %393, %cst_261 {dimension_numbers = #tpu.dot_dimension_numbers<[1], [0], [0], [1], [0, 0, 1, 1], [], []>} : vector<1x32xf32>, vector<32x32xf32>, vector<1x32xf32> -> vector<1x32xf32>
    %566 = arith.addf %564, %565 : vector<1x32xf32>
    %567 = vector.extract_strided_slice %387 {offsets = [4, 0], sizes = [1, 32], strides = [1, 1]} : vector<8x32xf32> to vector<1x32xf32>
    %cst_262 = arith.constant dense<0.000000e+00> : vector<1x32xf32>
    %568 = tpu.matmul %556, %395, %cst_262 {dimension_numbers = #tpu.dot_dimension_numbers<[1], [0], [0], [1], [0, 0, 1, 1], [], []>} : vector<1x32xf32>, vector<32x32xf32>, vector<1x32xf32> -> vector<1x32xf32>
    %569 = arith.addf %567, %568 : vector<1x32xf32>
    %cst_263 = arith.constant 5.000000e-01 : f32
    %570 = vector.broadcast %cst_263 : f32 to vector<1x32xf32>
    %571 = arith.mulf %570, %560 : vector<1x32xf32>
    %572 = math.tanh %571 : vector<1x32xf32>
    %cst_264 = arith.constant 5.000000e-01 : f32
    %573 = vector.broadcast %cst_264 : f32 to vector<1x32xf32>
    %574 = arith.mulf %573, %572 : vector<1x32xf32>
    %cst_265 = arith.constant 5.000000e-01 : f32
    %575 = vector.broadcast %cst_265 : f32 to vector<1x32xf32>
    %576 = arith.addf %574, %575 : vector<1x32xf32>
    %cst_266 = arith.constant 5.000000e-01 : f32
    %577 = vector.broadcast %cst_266 : f32 to vector<1x32xf32>
    %578 = arith.mulf %577, %563 : vector<1x32xf32>
    %579 = math.tanh %578 : vector<1x32xf32>
    %cst_267 = arith.constant 5.000000e-01 : f32
    %580 = vector.broadcast %cst_267 : f32 to vector<1x32xf32>
    %581 = arith.mulf %580, %579 : vector<1x32xf32>
    %cst_268 = arith.constant 5.000000e-01 : f32
    %582 = vector.broadcast %cst_268 : f32 to vector<1x32xf32>
    %583 = arith.addf %581, %582 : vector<1x32xf32>
    %584 = math.tanh %566 : vector<1x32xf32>
    %cst_269 = arith.constant 5.000000e-01 : f32
    %585 = vector.broadcast %cst_269 : f32 to vector<1x32xf32>
    %586 = arith.mulf %585, %569 : vector<1x32xf32>
    %587 = math.tanh %586 : vector<1x32xf32>
    %cst_270 = arith.constant 5.000000e-01 : f32
    %588 = vector.broadcast %cst_270 : f32 to vector<1x32xf32>
    %589 = arith.mulf %588, %587 : vector<1x32xf32>
    %cst_271 = arith.constant 5.000000e-01 : f32
    %590 = vector.broadcast %cst_271 : f32 to vector<1x32xf32>
    %591 = arith.addf %589, %590 : vector<1x32xf32>
    %592 = arith.mulf %583, %554 : vector<1x32xf32>
    %593 = arith.mulf %576, %584 : vector<1x32xf32>
    %594 = arith.addf %592, %593 : vector<1x32xf32>
    %595 = math.tanh %594 : vector<1x32xf32>
    %596 = arith.mulf %591, %595 : vector<1x32xf32>
    %c4_272 = arith.constant 4 : index
    %c0_273 = arith.constant 0 : index
    %597 = vector.load %arg8[%c4_272, %c0_273] : memref<8x32xf32, #tpu.memory_space<vmem>>, vector<1x32xf32>
    tpu.vector_store %arg8[%c4_272, %c0_273], %596 {strides = array<i32>} : memref<8x32xf32, #tpu.memory_space<vmem>>, vector<1x32xf32>,
    %598 = vector.extract_strided_slice %366 {offsets = [5, 0], sizes = [1, 32], strides = [1, 1]} : vector<8x32xf32> to vector<1x32xf32>
    %cst_274 = arith.constant dense<0.000000e+00> : vector<1x32xf32>
    %599 = tpu.matmul %596, %389, %cst_274 {dimension_numbers = #tpu.dot_dimension_numbers<[1], [0], [0], [1], [0, 0, 1, 1], [], []>} : vector<1x32xf32>, vector<32x32xf32>, vector<1x32xf32> -> vector<1x32xf32>
    %600 = arith.addf %598, %599 : vector<1x32xf32>
    %601 = vector.extract_strided_slice %373 {offsets = [5, 0], sizes = [1, 32], strides = [1, 1]} : vector<8x32xf32> to vector<1x32xf32>
    %cst_275 = arith.constant dense<0.000000e+00> : vector<1x32xf32>
    %602 = tpu.matmul %596, %391, %cst_275 {dimension_numbers = #tpu.dot_dimension_numbers<[1], [0], [0], [1], [0, 0, 1, 1], [], []>} : vector<1x32xf32>, vector<32x32xf32>, vector<1x32xf32> -> vector<1x32xf32>
    %603 = arith.addf %601, %602 : vector<1x32xf32>
    %604 = vector.extract_strided_slice %380 {offsets = [5, 0], sizes = [1, 32], strides = [1, 1]} : vector<8x32xf32> to vector<1x32xf32>
    %cst_276 = arith.constant dense<0.000000e+00> : vector<1x32xf32>
    %605 = tpu.matmul %596, %393, %cst_276 {dimension_numbers = #tpu.dot_dimension_numbers<[1], [0], [0], [1], [0, 0, 1, 1], [], []>} : vector<1x32xf32>, vector<32x32xf32>, vector<1x32xf32> -> vector<1x32xf32>
    %606 = arith.addf %604, %605 : vector<1x32xf32>
    %607 = vector.extract_strided_slice %387 {offsets = [5, 0], sizes = [1, 32], strides = [1, 1]} : vector<8x32xf32> to vector<1x32xf32>
    %cst_277 = arith.constant dense<0.000000e+00> : vector<1x32xf32>
    %608 = tpu.matmul %596, %395, %cst_277 {dimension_numbers = #tpu.dot_dimension_numbers<[1], [0], [0], [1], [0, 0, 1, 1], [], []>} : vector<1x32xf32>, vector<32x32xf32>, vector<1x32xf32> -> vector<1x32xf32>
    %609 = arith.addf %607, %608 : vector<1x32xf32>
    %cst_278 = arith.constant 5.000000e-01 : f32
    %610 = vector.broadcast %cst_278 : f32 to vector<1x32xf32>
    %611 = arith.mulf %610, %600 : vector<1x32xf32>
    %612 = math.tanh %611 : vector<1x32xf32>
    %cst_279 = arith.constant 5.000000e-01 : f32
    %613 = vector.broadcast %cst_279 : f32 to vector<1x32xf32>
    %614 = arith.mulf %613, %612 : vector<1x32xf32>
    %cst_280 = arith.constant 5.000000e-01 : f32
    %615 = vector.broadcast %cst_280 : f32 to vector<1x32xf32>
    %616 = arith.addf %614, %615 : vector<1x32xf32>
    %cst_281 = arith.constant 5.000000e-01 : f32
    %617 = vector.broadcast %cst_281 : f32 to vector<1x32xf32>
    %618 = arith.mulf %617, %603 : vector<1x32xf32>
    %619 = math.tanh %618 : vector<1x32xf32>
    %cst_282 = arith.constant 5.000000e-01 : f32
    %620 = vector.broadcast %cst_282 : f32 to vector<1x32xf32>
    %621 = arith.mulf %620, %619 : vector<1x32xf32>
    %cst_283 = arith.constant 5.000000e-01 : f32
    %622 = vector.broadcast %cst_283 : f32 to vector<1x32xf32>
    %623 = arith.addf %621, %622 : vector<1x32xf32>
    %624 = math.tanh %606 : vector<1x32xf32>
    %cst_284 = arith.constant 5.000000e-01 : f32
    %625 = vector.broadcast %cst_284 : f32 to vector<1x32xf32>
    %626 = arith.mulf %625, %609 : vector<1x32xf32>
    %627 = math.tanh %626 : vector<1x32xf32>
    %cst_285 = arith.constant 5.000000e-01 : f32
    %628 = vector.broadcast %cst_285 : f32 to vector<1x32xf32>
    %629 = arith.mulf %628, %627 : vector<1x32xf32>
    %cst_286 = arith.constant 5.000000e-01 : f32
    %630 = vector.broadcast %cst_286 : f32 to vector<1x32xf32>
    %631 = arith.addf %629, %630 : vector<1x32xf32>
    %632 = arith.mulf %623, %594 : vector<1x32xf32>
    %633 = arith.mulf %616, %624 : vector<1x32xf32>
    %634 = arith.addf %632, %633 : vector<1x32xf32>
    %635 = math.tanh %634 : vector<1x32xf32>
    %636 = arith.mulf %631, %635 : vector<1x32xf32>
    %c5_287 = arith.constant 5 : index
    %c0_288 = arith.constant 0 : index
    %637 = vector.load %arg8[%c5_287, %c0_288] : memref<8x32xf32, #tpu.memory_space<vmem>>, vector<1x32xf32>
    tpu.vector_store %arg8[%c5_287, %c0_288], %636 {strides = array<i32>} : memref<8x32xf32, #tpu.memory_space<vmem>>, vector<1x32xf32>,
    %638 = vector.extract_strided_slice %366 {offsets = [6, 0], sizes = [1, 32], strides = [1, 1]} : vector<8x32xf32> to vector<1x32xf32>
    %cst_289 = arith.constant dense<0.000000e+00> : vector<1x32xf32>
    %639 = tpu.matmul %636, %389, %cst_289 {dimension_numbers = #tpu.dot_dimension_numbers<[1], [0], [0], [1], [0, 0, 1, 1], [], []>} : vector<1x32xf32>, vector<32x32xf32>, vector<1x32xf32> -> vector<1x32xf32>
    %640 = arith.addf %638, %639 : vector<1x32xf32>
    %641 = vector.extract_strided_slice %373 {offsets = [6, 0], sizes = [1, 32], strides = [1, 1]} : vector<8x32xf32> to vector<1x32xf32>
    %cst_290 = arith.constant dense<0.000000e+00> : vector<1x32xf32>
    %642 = tpu.matmul %636, %391, %cst_290 {dimension_numbers = #tpu.dot_dimension_numbers<[1], [0], [0], [1], [0, 0, 1, 1], [], []>} : vector<1x32xf32>, vector<32x32xf32>, vector<1x32xf32> -> vector<1x32xf32>
    %643 = arith.addf %641, %642 : vector<1x32xf32>
    %644 = vector.extract_strided_slice %380 {offsets = [6, 0], sizes = [1, 32], strides = [1, 1]} : vector<8x32xf32> to vector<1x32xf32>
    %cst_291 = arith.constant dense<0.000000e+00> : vector<1x32xf32>
    %645 = tpu.matmul %636, %393, %cst_291 {dimension_numbers = #tpu.dot_dimension_numbers<[1], [0], [0], [1], [0, 0, 1, 1], [], []>} : vector<1x32xf32>, vector<32x32xf32>, vector<1x32xf32> -> vector<1x32xf32>
    %646 = arith.addf %644, %645 : vector<1x32xf32>
    %647 = vector.extract_strided_slice %387 {offsets = [6, 0], sizes = [1, 32], strides = [1, 1]} : vector<8x32xf32> to vector<1x32xf32>
    %cst_292 = arith.constant dense<0.000000e+00> : vector<1x32xf32>
    %648 = tpu.matmul %636, %395, %cst_292 {dimension_numbers = #tpu.dot_dimension_numbers<[1], [0], [0], [1], [0, 0, 1, 1], [], []>} : vector<1x32xf32>, vector<32x32xf32>, vector<1x32xf32> -> vector<1x32xf32>
    %649 = arith.addf %647, %648 : vector<1x32xf32>
    %cst_293 = arith.constant 5.000000e-01 : f32
    %650 = vector.broadcast %cst_293 : f32 to vector<1x32xf32>
    %651 = arith.mulf %650, %640 : vector<1x32xf32>
    %652 = math.tanh %651 : vector<1x32xf32>
    %cst_294 = arith.constant 5.000000e-01 : f32
    %653 = vector.broadcast %cst_294 : f32 to vector<1x32xf32>
    %654 = arith.mulf %653, %652 : vector<1x32xf32>
    %cst_295 = arith.constant 5.000000e-01 : f32
    %655 = vector.broadcast %cst_295 : f32 to vector<1x32xf32>
    %656 = arith.addf %654, %655 : vector<1x32xf32>
    %cst_296 = arith.constant 5.000000e-01 : f32
    %657 = vector.broadcast %cst_296 : f32 to vector<1x32xf32>
    %658 = arith.mulf %657, %643 : vector<1x32xf32>
    %659 = math.tanh %658 : vector<1x32xf32>
    %cst_297 = arith.constant 5.000000e-01 : f32
    %660 = vector.broadcast %cst_297 : f32 to vector<1x32xf32>
    %661 = arith.mulf %660, %659 : vector<1x32xf32>
    %cst_298 = arith.constant 5.000000e-01 : f32
    %662 = vector.broadcast %cst_298 : f32 to vector<1x32xf32>
    %663 = arith.addf %661, %662 : vector<1x32xf32>
    %664 = math.tanh %646 : vector<1x32xf32>
    %cst_299 = arith.constant 5.000000e-01 : f32
    %665 = vector.broadcast %cst_299 : f32 to vector<1x32xf32>
    %666 = arith.mulf %665, %649 : vector<1x32xf32>
    %667 = math.tanh %666 : vector<1x32xf32>
    %cst_300 = arith.constant 5.000000e-01 : f32
    %668 = vector.broadcast %cst_300 : f32 to vector<1x32xf32>
    %669 = arith.mulf %668, %667 : vector<1x32xf32>
    %cst_301 = arith.constant 5.000000e-01 : f32
    %670 = vector.broadcast %cst_301 : f32 to vector<1x32xf32>
    %671 = arith.addf %669, %670 : vector<1x32xf32>
    %672 = arith.mulf %663, %634 : vector<1x32xf32>
    %673 = arith.mulf %656, %664 : vector<1x32xf32>
    %674 = arith.addf %672, %673 : vector<1x32xf32>
    %675 = math.tanh %674 : vector<1x32xf32>
    %676 = arith.mulf %671, %675 : vector<1x32xf32>
    %c6_302 = arith.constant 6 : index
    %c0_303 = arith.constant 0 : index
    %677 = vector.load %arg8[%c6_302, %c0_303] : memref<8x32xf32, #tpu.memory_space<vmem>>, vector<1x32xf32>
    tpu.vector_store %arg8[%c6_302, %c0_303], %676 {strides = array<i32>} : memref<8x32xf32, #tpu.memory_space<vmem>>, vector<1x32xf32>,
    %678 = vector.extract_strided_slice %366 {offsets = [7, 0], sizes = [1, 32], strides = [1, 1]} : vector<8x32xf32> to vector<1x32xf32>
    %cst_304 = arith.constant dense<0.000000e+00> : vector<1x32xf32>
    %679 = tpu.matmul %676, %389, %cst_304 {dimension_numbers = #tpu.dot_dimension_numbers<[1], [0], [0], [1], [0, 0, 1, 1], [], []>} : vector<1x32xf32>, vector<32x32xf32>, vector<1x32xf32> -> vector<1x32xf32>
    %680 = arith.addf %678, %679 : vector<1x32xf32>
    %681 = vector.extract_strided_slice %373 {offsets = [7, 0], sizes = [1, 32], strides = [1, 1]} : vector<8x32xf32> to vector<1x32xf32>
    %cst_305 = arith.constant dense<0.000000e+00> : vector<1x32xf32>
    %682 = tpu.matmul %676, %391, %cst_305 {dimension_numbers = #tpu.dot_dimension_numbers<[1], [0], [0], [1], [0, 0, 1, 1], [], []>} : vector<1x32xf32>, vector<32x32xf32>, vector<1x32xf32> -> vector<1x32xf32>
    %683 = arith.addf %681, %682 : vector<1x32xf32>
    %684 = vector.extract_strided_slice %380 {offsets = [7, 0], sizes = [1, 32], strides = [1, 1]} : vector<8x32xf32> to vector<1x32xf32>
    %cst_306 = arith.constant dense<0.000000e+00> : vector<1x32xf32>
    %685 = tpu.matmul %676, %393, %cst_306 {dimension_numbers = #tpu.dot_dimension_numbers<[1], [0], [0], [1], [0, 0, 1, 1], [], []>} : vector<1x32xf32>, vector<32x32xf32>, vector<1x32xf32> -> vector<1x32xf32>
    %686 = arith.addf %684, %685 : vector<1x32xf32>
    %687 = vector.extract_strided_slice %387 {offsets = [7, 0], sizes = [1, 32], strides = [1, 1]} : vector<8x32xf32> to vector<1x32xf32>
    %cst_307 = arith.constant dense<0.000000e+00> : vector<1x32xf32>
    %688 = tpu.matmul %676, %395, %cst_307 {dimension_numbers = #tpu.dot_dimension_numbers<[1], [0], [0], [1], [0, 0, 1, 1], [], []>} : vector<1x32xf32>, vector<32x32xf32>, vector<1x32xf32> -> vector<1x32xf32>
    %689 = arith.addf %687, %688 : vector<1x32xf32>
    %cst_308 = arith.constant 5.000000e-01 : f32
    %690 = vector.broadcast %cst_308 : f32 to vector<1x32xf32>
    %691 = arith.mulf %690, %680 : vector<1x32xf32>
    %692 = math.tanh %691 : vector<1x32xf32>
    %cst_309 = arith.constant 5.000000e-01 : f32
    %693 = vector.broadcast %cst_309 : f32 to vector<1x32xf32>
    %694 = arith.mulf %693, %692 : vector<1x32xf32>
    %cst_310 = arith.constant 5.000000e-01 : f32
    %695 = vector.broadcast %cst_310 : f32 to vector<1x32xf32>
    %696 = arith.addf %694, %695 : vector<1x32xf32>
    %cst_311 = arith.constant 5.000000e-01 : f32
    %697 = vector.broadcast %cst_311 : f32 to vector<1x32xf32>
    %698 = arith.mulf %697, %683 : vector<1x32xf32>
    %699 = math.tanh %698 : vector<1x32xf32>
    %cst_312 = arith.constant 5.000000e-01 : f32
    %700 = vector.broadcast %cst_312 : f32 to vector<1x32xf32>
    %701 = arith.mulf %700, %699 : vector<1x32xf32>
    %cst_313 = arith.constant 5.000000e-01 : f32
    %702 = vector.broadcast %cst_313 : f32 to vector<1x32xf32>
    %703 = arith.addf %701, %702 : vector<1x32xf32>
    %704 = math.tanh %686 : vector<1x32xf32>
    %cst_314 = arith.constant 5.000000e-01 : f32
    %705 = vector.broadcast %cst_314 : f32 to vector<1x32xf32>
    %706 = arith.mulf %705, %689 : vector<1x32xf32>
    %707 = math.tanh %706 : vector<1x32xf32>
    %cst_315 = arith.constant 5.000000e-01 : f32
    %708 = vector.broadcast %cst_315 : f32 to vector<1x32xf32>
    %709 = arith.mulf %708, %707 : vector<1x32xf32>
    %cst_316 = arith.constant 5.000000e-01 : f32
    %710 = vector.broadcast %cst_316 : f32 to vector<1x32xf32>
    %711 = arith.addf %709, %710 : vector<1x32xf32>
    %712 = arith.mulf %703, %674 : vector<1x32xf32>
    %713 = arith.mulf %696, %704 : vector<1x32xf32>
    %714 = arith.addf %712, %713 : vector<1x32xf32>
    %715 = math.tanh %714 : vector<1x32xf32>
    %716 = arith.mulf %711, %715 : vector<1x32xf32>
    %c7_317 = arith.constant 7 : index
    %c0_318 = arith.constant 0 : index
    %717 = vector.load %arg8[%c7_317, %c0_318] : memref<8x32xf32, #tpu.memory_space<vmem>>, vector<1x32xf32>
    tpu.vector_store %arg8[%c7_317, %c0_318], %716 {strides = array<i32>} : memref<8x32xf32, #tpu.memory_space<vmem>>, vector<1x32xf32>,
    return
  }
  func.func @transform_0(%arg0: i32) -> (i32, i32) {
    %c0_i32 = arith.constant 0 : i32
    %c0_i32_0 = arith.constant 0 : i32
    %c0_i32_1 = arith.constant 0 : i32
    return %c0_i32, %c0_i32_0 : i32, i32
  }
  func.func @transform_1(%arg0: i32) -> (i32, i32, i32) {
    %c0_i32 = arith.constant 0 : i32
    %c0_i32_0 = arith.constant 0 : i32
    %c0_i32_1 = arith.constant 0 : i32
    %c0_i32_2 = arith.constant 0 : i32
    return %c0_i32, %c0_i32_0, %c0_i32_1 : i32, i32, i32
  }
  func.func @transform_2(%arg0: i32) -> (i32, i32, i32) {
    %c0_i32 = arith.constant 0 : i32
    %c0_i32_0 = arith.constant 0 : i32
    %c0_i32_1 = arith.constant 0 : i32
    %c0_i32_2 = arith.constant 0 : i32
    return %c0_i32, %c0_i32_0, %c0_i32_1 : i32, i32, i32
  }
  func.func @transform_3(%arg0: i32) -> (i32, i32, i32) {
    %c0_i32 = arith.constant 0 : i32
    %c0_i32_0 = arith.constant 0 : i32
    %c0_i32_1 = arith.constant 0 : i32
    %c0_i32_2 = arith.constant 0 : i32
    return %c0_i32, %c0_i32_0, %c0_i32_1 : i32, i32, i32
  }
  func.func @transform_4(%arg0: i32) -> (i32, i32, i32) {
    %c0_i32 = arith.constant 0 : i32
    %c0_i32_0 = arith.constant 0 : i32
    %c0_i32_1 = arith.constant 0 : i32
    %c0_i32_2 = arith.constant 0 : i32
    return %c0_i32, %c0_i32_0, %c0_i32_1 : i32, i32, i32
  }
  func.func @transform_5(%arg0: i32) -> (i32, i32, i32) {
    %c0_i32 = arith.constant 0 : i32
    %c0_i32_0 = arith.constant 0 : i32
    %c0_i32_1 = arith.constant 0 : i32
    %c0_i32_2 = arith.constant 0 : i32
    return %c0_i32, %c0_i32_0, %c0_i32_1 : i32, i32, i32
  }
  func.func @transform_6(%arg0: i32) -> (i32, i32, i32) {
    %c0_i32 = arith.constant 0 : i32
    %c0_i32_0 = arith.constant 0 : i32
    %c0_i32_1 = arith.constant 0 : i32
    %c0_i32_2 = arith.constant 0 : i32
    return %c0_i32, %c0_i32_0, %c0_i32_1 : i32, i32, i32
  }
  func.func @transform_7(%arg0: i32) -> (i32, i32) {
    %c0_i32 = arith.constant 0 : i32
    %c0_i32_0 = arith.constant 0 : i32
    %c0_i32_1 = arith.constant 0 : i32
    return %c0_i32, %c0_i32_0 : i32, i32
  }
}

</mosaic_0001>

<bundles_post_ra>
// kernel: tpu_custom_call.1
= control target key start
LH: loop header
LB: loop body
LE: loop exit
PB: predicated region body
PF: predicated region fallthrough
CT: control target
= control target key end

     0   :  { %12 = vsyncpa [#allocation4], 0  ;;  %s8693_s0 = inlined_call_operand.hbm [shape: f32[8,16], index: 0, kind: input, shape index: {}]   ;;  %s8694_s1 = inlined_call_operand.hbm [shape: f32[4,16,32], index: 1, kind: input, shape index: {}]   ;;  %s8695_s2 = inlined_call_operand.hbm [shape: f32[4,32,32], index: 2, kind: input, shape index: {}]   ;;  %s8696_s3 = inlined_call_operand.vmem [shape: f32[4,1,32], index: 3, kind: input, shape index: {}]   ;;  %s8697_s4 = inlined_call_operand.hbm [shape: f32[4,32,32], index: 4, kind: input, shape index: {}]   ;;  %s8698_s5 = inlined_call_operand.hbm [shape: f32[4,32,32], index: 5, kind: input, shape index: {}]   ;;  %s8699_s6 = inlined_call_operand.vmem [shape: f32[4,1,32], index: 6, kind: input, shape index: {}]   ;;  %s8700_s7 = inlined_call_operand.hbm [shape: f32[8,32], index: 7, kind: output, shape index: {}]  }
   0x1   :  { %13 = vsyncpa [#allocation7], 0 }
   0x2   :  { %14 = vsyncpa [#allocation10], 0 }
   0x3   :  { %15 = vsyncpa [#allocation5], 0  ;;  %s7870_s24 = smov [#allocation6]   ;;  %s7730_s28 = scalar_lea.hbm %s8694_s1, 1024 }
   0x4   :  { %s31_s25 = sshll.u32 %s7870_s24, 4  ;;  %p7731_p0 = scmp.ne.s32.totalorder %s8694_s1, %s7730_s28  ;;  %s32_s25 = int_to_ptr.vmem [resolvable:$true] %s31_s25 }
   0x5   :  { %p7734_p1 = scmp.lt.u32.totalorder %s7730_s28, %s8694_s1 }
   0x7   :  { %p7736_p2 = pnand %p7734_p1, %p7731_p0 }
   0x9   :  { %7739 = shalt.err (!%p7736_p2)
}
   0xa   :  { %s7740_s10 = scalar_lea.vmem %s32_s25, 1024  ;;  %p7745_p4 = scmp.lt.s32.totalorder %s32_s25, %s32_s25 }
   0xb   :  { %p7741_p3 = scmp.ne.s32.totalorder %s32_s25, %s7740_s10  ;;  %p7746_p5 = scmp.lt.s32.totalorder %s7740_s10, %s7740_s10 }
   0xd   :  { %p7747_p6 = por %p7746_p5, %p7745_p4 }
   0xf   :  { %p7748_p7 = pnand %p7747_p6, %p7741_p3 }
  0x11   :  { %7751 = shalt.err (!%p7748_p7)
}
  0x12   :  { %s7871_s11 = smov 128   ;;  %s7872_s12 = smov 8  }
  0x13   :  { %37 = dma.hbm_to_vmem [thread:$0]  %s8694_s1, 1024, %s32_s25, [#allocation7], %s7871_s11, %s7871_s11, %s7872_s12  }
  0x14   :  { %s7873_s15 = smov [#allocation9]   ;;  %s7874_s17 = smov [#allocation3]  }
  0x15   :  { %s57_s16 = sshll.u32 %s7873_s15, 4  ;;  %s22_s18 = sshll.u32 %s7874_s17, 4  ;;  %s58_s16 = int_to_ptr.vmem [resolvable:$true] %s57_s16  ;;  %s23_s18 = int_to_ptr.vmem [resolvable:$true] %s22_s18 }
  0x16   :  { %s7752_s21 = scalar_lea.hbm %s8697_s4, 2048 }
  0x17   :  { %p7753_p8 = scmp.ne.s32.totalorder %s8697_s4, %s7752_s21  ;;  %p7756_p9 = scmp.lt.u32.totalorder %s7752_s21, %s8697_s4 }
  0x19   :  { %p7758_p10 = pnand %p7756_p9, %p7753_p8 }
  0x1b   :  { %7761 = shalt.err (!%p7758_p10)
}
  0x1c   :  { %s7762_s1 = scalar_lea.vmem %s58_s16, 2048  ;;  %p7767_p12 = scmp.lt.s32.totalorder %s58_s16, %s58_s16 }
  0x1d   :  { %p7763_p11 = scmp.ne.s32.totalorder %s58_s16, %s7762_s1  ;;  %p7768_p13 = scmp.lt.s32.totalorder %s7762_s1, %s7762_s1 }
  0x1f   :  { %p7769_p0 = por %p7768_p13, %p7767_p12 }
  0x21   :  { %p7770_p1 = pnand %p7769_p0, %p7763_p11 }
  0x23   :  { %7773 = shalt.err (!%p7770_p1)
}
  0x24   :  { %63 = dma.hbm_to_vmem [thread:$0]  %s8697_s4, 2048, %s58_s16, [#allocation10], %s7871_s11, %s7871_s11, %s7872_s12  }
  0x25   :  { %s7774_s30 = scalar_lea.hbm %s8693_s0, 128 }
  0x26   :  { %p7775_p2 = scmp.ne.s32.totalorder %s8693_s0, %s7774_s30  ;;  %p7778_p3 = scmp.lt.u32.totalorder %s7774_s30, %s8693_s0 }
  0x28   :  { %p7780_p4 = pnand %p7778_p3, %p7775_p2 }
  0x2a   :  { %7783 = shalt.err (!%p7780_p4)
}
  0x2b   :  { %s7784_s14 = scalar_lea.vmem %s23_s18, 128  ;;  %p7789_p6 = scmp.lt.s32.totalorder %s23_s18, %s23_s18 }
  0x2c   :  { %p7785_p5 = scmp.ne.s32.totalorder %s23_s18, %s7784_s14  ;;  %p7790_p7 = scmp.lt.s32.totalorder %s7784_s14, %s7784_s14 }
  0x2e   :  { %p7791_p8 = por %p7790_p7, %p7789_p6 }
  0x30   :  { %p7792_p9 = pnand %p7791_p8, %p7785_p5 }
  0x32   :  { %7795 = shalt.err (!%p7792_p9)
}
  0x33   :  { %25 = dma.hbm_to_vmem [thread:$0]  %s8693_s0, 128, %s23_s18, [#allocation4]  }
  0x34   :  { %s7875_s16 = smov [#allocation8]   ;;  %s7876_s19 = smov [#allocation11]  }
  0x35   :  { %s43_s17 = sshll.u32 %s7875_s16, 4  ;;  %s69_s20 = sshll.u32 %s7876_s19, 4  ;;  %s44_s17 = int_to_ptr.vmem [resolvable:$true] %s43_s17  ;;  %s70_s20 = int_to_ptr.vmem [resolvable:$true] %s69_s20 }
  0x36   :  { %s7796_s23 = scalar_lea.hbm %s8695_s2, 2048 }
  0x37   :  { %p7797_p10 = scmp.ne.s32.totalorder %s8695_s2, %s7796_s23  ;;  %p7800_p11 = scmp.lt.u32.totalorder %s7796_s23, %s8695_s2 }
  0x39   :  { %p7802_p12 = pnand %p7800_p11, %p7797_p10 }
  0x3b   :  { %7805 = shalt.err (!%p7802_p12)
}
  0x3c   :  { %s7806_s0 = scalar_lea.vmem %s44_s17, 2048  ;;  %p7811_p0 = scmp.lt.s32.totalorder %s44_s17, %s44_s17 }
  0x3d   :  { %p7807_p13 = scmp.ne.s32.totalorder %s44_s17, %s7806_s0  ;;  %p7812_p1 = scmp.lt.s32.totalorder %s7806_s0, %s7806_s0 }
  0x3f   :  { %p7813_p2 = por %p7812_p1, %p7811_p0 }
  0x41   :  { %p7814_p3 = pnand %p7813_p2, %p7807_p13 }
  0x43   :  { %7817 = shalt.err (!%p7814_p3)
}
  0x44   :  { %49 = dma.hbm_to_vmem [thread:$0]  %s8695_s2, 2048, %s44_s17, [#allocation7], %s7871_s11, %s7871_s11, %s7872_s12  }
  0x45   :  { %s7818_s30 = scalar_lea.hbm %s8698_s5, 2048 }
  0x46   :  { %p7819_p4 = scmp.ne.s32.totalorder %s8698_s5, %s7818_s30  ;;  %p7822_p5 = scmp.lt.u32.totalorder %s7818_s30, %s8698_s5 }
  0x48   :  { %p7824_p6 = pnand %p7822_p5, %p7819_p4 }
  0x4a   :  { %7827 = shalt.err (!%p7824_p6)
}
  0x4b   :  { %s7828_s14 = scalar_lea.vmem %s70_s20, 2048  ;;  %p7833_p8 = scmp.lt.s32.totalorder %s70_s20, %s70_s20 }
  0x4c   :  { %p7829_p7 = scmp.ne.s32.totalorder %s70_s20, %s7828_s14  ;;  %p7834_p9 = scmp.lt.s32.totalorder %s7828_s14, %s7828_s14 }
  0x4e   :  { %p7835_p10 = por %p7834_p9, %p7833_p8 }
  0x50   :  { %p7836_p11 = pnand %p7835_p10, %p7829_p7 }
  0x52   :  { %7839 = shalt.err (!%p7836_p11)
}
  0x53   :  { %75 = dma.hbm_to_vmem [thread:$0]  %s8698_s5, 2048, %s70_s20, [#allocation10], %s7871_s11, %s7871_s11, %s7872_s12  }
  0x54   :  { %7862 = dma.done.wait [#allocation4], 128  }
  0x55   :  { %7863 = vsyncadd [#allocation4], 4294967168 }
  0x56   :  { %7864 = dma.done.wait [#allocation7], 3072  }
  0x57   :  { %7865 = vsyncadd [#allocation7], 4294964224 }
  0x58   :  { %7866 = dma.done.wait [#allocation10], 4096  }
  0x59   :  { %7867 = vsyncadd [#allocation10], 4294963200  ;;  %v7877_v0 = vmov 0.0|0.0   ;;  %vm7878_vm0 = vmmov 0   ;;  %v7879_v1 = vmov 0.0   ;;  %v94_v2 = vld [vmem:[#allocation6] sm:$0xff] }
  0x5a   :  { %7139 = vmatprep.subr.bf16.mxu0 %v7877_v0  ;;  %7142 = vmatprep.subr.bf16.mxu1 %v7877_v0  ;;  %v95_v3 = vld [vmem:[#allocation6 + $0x8] sm:$0xff]  ;;  %v178_v4 = vld [vmem:[#allocation6 + $0x10] sm:$0xff]  ;;  %v179_v6 = vld [vmem:[#allocation6 + $0x18] sm:$0xff]  ;;  %vm103_vm1 = vcmask 130048   ;;  %vm745_vm2 = vcmask 253952   ;;  %vm439_vm3 = vcmask 261120  }
  0x5b   :  { %6367 = vmatprep.mubr.msk.f32.mxu0 %vm7878_vm0, %v7879_v1  ;;  %6374 = vmatprep.mubr.msk.f32.mxu1 %vm7878_vm0, %v7879_v1  ;;  %v7140_v5 = vpack.c.bf16 %v95_v3, %v94_v2  ;;  %v259_v7 = vld [vmem:[#allocation6 + $0x20] sm:$0xff]  ;;  %v7143_v8 = vpack.c.bf16 %v179_v6, %v178_v4  ;;  %v260_v9 = vld [vmem:[#allocation6 + $0x28] sm:$0xff]  ;;  %v340_v10 = vld [vmem:[#allocation6 + $0x30] sm:$0xff]  ;;  %vm1067_vm4 = vcmask 254977   ;;  %vm1390_vm5 = vcmask 256002  }
  0x5c   :  { %v341_v11 = vld [vmem:[#allocation6 + $0x38] sm:$0xff]  ;;  %v7146_v13 = vpack.c.bf16 %v260_v9, %v259_v7  ;;  %v420_v15 = vld [vmem:[#allocation8] sm:$0xff]  ;;  %v421_v16 = vld [vmem:[#allocation8 + $0x8] sm:$0xff]  ;;  %vm1713_vm6 = vcmask 257027   ;;  %vm2036_vm7 = vcmask 258052   ;;  %vm2359_vm8 = vcmask 259077  }
  0x5d   :  { %7141 = vmatpush3.bf16.msra.mxu0 %v7140_v5  ;;  %v93_v12 = vld [vmem:[#allocation3] sm:$0xff]  ;;  %7144 = vmatpush3.bf16.msra.mxu1 %v7143_v8  ;;  %v7149_v14 = vpack.c.bf16 %v341_v11, %v340_v10  ;;  %v425_v17 = vld [vmem:[#allocation8 + $0x20] sm:$0xff]  ;;  %v426_v18 = vld [vmem:[#allocation8 + $0x28] sm:$0xff]  ;;  %v8003_v19 = vpack.c.bf16 %v421_v16, %v420_v15  ;;  %vm2682_vm9 = vcmask 260102   ;;  %vm3005_vm10 = vcmask 261127  }
  0x5e   :  { %7145 = vmatprep.subr.bf16.mxu0 %v7877_v0  ;;  %7148 = vmatprep.subr.bf16.mxu1 %v7877_v0  ;;  %v8007_v20 = vpack.c.bf16 %v426_v18, %v425_v17  ;;  %v422_v21 = vld [vmem:[#allocation8 + $0x10] sm:$0xff]  ;;  %v423_v22 = vld [vmem:[#allocation8 + $0x18] sm:$0xff]  ;;  %v430_v27 = vld [vmem:[#allocation8 + $0x40] sm:$0xff] }
  0x5f   :  { %v427_v23 = vld [vmem:[#allocation8 + $0x30] sm:$0xff]  ;;  %v428_v24 = vld [vmem:[#allocation8 + $0x38] sm:$0xff]  ;;  %v8016_v25 = vpack.c.bf16 %v423_v22, %v422_v21  ;;  %v431_v28 = vld [vmem:[#allocation8 + $0x48] sm:$0xff] }
  0x60   :  { %6368 = vmatmul.mubr.msk.f32.vlgmr.msra.gmra.mrb[0].mxu0 %vm103_vm1, %v93_v12  ;;  %6375 = vmatmul.mubr.msk.f32.vlgmr.msra.gmra.mrb[0].mxu1 %vm103_vm1, %v93_v12  ;;  %v8020_v26 = vpack.c.bf16 %v428_v24, %v427_v23  ;;  %v435_v29 = vld [vmem:[#allocation8 + $0x60] sm:$0xff]  ;;  %v436_v30 = vld [vmem:[#allocation8 + $0x68] sm:$0xff]  ;;  %v8028_v31 = vpack.c.bf16 %v431_v28, %v430_v27  ;;  %v432_v33 = vld [vmem:[#allocation8 + $0x50] sm:$0xff] }
  0x61   :  { %7147 = vmatpush3.bf16.msra.mxu0 %v7146_v13  ;;  %7150 = vmatpush3.bf16.msra.mxu1 %v7149_v14  ;;  %v8032_v32 = vpack.c.bf16 %v436_v30, %v435_v29  ;;  %v433_v34 = vld [vmem:[#allocation8 + $0x58] sm:$0xff]  ;;  %v437_v35 = vld [vmem:[#allocation8 + $0x70] sm:$0xff] }
  0x62   :  { %6381 = vmatprep.mubr.msk.f32.mxu0 %vm7878_vm0, %v7879_v1  ;;  %6388 = vmatprep.mubr.msk.f32.mxu1 %vm7878_vm0, %v7879_v1  ;;  %v438_v36 = vld [vmem:[#allocation8 + $0x78] sm:$0xff]  ;;  %v8038_v37 = vpack.c.bf16 %v433_v34, %v432_v33  ;;  %v5933_v47 = vld [vmem:[%s8696_s3] ss:$0 sm:$0xff]  ;;  %v5936_v48 = vld [vmem:[%s8696_s3 + $0x1] ss:$0 sm:$0xff] }
  0x63   :  { %7151 = vmatprep.subr.bf16.mxu0 %v7877_v0  ;;  %7157 = vmatprep.subr.bf16.mxu1 %v7877_v0  ;;  %v8042_v38 = vpack.c.bf16 %v438_v36, %v437_v35  ;;  %v5939_v58 = vld [vmem:[%s8696_s3 + $0x2] ss:$0 sm:$0xff]  ;;  %v5942_v60 = vld [vmem:[%s8696_s3 + $0x3] ss:$0 sm:$0xff] }
  0x64   :  { %6382 = vmatmul.mubr.msk.f32.vlgmr.msra.gmra.mrb[2].mxu0 %vm103_vm1, %v93_v12  ;;  %6389 = vmatmul.mubr.msk.f32.vlgmr.msra.gmra.mrb[2].mxu1 %vm103_vm1, %v93_v12 }
  0x65   :  { %7153 = vmatpush3.bf16.msra.mxu0 %v8003_v19  ;;  %7159 = vmatpush3.bf16.msra.mxu1 %v8007_v20 }
  0x66   :  { %7154 = vmatprep.subr.bf16.mxu0 %v7877_v0  ;;  %7160 = vmatprep.subr.bf16.mxu1 %v7877_v0 }
  0x67   :  { %6399 = vmatprep.mubr.msk.f32.mxu0 %vm7878_vm0, %v7879_v1  ;;  %6410 = vmatprep.mubr.msk.f32.mxu1 %vm7878_vm0, %v7879_v1 }
  0x69   :  { %7156 = vmatpush3.bf16.msra.mxu0 %v8016_v25  ;;  %7162 = vmatpush3.bf16.msra.mxu1 %v8020_v26 }
  0x6a   :  { %7163 = vmatprep.subr.bf16.mxu0 %v7877_v0  ;;  %7169 = vmatprep.subr.bf16.mxu1 %v7877_v0 }
  0x6c   :  { %6400 = vmatmul.mubr.f32.vlgmr.msra.gmra.mrb[4].mxu0 %v7879_v1  ;;  %6411 = vmatmul.mubr.f32.vlgmr.msra.gmra.mrb[4].mxu1 %v7879_v1 }
  0x6d   :  { %7165 = vmatpush3.bf16.msra.mxu0 %v8028_v31  ;;  %7171 = vmatpush3.bf16.msra.mxu1 %v8032_v32 }
  0x6e   :  { %7166 = vmatprep.subr.bf16.mxu0 %v7877_v0  ;;  %7172 = vmatprep.subr.bf16.mxu1 %v7877_v0 }
  0x6f   :  { %6421 = vmatprep.mubr.msk.f32.mxu0 %vm7878_vm0, %v7879_v1  ;;  %6432 = vmatprep.mubr.msk.f32.mxu1 %vm7878_vm0, %v7879_v1 }
  0x71   :  { %7168 = vmatpush3.bf16.msra.mxu0 %v8038_v37  ;;  %7174 = vmatpush3.bf16.msra.mxu1 %v8042_v38 }
  0x72   :  { %7175 = vmatprep.subr.bf16.mxu0 %v7877_v0  ;;  %7181 = vmatprep.subr.bf16.mxu1 %v7877_v0 }
  0x74   :  { %6422 = vmatmul.mubr.f32.vlgmr.msra.gmra.mrb[6].mxu0 %v7879_v1  ;;  %6433 = vmatmul.mubr.f32.vlgmr.msra.gmra.mrb[6].mxu1 %v7879_v1 }
  0x75   :  { %7177 = vmatpush3.bf16.msra.mxu0 %v8003_v19  ;;  %7183 = vmatpush3.bf16.msra.mxu1 %v8007_v20 }
  0x76   :  { %7178 = vmatprep.subr.bf16.mxu0 %v7877_v0  ;;  %7184 = vmatprep.subr.bf16.mxu1 %v7877_v0 }
  0x77   :  { %6443 = vmatprep.mubr.msk.f32.mxu0 %vm7878_vm0, %v7879_v1  ;;  %6454 = vmatprep.mubr.msk.f32.mxu1 %vm7878_vm0, %v7879_v1 }
  0x79   :  { %7180 = vmatpush3.bf16.msra.mxu0 %v8016_v25  ;;  %7186 = vmatpush3.bf16.msra.mxu1 %v8020_v26 }
  0x7a   :  { %7187 = vmatprep.subr.bf16.mxu0 %v7877_v0  ;;  %7193 = vmatprep.subr.bf16.mxu1 %v7877_v0 }
 0x133   :  { %v173_v39 = vpop.f32.mrb[0].mxu0  ;;  %v254_v41 = vpop.f32.mrb[0].mxu1 }
 0x134   :  { %v6369_v40 = vpop.f32.mrb[1].mxu0  ;;  %v6376_v42 = vpop.f32.mrb[1].mxu1  ;;  %v8073_v49 = vadd.f32 %v5933_v47, %v173_v39  ;;  %v8075_v50 = vadd.f32 %v5936_v48, %v254_v41 }
 0x137   :  { %v335_v43 = vpop.f32.mrb[2].mxu0  ;;  %v416_v45 = vpop.f32.mrb[2].mxu1 }
 0x138   :  { %v6383_v44 = vpop.f32.mrb[3].mxu0  ;;  %v6390_v46 = vpop.f32.mrb[3].mxu1  ;;  %v8085_v61 = vadd.f32 %v5939_v58, %v335_v43  ;;  %v8087_v62 = vadd.f32 %v5942_v60, %v416_v45 }
 0x13f   :  { %v509_v51 = vpop.f32.mrb[4].mxu0  ;;  %v580_v53 = vpop.f32.mrb[4].mxu1 }
 0x140   :  { %v513_v52 = vadd.f32 %v509_v51, %v8073_v49  ;;  %v6401_v54 = vpop.f32.mrb[5].mxu0  ;;  %v584_v55 = vadd.f32 %v580_v53, %v8075_v50  ;;  %v6412_v56 = vpop.f32.mrb[5].mxu1 }
 0x142   :  { %v727_v57 = vmul.f32 0.5, %v513_v52  ;;  %v731_v59 = vmul.f32 0.5, %v584_v55 }
 0x144   :  { %7570 = vtanh.f32 %v727_v57 }
 0x145   :  { %7572 = vtanh.f32 %v731_v59 }
 0x147   :  { %v651_v63 = vpop.f32.mrb[6].mxu0  ;;  %v722_v3 = vpop.f32.mrb[6].mxu1 }
 0x148   :  { %v655_v2 = vadd.f32 %v651_v63, %v8085_v61  ;;  %v6423_v4 = vpop.f32.mrb[7].mxu0  ;;  %v726_v5 = vadd.f32 %v722_v3, %v8087_v62  ;;  %v6434_v6 = vpop.f32.mrb[7].mxu1 }
 0x14a   :  { %7574 = vtanh.f32 %v655_v2  ;;  %v736_v7 = vmul.f32 0.5, %v726_v5 }
 0x14c   :  { %7576 = vtanh.f32 %v736_v7 }
 0x14e   :  { %v7571_v8 = vpop.eup %7570 }
 0x14f   :  { %v7573_v9 = vpop.eup %7572  ;;  %v729_v10 = vmul.f32 0.5, %v7571_v8 }
 0x150   :  { %v733_v11 = vmul.f32 0.5, %v7573_v9 }
 0x151   :  { %v730_v13 = vadd.f32 0.5, %v729_v10 }
 0x152   :  { %v734_v12 = vadd.f32 0.5, %v733_v11 }
 0x154   :  { %v7575_v14 = vpop.eup %7574  ;;  %v740_v15 = vmul.f32 0.0, %v734_v12 }
 0x155   :  { %v741_v16 = vmul.f32 %v7575_v14, %v730_v13 }
 0x156   :  { %v7577_v18 = vpop.eup %7576 }
 0x157   :  { %v8091_v17 = vadd.f32 %v741_v16, %v740_v15  ;;  %v738_v21 = vmul.f32 0.5, %v7577_v18 }
 0x159   :  { %7578 = vtanh.f32 %v8091_v17  ;;  %v739_v22 = vadd.f32 0.5, %v738_v21  ;;  %v1060_v58 = vrot.slane %v8091_v17, 7 }
 0x163   :  { %v7579_v23 = vpop.eup %7578 }
 0x164   :  { %v744_v24 = vmul.f32 %v7579_v23, %v739_v22 }
 0x166   :  { %746 = vst.msk [vmem:[#allocation2] sm:$0x1] %vm745_vm2, %v744_v24  ;;  %6444 = vmatmul.mubr.msk.f32.vlgmr.msra.gmra.mrb[8].mxu0 %vm439_vm3, %v744_v24  ;;  %6455 = vmatmul.mubr.msk.f32.vlgmr.msra.gmra.mrb[8].mxu1 %vm439_vm3, %v744_v24 }
 0x167   :  { %7189 = vmatpush3.bf16.msra.mxu0 %v8028_v31  ;;  %7195 = vmatpush3.bf16.msra.mxu1 %v8032_v32 }
 0x168   :  { %7190 = vmatprep.subr.bf16.mxu0 %v7877_v0  ;;  %7196 = vmatprep.subr.bf16.mxu1 %v7877_v0 }
 0x169   :  { %6465 = vmatprep.mubr.msk.f32.mxu0 %vm7878_vm0, %v7879_v1  ;;  %6476 = vmatprep.mubr.msk.f32.mxu1 %vm7878_vm0, %v7879_v1 }
 0x16b   :  { %7192 = vmatpush3.bf16.msra.mxu0 %v8038_v37  ;;  %7198 = vmatpush3.bf16.msra.mxu1 %v8042_v38 }
 0x16c   :  { %7199 = vmatprep.subr.bf16.mxu0 %v7877_v0  ;;  %7205 = vmatprep.subr.bf16.mxu1 %v7877_v0 }
 0x16e   :  { %6466 = vmatmul.mubr.msk.f32.vlgmr.msra.gmra.mrb[10].mxu0 %vm439_vm3, %v744_v24  ;;  %6477 = vmatmul.mubr.msk.f32.vlgmr.msra.gmra.mrb[10].mxu1 %vm439_vm3, %v744_v24 }
 0x16f   :  { %7201 = vmatpush3.bf16.msra.mxu0 %v8003_v19  ;;  %7207 = vmatpush3.bf16.msra.mxu1 %v8007_v20 }
 0x170   :  { %7202 = vmatprep.subr.bf16.mxu0 %v7877_v0  ;;  %7208 = vmatprep.subr.bf16.mxu1 %v7877_v0 }
 0x171   :  { %6487 = vmatprep.mubr.msk.f32.mxu0 %vm7878_vm0, %v7879_v1  ;;  %6498 = vmatprep.mubr.msk.f32.mxu1 %vm7878_vm0, %v7879_v1 }
 0x173   :  { %7204 = vmatpush3.bf16.msra.mxu0 %v8016_v25  ;;  %7210 = vmatpush3.bf16.msra.mxu1 %v8020_v26 }
 0x174   :  { %7211 = vmatprep.subr.bf16.mxu0 %v7877_v0  ;;  %7217 = vmatprep.subr.bf16.mxu1 %v7877_v0 }
 0x239   :  { %v816_v27 = vpop.f32.mrb[8].mxu0  ;;  %v890_v28 = vpop.f32.mrb[8].mxu1 }
 0x23a   :  { %v821_v29 = vrot.slane %v816_v27, 7  ;;  %v895_v30 = vrot.slane %v890_v28, 7  ;;  %v6445_v33 = vpop.f32.mrb[9].mxu0  ;;  %v6456_v34 = vpop.f32.mrb[9].mxu1 }
 0x23c   :  { %v823_v35 = vadd.f32 %v821_v29, %v8073_v49  ;;  %v897_v36 = vadd.f32 %v895_v30, %v8075_v50 }
 0x23e   :  { %v1046_v39 = vmul.f32 0.5, %v823_v35  ;;  %v1050_v40 = vmul.f32 0.5, %v897_v36 }
 0x240   :  { %7580 = vtanh.f32 %v1046_v39 }
 0x241   :  { %7582 = vtanh.f32 %v1050_v40  ;;  %v964_v41 = vpop.f32.mrb[10].mxu0  ;;  %v1038_v42 = vpop.f32.mrb[10].mxu1 }
 0x242   :  { %v969_v43 = vrot.slane %v964_v41, 7  ;;  %v1043_v44 = vrot.slane %v1038_v42, 7  ;;  %v6467_v45 = vpop.f32.mrb[11].mxu0  ;;  %v6478_v46 = vpop.f32.mrb[11].mxu1 }
 0x244   :  { %v971_v47 = vadd.f32 %v969_v43, %v8085_v61  ;;  %v1045_v48 = vadd.f32 %v1043_v44, %v8087_v62 }
 0x246   :  { %7584 = vtanh.f32 %v971_v47  ;;  %v1055_v51 = vmul.f32 0.5, %v1045_v48 }
 0x248   :  { %7586 = vtanh.f32 %v1055_v51 }
 0x24a   :  { %v7581_v52 = vpop.eup %7580 }
 0x24b   :  { %v7583_v53 = vpop.eup %7582  ;;  %v1048_v54 = vmul.f32 0.5, %v7581_v52 }
 0x24c   :  { %v1052_v55 = vmul.f32 0.5, %v7583_v53 }
 0x24d   :  { %v1049_v56 = vadd.f32 0.5, %v1048_v54 }
 0x24e   :  { %v1053_v57 = vadd.f32 0.5, %v1052_v55 }
 0x250   :  { %v7585_v59 = vpop.eup %7584  ;;  %v1062_v60 = vmul.f32 %v1060_v58, %v1053_v57 }
 0x251   :  { %v1063_v63 = vmul.f32 %v7585_v59, %v1049_v56 }
 0x252   :  { %v7587_v3 = vpop.eup %7586 }
 0x253   :  { %v8128_v2 = vadd.f32 %v1063_v63, %v1062_v60  ;;  %v1057_v4 = vmul.f32 0.5, %v7587_v3 }
 0x255   :  { %7588 = vtanh.f32 %v8128_v2  ;;  %v1058_v5 = vadd.f32 0.5, %v1057_v4  ;;  %v1383_v42 = vrot.slane %v8128_v2, 7 }
 0x25f   :  { %v7589_v6 = vpop.eup %7588 }
 0x260   :  { %v1066_v7 = vmul.f32 %v7589_v6, %v1058_v5 }
 0x262   :  { %1068 = vst.msk [vmem:[#allocation2] sm:$0x2] %vm1067_vm4, %v1066_v7  ;;  %v1070_v8 = vrot.slane %v1066_v7, 1 }
 0x264   :  { %6488 = vmatmul.mubr.msk.f32.vlgmr.msra.gmra.mrb[12].mxu0 %vm439_vm3, %v1070_v8  ;;  %6499 = vmatmul.mubr.msk.f32.vlgmr.msra.gmra.mrb[12].mxu1 %vm439_vm3, %v1070_v8 }
 0x265   :  { %7213 = vmatpush3.bf16.msra.mxu0 %v8028_v31  ;;  %7219 = vmatpush3.bf16.msra.mxu1 %v8032_v32 }
 0x266   :  { %7214 = vmatprep.subr.bf16.mxu0 %v7877_v0  ;;  %7220 = vmatprep.subr.bf16.mxu1 %v7877_v0 }
 0x267   :  { %6509 = vmatprep.mubr.msk.f32.mxu0 %vm7878_vm0, %v7879_v1  ;;  %6520 = vmatprep.mubr.msk.f32.mxu1 %vm7878_vm0, %v7879_v1 }
 0x269   :  { %7216 = vmatpush3.bf16.msra.mxu0 %v8038_v37  ;;  %7222 = vmatpush3.bf16.msra.mxu1 %v8042_v38 }
 0x26a   :  { %7223 = vmatprep.subr.bf16.mxu0 %v7877_v0  ;;  %7229 = vmatprep.subr.bf16.mxu1 %v7877_v0 }
 0x26c   :  { %6510 = vmatmul.mubr.msk.f32.vlgmr.msra.gmra.mrb[14].mxu0 %vm439_vm3, %v1070_v8  ;;  %6521 = vmatmul.mubr.msk.f32.vlgmr.msra.gmra.mrb[14].mxu1 %vm439_vm3, %v1070_v8 }
 0x26d   :  { %7225 = vmatpush3.bf16.msra.mxu0 %v8003_v19  ;;  %7231 = vmatpush3.bf16.msra.mxu1 %v8007_v20 }
 0x26e   :  { %7226 = vmatprep.subr.bf16.mxu0 %v7877_v0  ;;  %7232 = vmatprep.subr.bf16.mxu1 %v7877_v0 }
 0x26f   :  { %6531 = vmatprep.mubr.msk.f32.mxu0 %vm7878_vm0, %v7879_v1  ;;  %6542 = vmatprep.mubr.msk.f32.mxu1 %vm7878_vm0, %v7879_v1 }
 0x271   :  { %7228 = vmatpush3.bf16.msra.mxu0 %v8016_v25  ;;  %7234 = vmatpush3.bf16.msra.mxu1 %v8020_v26 }
 0x272   :  { %7235 = vmatprep.subr.bf16.mxu0 %v7877_v0  ;;  %7241 = vmatprep.subr.bf16.mxu1 %v7877_v0 }
 0x337   :  { %v1139_v9 = vpop.f32.mrb[12].mxu0  ;;  %v1213_v10 = vpop.f32.mrb[12].mxu1 }
 0x338   :  { %v1144_v11 = vrot.slane %v1139_v9, 6  ;;  %v1218_v12 = vrot.slane %v1213_v10, 6  ;;  %v6489_v13 = vpop.f32.mrb[13].mxu0  ;;  %v6500_v14 = vpop.f32.mrb[13].mxu1 }
 0x33a   :  { %v1146_v15 = vadd.f32 %v1144_v11, %v8073_v49  ;;  %v1220_v16 = vadd.f32 %v1218_v12, %v8075_v50 }
 0x33c   :  { %v1369_v17 = vmul.f32 0.5, %v1146_v15  ;;  %v1373_v18 = vmul.f32 0.5, %v1220_v16 }
 0x33e   :  { %7590 = vtanh.f32 %v1369_v17 }
 0x33f   :  { %7592 = vtanh.f32 %v1373_v18  ;;  %v1287_v21 = vpop.f32.mrb[14].mxu0  ;;  %v1361_v22 = vpop.f32.mrb[14].mxu1 }
 0x340   :  { %v1292_v23 = vrot.slane %v1287_v21, 6  ;;  %v1366_v24 = vrot.slane %v1361_v22, 6  ;;  %v6511_v27 = vpop.f32.mrb[15].mxu0  ;;  %v6522_v28 = vpop.f32.mrb[15].mxu1 }
 0x342   :  { %v1294_v29 = vadd.f32 %v1292_v23, %v8085_v61  ;;  %v1368_v30 = vadd.f32 %v1366_v24, %v8087_v62 }
 0x344   :  { %7594 = vtanh.f32 %v1294_v29  ;;  %v1378_v33 = vmul.f32 0.5, %v1368_v30 }
 0x346   :  { %7596 = vtanh.f32 %v1378_v33 }
 0x348   :  { %v7591_v34 = vpop.eup %7590 }
 0x349   :  { %v7593_v35 = vpop.eup %7592  ;;  %v1371_v36 = vmul.f32 0.5, %v7591_v34 }
 0x34a   :  { %v1375_v39 = vmul.f32 0.5, %v7593_v35 }
 0x34b   :  { %v1372_v40 = vadd.f32 0.5, %v1371_v36 }
 0x34c   :  { %v1376_v41 = vadd.f32 0.5, %v1375_v39 }
 0x34e   :  { %v7595_v43 = vpop.eup %7594  ;;  %v1385_v44 = vmul.f32 %v1383_v42, %v1376_v41 }
 0x34f   :  { %v1386_v45 = vmul.f32 %v7595_v43, %v1372_v40 }
 0x350   :  { %v7597_v47 = vpop.eup %7596 }
 0x351   :  { %v8165_v46 = vadd.f32 %v1386_v45, %v1385_v44  ;;  %v1380_v48 = vmul.f32 0.5, %v7597_v47 }
 0x353   :  { %7598 = vtanh.f32 %v8165_v46  ;;  %v1381_v51 = vadd.f32 0.5, %v1380_v48  ;;  %v1706_v22 = vrot.slane %v8165_v46, 7 }
 0x35d   :  { %v7599_v52 = vpop.eup %7598 }
 0x35e   :  { %v1389_v53 = vmul.f32 %v7599_v52, %v1381_v51 }
 0x360   :  { %1391 = vst.msk [vmem:[#allocation2] sm:$0x4] %vm1390_vm5, %v1389_v53  ;;  %v1393_v54 = vrot.slane %v1389_v53, 2 }
 0x362   :  { %6532 = vmatmul.mubr.msk.f32.vlgmr.msra.gmra.mrb[16].mxu0 %vm439_vm3, %v1393_v54  ;;  %6543 = vmatmul.mubr.msk.f32.vlgmr.msra.gmra.mrb[16].mxu1 %vm439_vm3, %v1393_v54 }
 0x363   :  { %7237 = vmatpush3.bf16.msra.mxu0 %v8028_v31  ;;  %7243 = vmatpush3.bf16.msra.mxu1 %v8032_v32 }
 0x364   :  { %7238 = vmatprep.subr.bf16.mxu0 %v7877_v0  ;;  %7244 = vmatprep.subr.bf16.mxu1 %v7877_v0 }
 0x365   :  { %6553 = vmatprep.mubr.msk.f32.mxu0 %vm7878_vm0, %v7879_v1  ;;  %6564 = vmatprep.mubr.msk.f32.mxu1 %vm7878_vm0, %v7879_v1 }
 0x367   :  { %7240 = vmatpush3.bf16.msra.mxu0 %v8038_v37  ;;  %7246 = vmatpush3.bf16.msra.mxu1 %v8042_v38 }
 0x368   :  { %7247 = vmatprep.subr.bf16.mxu0 %v7877_v0  ;;  %7253 = vmatprep.subr.bf16.mxu1 %v7877_v0 }
 0x36a   :  { %6554 = vmatmul.mubr.msk.f32.vlgmr.msra.gmra.mrb[18].mxu0 %vm439_vm3, %v1393_v54  ;;  %6565 = vmatmul.mubr.msk.f32.vlgmr.msra.gmra.mrb[18].mxu1 %vm439_vm3, %v1393_v54 }
 0x36b   :  { %7249 = vmatpush3.bf16.msra.mxu0 %v8003_v19  ;;  %7255 = vmatpush3.bf16.msra.mxu1 %v8007_v20 }
 0x36c   :  { %7250 = vmatprep.subr.bf16.mxu0 %v7877_v0  ;;  %7256 = vmatprep.subr.bf16.mxu1 %v7877_v0 }
 0x36d   :  { %6575 = vmatprep.mubr.msk.f32.mxu0 %vm7878_vm0, %v7879_v1  ;;  %6586 = vmatprep.mubr.msk.f32.mxu1 %vm7878_vm0, %v7879_v1 }
 0x36f   :  { %7252 = vmatpush3.bf16.msra.mxu0 %v8016_v25  ;;  %7258 = vmatpush3.bf16.msra.mxu1 %v8020_v26 }
 0x370   :  { %7259 = vmatprep.subr.bf16.mxu0 %v7877_v0  ;;  %7265 = vmatprep.subr.bf16.mxu1 %v7877_v0 }
 0x435   :  { %v1462_v55 = vpop.f32.mrb[16].mxu0  ;;  %v1536_v56 = vpop.f32.mrb[16].mxu1 }
 0x436   :  { %v1467_v57 = vrot.slane %v1462_v55, 5  ;;  %v1541_v58 = vrot.slane %v1536_v56, 5  ;;  %v6533_v59 = vpop.f32.mrb[17].mxu0  ;;  %v6544_v60 = vpop.f32.mrb[17].mxu1 }
 0x438   :  { %v1469_v63 = vadd.f32 %v1467_v57, %v8073_v49  ;;  %v1543_v2 = vadd.f32 %v1541_v58, %v8075_v50 }
 0x43a   :  { %v1692_v3 = vmul.f32 0.5, %v1469_v63  ;;  %v1696_v4 = vmul.f32 0.5, %v1543_v2 }
 0x43c   :  { %7600 = vtanh.f32 %v1692_v3 }
 0x43d   :  { %7602 = vtanh.f32 %v1696_v4  ;;  %v1610_v5 = vpop.f32.mrb[18].mxu0  ;;  %v1684_v6 = vpop.f32.mrb[18].mxu1 }
 0x43e   :  { %v1615_v7 = vrot.slane %v1610_v5, 5  ;;  %v1689_v8 = vrot.slane %v1684_v6, 5  ;;  %v6555_v9 = vpop.f32.mrb[19].mxu0  ;;  %v6566_v10 = vpop.f32.mrb[19].mxu1 }
 0x440   :  { %v1617_v11 = vadd.f32 %v1615_v7, %v8085_v61  ;;  %v1691_v12 = vadd.f32 %v1689_v8, %v8087_v62 }
 0x442   :  { %7604 = vtanh.f32 %v1617_v11  ;;  %v1701_v13 = vmul.f32 0.5, %v1691_v12 }
 0x444   :  { %7606 = vtanh.f32 %v1701_v13 }
 0x446   :  { %v7601_v14 = vpop.eup %7600 }
 0x447   :  { %v7603_v15 = vpop.eup %7602  ;;  %v1694_v16 = vmul.f32 0.5, %v7601_v14 }
 0x448   :  { %v1698_v17 = vmul.f32 0.5, %v7603_v15 }
 0x449   :  { %v1695_v18 = vadd.f32 0.5, %v1694_v16 }
 0x44a   :  { %v1699_v21 = vadd.f32 0.5, %v1698_v17 }
 0x44c   :  { %v7605_v23 = vpop.eup %7604  ;;  %v1708_v24 = vmul.f32 %v1706_v22, %v1699_v21 }
 0x44d   :  { %v1709_v27 = vmul.f32 %v7605_v23, %v1695_v18 }
 0x44e   :  { %v7607_v29 = vpop.eup %7606 }
 0x44f   :  { %v8202_v28 = vadd.f32 %v1709_v27, %v1708_v24  ;;  %v1703_v30 = vmul.f32 0.5, %v7607_v29 }
 0x451   :  { %7608 = vtanh.f32 %v8202_v28  ;;  %v1704_v33 = vadd.f32 0.5, %v1703_v30  ;;  %v2029_v6 = vrot.slane %v8202_v28, 7 }
 0x45b   :  { %v7609_v34 = vpop.eup %7608 }
 0x45c   :  { %v1712_v35 = vmul.f32 %v7609_v34, %v1704_v33 }
 0x45e   :  { %1714 = vst.msk [vmem:[#allocation2] sm:$0x8] %vm1713_vm6, %v1712_v35  ;;  %v1716_v36 = vrot.slane %v1712_v35, 3 }
 0x460   :  { %6576 = vmatmul.mubr.msk.f32.vlgmr.msra.gmra.mrb[20].mxu0 %vm439_vm3, %v1716_v36  ;;  %6587 = vmatmul.mubr.msk.f32.vlgmr.msra.gmra.mrb[20].mxu1 %vm439_vm3, %v1716_v36 }
 0x461   :  { %7261 = vmatpush3.bf16.msra.mxu0 %v8028_v31  ;;  %7267 = vmatpush3.bf16.msra.mxu1 %v8032_v32 }
 0x462   :  { %7262 = vmatprep.subr.bf16.mxu0 %v7877_v0  ;;  %7268 = vmatprep.subr.bf16.mxu1 %v7877_v0 }
 0x463   :  { %6597 = vmatprep.mubr.msk.f32.mxu0 %vm7878_vm0, %v7879_v1  ;;  %6608 = vmatprep.mubr.msk.f32.mxu1 %vm7878_vm0, %v7879_v1 }
 0x465   :  { %7264 = vmatpush3.bf16.msra.mxu0 %v8038_v37  ;;  %7270 = vmatpush3.bf16.msra.mxu1 %v8042_v38 }
 0x466   :  { %7271 = vmatprep.subr.bf16.mxu0 %v7877_v0  ;;  %7277 = vmatprep.subr.bf16.mxu1 %v7877_v0 }
 0x468   :  { %6598 = vmatmul.mubr.msk.f32.vlgmr.msra.gmra.mrb[22].mxu0 %vm439_vm3, %v1716_v36  ;;  %6609 = vmatmul.mubr.msk.f32.vlgmr.msra.gmra.mrb[22].mxu1 %vm439_vm3, %v1716_v36 }
 0x469   :  { %7273 = vmatpush3.bf16.msra.mxu0 %v8003_v19  ;;  %7279 = vmatpush3.bf16.msra.mxu1 %v8007_v20 }
 0x46a   :  { %7274 = vmatprep.subr.bf16.mxu0 %v7877_v0  ;;  %7280 = vmatprep.subr.bf16.mxu1 %v7877_v0 }
 0x46b   :  { %6619 = vmatprep.mubr.msk.f32.mxu0 %vm7878_vm0, %v7879_v1  ;;  %6630 = vmatprep.mubr.msk.f32.mxu1 %vm7878_vm0, %v7879_v1 }
 0x46d   :  { %7276 = vmatpush3.bf16.msra.mxu0 %v8016_v25  ;;  %7282 = vmatpush3.bf16.msra.mxu1 %v8020_v26 }
 0x46e   :  { %7283 = vmatprep.subr.bf16.mxu0 %v7877_v0  ;;  %7289 = vmatprep.subr.bf16.mxu1 %v7877_v0 }
 0x533   :  { %v1785_v39 = vpop.f32.mrb[20].mxu0  ;;  %v1859_v40 = vpop.f32.mrb[20].mxu1 }
 0x534   :  { %v1790_v41 = vrot.slane %v1785_v39, 4  ;;  %v1864_v42 = vrot.slane %v1859_v40, 4  ;;  %v6577_v43 = vpop.f32.mrb[21].mxu0  ;;  %v6588_v44 = vpop.f32.mrb[21].mxu1 }
 0x536   :  { %v1792_v45 = vadd.f32 %v1790_v41, %v8073_v49  ;;  %v1866_v46 = vadd.f32 %v1864_v42, %v8075_v50 }
 0x538   :  { %v2015_v47 = vmul.f32 0.5, %v1792_v45  ;;  %v2019_v48 = vmul.f32 0.5, %v1866_v46 }
 0x53a   :  { %7610 = vtanh.f32 %v2015_v47 }
 0x53b   :  { %7612 = vtanh.f32 %v2019_v48  ;;  %v1933_v51 = vpop.f32.mrb[22].mxu0  ;;  %v2007_v52 = vpop.f32.mrb[22].mxu1 }
 0x53c   :  { %v1938_v53 = vrot.slane %v1933_v51, 4  ;;  %v2012_v54 = vrot.slane %v2007_v52, 4  ;;  %v6599_v55 = vpop.f32.mrb[23].mxu0  ;;  %v6610_v56 = vpop.f32.mrb[23].mxu1 }
 0x53e   :  { %v1940_v57 = vadd.f32 %v1938_v53, %v8085_v61  ;;  %v2014_v58 = vadd.f32 %v2012_v54, %v8087_v62 }
 0x540   :  { %7614 = vtanh.f32 %v1940_v57  ;;  %v2024_v59 = vmul.f32 0.5, %v2014_v58 }
 0x542   :  { %7616 = vtanh.f32 %v2024_v59 }
 0x544   :  { %v7611_v60 = vpop.eup %7610 }
 0x545   :  { %v7613_v63 = vpop.eup %7612  ;;  %v2017_v2 = vmul.f32 0.5, %v7611_v60 }
 0x546   :  { %v2021_v3 = vmul.f32 0.5, %v7613_v63 }
 0x547   :  { %v2018_v4 = vadd.f32 0.5, %v2017_v2 }
 0x548   :  { %v2022_v5 = vadd.f32 0.5, %v2021_v3 }
 0x54a   :  { %v7615_v7 = vpop.eup %7614  ;;  %v2031_v8 = vmul.f32 %v2029_v6, %v2022_v5 }
 0x54b   :  { %v2032_v9 = vmul.f32 %v7615_v7, %v2018_v4 }
 0x54c   :  { %v7617_v11 = vpop.eup %7616 }
 0x54d   :  { %v8239_v10 = vadd.f32 %v2032_v9, %v2031_v8  ;;  %v2026_v12 = vmul.f32 0.5, %v7617_v11 }
 0x54f   :  { %7618 = vtanh.f32 %v8239_v10  ;;  %v2027_v13 = vadd.f32 0.5, %v2026_v12  ;;  %v2352_v52 = vrot.slane %v8239_v10, 7 }
 0x559   :  { %v7619_v14 = vpop.eup %7618 }
 0x55a   :  { %v2035_v15 = vmul.f32 %v7619_v14, %v2027_v13 }
 0x55c   :  { %2037 = vst.msk [vmem:[#allocation2] sm:$0x10] %vm2036_vm7, %v2035_v15  ;;  %v2039_v16 = vrot.slane %v2035_v15, 4 }
 0x55e   :  { %6620 = vmatmul.mubr.msk.f32.vlgmr.msra.gmra.mrb[24].mxu0 %vm439_vm3, %v2039_v16  ;;  %6631 = vmatmul.mubr.msk.f32.vlgmr.msra.gmra.mrb[24].mxu1 %vm439_vm3, %v2039_v16 }
 0x55f   :  { %7285 = vmatpush3.bf16.msra.mxu0 %v8028_v31  ;;  %7291 = vmatpush3.bf16.msra.mxu1 %v8032_v32 }
 0x560   :  { %7286 = vmatprep.subr.bf16.mxu0 %v7877_v0  ;;  %7292 = vmatprep.subr.bf16.mxu1 %v7877_v0 }
 0x561   :  { %6641 = vmatprep.mubr.msk.f32.mxu0 %vm7878_vm0, %v7879_v1  ;;  %6652 = vmatprep.mubr.msk.f32.mxu1 %vm7878_vm0, %v7879_v1 }
 0x563   :  { %7288 = vmatpush3.bf16.msra.mxu0 %v8038_v37  ;;  %7294 = vmatpush3.bf16.msra.mxu1 %v8042_v38 }
 0x564   :  { %7295 = vmatprep.subr.bf16.mxu0 %v7877_v0  ;;  %7301 = vmatprep.subr.bf16.mxu1 %v7877_v0 }
 0x566   :  { %6642 = vmatmul.mubr.msk.f32.vlgmr.msra.gmra.mrb[26].mxu0 %vm439_vm3, %v2039_v16  ;;  %6653 = vmatmul.mubr.msk.f32.vlgmr.msra.gmra.mrb[26].mxu1 %vm439_vm3, %v2039_v16 }
 0x567   :  { %7297 = vmatpush3.bf16.msra.mxu0 %v8003_v19  ;;  %7303 = vmatpush3.bf16.msra.mxu1 %v8007_v20 }
 0x568   :  { %7298 = vmatprep.subr.bf16.mxu0 %v7877_v0  ;;  %7304 = vmatprep.subr.bf16.mxu1 %v7877_v0 }
 0x569   :  { %6663 = vmatprep.mubr.msk.f32.mxu0 %vm7878_vm0, %v7879_v1  ;;  %6674 = vmatprep.mubr.msk.f32.mxu1 %vm7878_vm0, %v7879_v1 }
 0x56b   :  { %7300 = vmatpush3.bf16.msra.mxu0 %v8016_v25  ;;  %7306 = vmatpush3.bf16.msra.mxu1 %v8020_v26 }
 0x56c   :  { %7307 = vmatprep.subr.bf16.mxu0 %v7877_v0  ;;  %7313 = vmatprep.subr.bf16.mxu1 %v7877_v0 }
 0x631   :  { %v2108_v17 = vpop.f32.mrb[24].mxu0  ;;  %v2182_v18 = vpop.f32.mrb[24].mxu1 }
 0x632   :  { %v2113_v21 = vrot.slane %v2108_v17, 3  ;;  %v2187_v22 = vrot.slane %v2182_v18, 3  ;;  %v6621_v23 = vpop.f32.mrb[25].mxu0  ;;  %v6632_v24 = vpop.f32.mrb[25].mxu1 }
 0x634   :  { %v2115_v27 = vadd.f32 %v2113_v21, %v8073_v49  ;;  %v2189_v28 = vadd.f32 %v2187_v22, %v8075_v50 }
 0x636   :  { %v2338_v29 = vmul.f32 0.5, %v2115_v27  ;;  %v2342_v30 = vmul.f32 0.5, %v2189_v28 }
 0x638   :  { %7620 = vtanh.f32 %v2338_v29 }
 0x639   :  { %7622 = vtanh.f32 %v2342_v30  ;;  %v2256_v33 = vpop.f32.mrb[26].mxu0  ;;  %v2330_v34 = vpop.f32.mrb[26].mxu1 }
 0x63a   :  { %v2261_v35 = vrot.slane %v2256_v33, 3  ;;  %v2335_v36 = vrot.slane %v2330_v34, 3  ;;  %v6643_v39 = vpop.f32.mrb[27].mxu0  ;;  %v6654_v40 = vpop.f32.mrb[27].mxu1 }
 0x63c   :  { %v2263_v41 = vadd.f32 %v2261_v35, %v8085_v61  ;;  %v2337_v42 = vadd.f32 %v2335_v36, %v8087_v62 }
 0x63e   :  { %7624 = vtanh.f32 %v2263_v41  ;;  %v2347_v43 = vmul.f32 0.5, %v2337_v42 }
 0x640   :  { %7626 = vtanh.f32 %v2347_v43  ;;  %v3093_v43 = vld [vmem:[#allocation9 + $0x20] sm:$0xff] }
 0x642   :  { %v7621_v44 = vpop.eup %7620 }
 0x643   :  { %v7623_v45 = vpop.eup %7622  ;;  %v2340_v46 = vmul.f32 0.5, %v7621_v44  ;;  %v3094_v44 = vld [vmem:[#allocation9 + $0x28] sm:$0xff] }
 0x644   :  { %v2344_v47 = vmul.f32 0.5, %v7623_v45  ;;  %v3010_v45 = vld [vmem:[#allocation9 + $0x10] sm:$0xff] }
 0x645   :  { %v2341_v48 = vadd.f32 0.5, %v2340_v46  ;;  %v3011_v46 = vld [vmem:[#allocation9 + $0x18] sm:$0xff] }
 0x646   :  { %v2345_v51 = vadd.f32 0.5, %v2344_v47  ;;  %v3095_v47 = vld [vmem:[#allocation9 + $0x30] sm:$0xff] }
 0x648   :  { %v7625_v53 = vpop.eup %7624  ;;  %v2354_v54 = vmul.f32 %v2352_v52, %v2345_v51  ;;  %v3096_v51 = vld [vmem:[#allocation9 + $0x38] sm:$0xff] }
 0x649   :  { %v2355_v55 = vmul.f32 %v7625_v53, %v2341_v48  ;;  %v7347_v48 = vpack.c.bf16 %v3011_v46, %v3010_v45  ;;  %v7353_v52 = vpack.c.bf16 %v3096_v51, %v3095_v47  ;;  %v3348_v45 = vld [vmem:[#allocation11 + $0x30] sm:$0xff]  ;;  %v3349_v46 = vld [vmem:[#allocation11 + $0x38] sm:$0xff]  ;;  %v3351_v51 = vld [vmem:[#allocation11 + $0x40] sm:$0xff] }
 0x64a   :  { %v7627_v57 = vpop.eup %7626 }
 0x64b   :  { %v8276_v56 = vadd.f32 %v2355_v55, %v2354_v54  ;;  %v2349_v58 = vmul.f32 0.5, %v7627_v57 }
 0x64d   :  { %7628 = vtanh.f32 %v8276_v56  ;;  %v2350_v59 = vadd.f32 0.5, %v2349_v58  ;;  %v2675_v28 = vrot.slane %v8276_v56, 7 }
 0x657   :  { %v7629_v60 = vpop.eup %7628 }
 0x658   :  { %v2358_v63 = vmul.f32 %v7629_v60, %v2350_v59 }
 0x65a   :  { %2360 = vst.msk [vmem:[#allocation2] sm:$0x20] %vm2359_vm8, %v2358_v63  ;;  %v2362_v2 = vrot.slane %v2358_v63, 5 }
 0x65c   :  { %6664 = vmatmul.mubr.msk.f32.vlgmr.msra.gmra.mrb[28].mxu0 %vm439_vm3, %v2362_v2  ;;  %6675 = vmatmul.mubr.msk.f32.vlgmr.msra.gmra.mrb[28].mxu1 %vm439_vm3, %v2362_v2 }
 0x65d   :  { %7309 = vmatpush3.bf16.msra.mxu0 %v8028_v31  ;;  %7315 = vmatpush3.bf16.msra.mxu1 %v8032_v32 }
 0x65e   :  { %7310 = vmatprep.subr.bf16.mxu0 %v7877_v0  ;;  %7316 = vmatprep.subr.bf16.mxu1 %v7877_v0 }
 0x65f   :  { %6685 = vmatprep.mubr.msk.f32.mxu0 %vm7878_vm0, %v7879_v1  ;;  %6696 = vmatprep.mubr.msk.f32.mxu1 %vm7878_vm0, %v7879_v1 }
 0x661   :  { %7312 = vmatpush3.bf16.msra.mxu0 %v8038_v37  ;;  %7318 = vmatpush3.bf16.msra.mxu1 %v8042_v38 }
 0x662   :  { %7319 = vmatprep.subr.bf16.mxu0 %v7877_v0  ;;  %7325 = vmatprep.subr.bf16.mxu1 %v7877_v0 }
 0x664   :  { %6686 = vmatmul.mubr.msk.f32.vlgmr.msra.gmra.mrb[30].mxu0 %vm439_vm3, %v2362_v2  ;;  %6697 = vmatmul.mubr.msk.f32.vlgmr.msra.gmra.mrb[30].mxu1 %vm439_vm3, %v2362_v2 }
 0x665   :  { %7321 = vmatpush3.bf16.msra.mxu0 %v8003_v19  ;;  %7327 = vmatpush3.bf16.msra.mxu1 %v8007_v20 }
 0x666   :  { %7322 = vmatprep.subr.bf16.mxu0 %v7877_v0  ;;  %7328 = vmatprep.subr.bf16.mxu1 %v7877_v0 }
 0x667   :  { %6707 = vmatprep.mubr.msk.f32.mxu0 %vm7878_vm0, %v7879_v1  ;;  %6718 = vmatprep.mubr.msk.f32.mxu1 %vm7878_vm0, %v7879_v1 }
 0x669   :  { %7324 = vmatpush3.bf16.msra.mxu0 %v8016_v25  ;;  %7330 = vmatpush3.bf16.msra.mxu1 %v8020_v26 }
 0x66a   :  { %7331 = vmatprep.subr.bf16.mxu0 %v7877_v0  ;;  %7337 = vmatprep.subr.bf16.mxu1 %v7877_v0 }
 0x72f   :  { %v2431_v19 = vpop.f32.mrb[28].mxu0  ;;  %v2505_v20 = vpop.f32.mrb[28].mxu1 }
 0x730   :  { %v2436_v3 = vrot.slane %v2431_v19, 2  ;;  %v2510_v4 = vrot.slane %v2505_v20, 2  ;;  %v6665_v5 = vpop.f32.mrb[29].mxu0  ;;  %v6676_v6 = vpop.f32.mrb[29].mxu1 }
 0x732   :  { %v2438_v7 = vadd.f32 %v2436_v3, %v8073_v49  ;;  %v2512_v8 = vadd.f32 %v2510_v4, %v8075_v50 }
 0x734   :  { %v2661_v9 = vmul.f32 0.5, %v2438_v7  ;;  %v2665_v10 = vmul.f32 0.5, %v2512_v8 }
 0x736   :  { %7630 = vtanh.f32 %v2661_v9 }
 0x737   :  { %7632 = vtanh.f32 %v2665_v10  ;;  %v2579_v25 = vpop.f32.mrb[30].mxu0  ;;  %v2653_v26 = vpop.f32.mrb[30].mxu1 }
 0x738   :  { %v2584_v11 = vrot.slane %v2579_v25, 2  ;;  %v2658_v12 = vrot.slane %v2653_v26, 2  ;;  %v6687_v13 = vpop.f32.mrb[31].mxu0  ;;  %v6698_v14 = vpop.f32.mrb[31].mxu1 }
 0x73a   :  { %v2586_v15 = vadd.f32 %v2584_v11, %v8085_v61  ;;  %v2660_v16 = vadd.f32 %v2658_v12, %v8087_v62 }
 0x73c   :  { %7634 = vtanh.f32 %v2586_v15  ;;  %v2670_v17 = vmul.f32 0.5, %v2660_v16 }
 0x73e   :  { %7636 = vtanh.f32 %v2670_v17 }
 0x740   :  { %v7631_v18 = vpop.eup %7630 }
 0x741   :  { %v7633_v21 = vpop.eup %7632  ;;  %v2663_v22 = vmul.f32 0.5, %v7631_v18 }
 0x742   :  { %v2667_v23 = vmul.f32 0.5, %v7633_v21 }
 0x743   :  { %v2664_v24 = vadd.f32 0.5, %v2663_v22  ;;  %v3176_v22 = vld [vmem:[#allocation9 + $0x40] sm:$0xff] }
 0x744   :  { %v2668_v27 = vadd.f32 0.5, %v2667_v23  ;;  %v3177_v23 = vld [vmem:[#allocation9 + $0x48] sm:$0xff] }
 0x746   :  { %v7635_v29 = vpop.eup %7634  ;;  %v2677_v30 = vmul.f32 %v2675_v28, %v2668_v27  ;;  %v3260_v27 = vld [vmem:[#allocation9 + $0x68] sm:$0xff]  ;;  %v7356_v28 = vpack.c.bf16 %v3177_v23, %v3176_v22 }
 0x747   :  { %v2678_v33 = vmul.f32 %v7635_v29, %v2664_v24  ;;  %v3259_v24 = vld [vmem:[#allocation9 + $0x60] sm:$0xff] }
 0x748   :  { %v7637_v35 = vpop.eup %7636  ;;  %v7362_v29 = vpack.c.bf16 %v3260_v27, %v3259_v24 }
 0x749   :  { %v8313_v34 = vadd.f32 %v2678_v33, %v2677_v30  ;;  %v2672_v36 = vmul.f32 0.5, %v7637_v35  ;;  %v3178_v30 = vld [vmem:[#allocation9 + $0x50] sm:$0xff]  ;;  %v3179_v33 = vld [vmem:[#allocation9 + $0x58] sm:$0xff] }
 0x74a   :  { %v3262_v35 = vld [vmem:[#allocation9 + $0x78] sm:$0xff] }
 0x74b   :  { %7638 = vtanh.f32 %v8313_v34  ;;  %v2673_v39 = vadd.f32 0.5, %v2672_v36  ;;  %v2998_v12 = vrot.slane %v8313_v34, 7  ;;  %v3261_v34 = vld [vmem:[#allocation9 + $0x70] sm:$0xff] }
 0x755   :  { %v7639_v40 = vpop.eup %7638 }
 0x756   :  { %v2681_v41 = vmul.f32 %v7639_v40, %v2673_v39  ;;  %v7359_v39 = vpack.c.bf16 %v3179_v33, %v3178_v30  ;;  %v7365_v40 = vpack.c.bf16 %v3262_v35, %v3261_v34 }
 0x758   :  { %2683 = vst.msk [vmem:[#allocation2] sm:$0x40] %vm2682_vm9, %v2681_v41  ;;  %v2685_v42 = vrot.slane %v2681_v41, 6  ;;  %v3341_v41 = vld [vmem:[#allocation11] sm:$0xff] }
 0x75a   :  { %6708 = vmatmul.mubr.msk.f32.vlgmr.msra.gmra.mrb[32].mxu0 %vm439_vm3, %v2685_v42  ;;  %6719 = vmatmul.mubr.msk.f32.vlgmr.msra.gmra.mrb[32].mxu1 %vm439_vm3, %v2685_v42 }
 0x75b   :  { %7333 = vmatpush3.bf16.msra.mxu0 %v8028_v31  ;;  %7339 = vmatpush3.bf16.msra.mxu1 %v8032_v32  ;;  %v3008_v31 = vld [vmem:[#allocation9] sm:$0xff]  ;;  %v3009_v32 = vld [vmem:[#allocation9 + $0x8] sm:$0xff] }
 0x75c   :  { %7334 = vmatprep.subr.bf16.mxu0 %v7877_v0  ;;  %7340 = vmatprep.subr.bf16.mxu1 %v7877_v0 }
 0x75d   :  { %6729 = vmatprep.mubr.msk.f32.mxu0 %vm7878_vm0, %v7879_v1  ;;  %6740 = vmatprep.mubr.msk.f32.mxu1 %vm7878_vm0, %v7879_v1 }
 0x75f   :  { %7336 = vmatpush3.bf16.msra.mxu0 %v8038_v37  ;;  %7342 = vmatpush3.bf16.msra.mxu1 %v8042_v38  ;;  %v7344_v37 = vpack.c.bf16 %v3009_v32, %v3008_v31  ;;  %v7350_v38 = vpack.c.bf16 %v3094_v44, %v3093_v43  ;;  %v3346_v31 = vld [vmem:[#allocation11 + $0x20] sm:$0xff]  ;;  %v3347_v32 = vld [vmem:[#allocation11 + $0x28] sm:$0xff]  ;;  %v3343_v44 = vld [vmem:[#allocation11 + $0x10] sm:$0xff] }
 0x760   :  { %7343 = vmatprep.subr.bf16.mxu0 %v7877_v0  ;;  %7349 = vmatprep.subr.bf16.mxu1 %v7877_v0 }
 0x762   :  { %6730 = vmatmul.mubr.msk.f32.vlgmr.msra.gmra.mrb[34].mxu0 %vm439_vm3, %v2685_v42  ;;  %6741 = vmatmul.mubr.msk.f32.vlgmr.msra.gmra.mrb[34].mxu1 %vm439_vm3, %v2685_v42  ;;  %v3342_v42 = vld [vmem:[#allocation11 + $0x8] sm:$0xff] }
 0x763   :  { %6751 = vmatprep.mubr.msk.f32.mxu0 %vm7878_vm0, %v7879_v1  ;;  %6762 = vmatprep.mubr.msk.f32.mxu1 %vm7878_vm0, %v7879_v1  ;;  %v8355_v43 = vpack.c.bf16 %v3342_v42, %v3341_v41 }
 0x764   :  { %7345 = vmatpush3.bf16.msra.mxu0 %v7344_v37  ;;  %7351 = vmatpush3.bf16.msra.mxu1 %v7350_v38  ;;  %v8357_v37 = vpack.c.bf16 %v3347_v32, %v3346_v31  ;;  %v3344_v38 = vld [vmem:[#allocation11 + $0x18] sm:$0xff] }
 0x765   :  { %7346 = vmatprep.subr.bf16.mxu0 %v7877_v0  ;;  %7352 = vmatprep.subr.bf16.mxu1 %v7877_v0  ;;  %v8365_v47 = vpack.c.bf16 %v3344_v38, %v3343_v44 }
 0x768   :  { %7348 = vmatpush3.bf16.msra.mxu0 %v7347_v48  ;;  %7354 = vmatpush3.bf16.msra.mxu1 %v7353_v52  ;;  %v8367_v48 = vpack.c.bf16 %v3349_v46, %v3348_v45  ;;  %v3352_v52 = vld [vmem:[#allocation11 + $0x48] sm:$0xff] }
 0x769   :  { %7355 = vmatprep.subr.bf16.mxu0 %v7877_v0  ;;  %7361 = vmatprep.subr.bf16.mxu1 %v7877_v0 }
 0x82d   :  { %v2754_v53 = vpop.f32.mrb[32].mxu0  ;;  %v2828_v54 = vpop.f32.mrb[32].mxu1 }
 0x82e   :  { %v2759_v55 = vrot.slane %v2754_v53, 1  ;;  %v2833_v56 = vrot.slane %v2828_v54, 1  ;;  %v6709_v57 = vpop.f32.mrb[33].mxu0  ;;  %v6720_v58 = vpop.f32.mrb[33].mxu1  ;;  %v3356_v53 = vld [vmem:[#allocation11 + $0x60] sm:$0xff]  ;;  %v3357_v54 = vld [vmem:[#allocation11 + $0x68] sm:$0xff] }
 0x82f   :  { %v3353_v57 = vld [vmem:[#allocation11 + $0x50] sm:$0xff]  ;;  %v3354_v58 = vld [vmem:[#allocation11 + $0x58] sm:$0xff] }
 0x830   :  { %v2761_v59 = vadd.f32 %v2759_v55, %v8073_v49  ;;  %v2835_v60 = vadd.f32 %v2833_v56, %v8075_v50  ;;  %v8377_v55 = vpack.c.bf16 %v3352_v52, %v3351_v51  ;;  %v8379_v56 = vpack.c.bf16 %v3357_v54, %v3356_v53 }
 0x832   :  { %v2984_v63 = vmul.f32 0.5, %v2761_v59  ;;  %v2988_v2 = vmul.f32 0.5, %v2835_v60  ;;  %v3358_v59 = vld [vmem:[#allocation11 + $0x70] sm:$0xff]  ;;  %v3359_v60 = vld [vmem:[#allocation11 + $0x78] sm:$0xff] }
 0x834   :  { %7640 = vtanh.f32 %v2984_v63  ;;  %v8387_v63 = vpack.c.bf16 %v3354_v58, %v3353_v57 }
 0x835   :  { %7642 = vtanh.f32 %v2988_v2  ;;  %v2902_v19 = vpop.f32.mrb[34].mxu0  ;;  %v2976_v20 = vpop.f32.mrb[34].mxu1  ;;  %v8389_v2 = vpack.c.bf16 %v3359_v60, %v3358_v59 }
 0x836   :  { %v2907_v3 = vrot.slane %v2902_v19, 1  ;;  %v2981_v4 = vrot.slane %v2976_v20, 1  ;;  %v6731_v5 = vpop.f32.mrb[35].mxu0  ;;  %v6742_v6 = vpop.f32.mrb[35].mxu1 }
 0x838   :  { %v2909_v7 = vadd.f32 %v2907_v3, %v8085_v61  ;;  %v2983_v8 = vadd.f32 %v2981_v4, %v8087_v62 }
 0x83a   :  { %7644 = vtanh.f32 %v2909_v7  ;;  %v2993_v9 = vmul.f32 0.5, %v2983_v8 }
 0x83c   :  { %7646 = vtanh.f32 %v2993_v9  ;;  %v5972_v9 = vld [vmem:[%s8699_s6] ss:$0 sm:$0xff] }
 0x83e   :  { %v7641_v10 = vpop.eup %7640 }
 0x83f   :  { %v7643_v49 = vpop.eup %7642  ;;  %v2986_v25 = vmul.f32 0.5, %v7641_v10  ;;  %v5975_v10 = vld [vmem:[%s8699_s6 + $0x1] ss:$0 sm:$0xff] }
 0x840   :  { %v2990_v50 = vmul.f32 0.5, %v7643_v49 }
 0x841   :  { %v2987_v26 = vadd.f32 0.5, %v2986_v25 }
 0x842   :  { %v2991_v11 = vadd.f32 0.5, %v2990_v50 }
 0x844   :  { %v7645_v13 = vpop.eup %7644  ;;  %v3000_v14 = vmul.f32 %v2998_v12, %v2991_v11 }
 0x845   :  { %v3001_v15 = vmul.f32 %v7645_v13, %v2987_v26 }
 0x846   :  { %v7647_v17 = vpop.eup %7646 }
 0x847   :  { %v3002_v16 = vadd.f32 %v3001_v15, %v3000_v14  ;;  %v2995_v61 = vmul.f32 0.5, %v7647_v17  ;;  %v5978_v17 = vld [vmem:[%s8699_s6 + $0x2] ss:$0 sm:$0xff] }
 0x849   :  { %7648 = vtanh.f32 %v3002_v16  ;;  %v2996_v18 = vadd.f32 0.5, %v2995_v61  ;;  %v5981_v61 = vld [vmem:[%s8699_s6 + $0x3] ss:$0 sm:$0xff]  ;;  %s7880_s6 = smov [#allocation12]  }
 0x84a   :  { %s5922_s0 = sshll.u32 %s7880_s6, 4  ;;  %s5923_s0 = int_to_ptr.vmem [resolvable:$true] %s5922_s0 }
 0x84b   :  { %s7840_s18 = scalar_lea.vmem %s5923_s0, 128  ;;  %p7845_p13 = scmp.lt.s32.totalorder %s5923_s0, %s5923_s0 }
 0x84c   :  { %p7841_p12 = scmp.ne.s32.totalorder %s5923_s0, %s7840_s18  ;;  %p7846_p0 = scmp.lt.s32.totalorder %s7840_s18, %s7840_s18 }
 0x84e   :  { %p7847_p1 = por %p7846_p0, %p7845_p13 }
 0x850   :  { %p7848_p2 = pnand %p7847_p1, %p7841_p12 }
 0x853   :  { %v7649_v62 = vpop.eup %7648 }
 0x854   :  { %v3004_v21 = vmul.f32 %v7649_v62, %v2996_v18 }
 0x856   :  { %3006 = vst.msk [vmem:[#allocation2] sm:$0x80] %vm3005_vm10, %v3004_v21 }
 0x85d   :  { %v3007_v36 = vld [vmem:[#allocation2] sm:$0xff] }
 0x85e   :  { %6752 = vmatmul.mubr.msk.f32.vlgmr.msra.gmra.mrb[36].mxu0 %vm439_vm3, %v3007_v36  ;;  %6763 = vmatmul.mubr.msk.f32.vlgmr.msra.gmra.mrb[36].mxu1 %vm439_vm3, %v3007_v36 }
 0x85f   :  { %7357 = vmatpush3.bf16.msra.mxu0 %v7356_v28  ;;  %7363 = vmatpush3.bf16.msra.mxu1 %v7362_v29 }
 0x860   :  { %7358 = vmatprep.subr.bf16.mxu0 %v7877_v0  ;;  %7364 = vmatprep.subr.bf16.mxu1 %v7877_v0 }
 0x861   :  { %6773 = vmatprep.mubr.msk.f32.mxu0 %vm7878_vm0, %v7879_v1  ;;  %6784 = vmatprep.mubr.msk.f32.mxu1 %vm7878_vm0, %v7879_v1 }
 0x863   :  { %7360 = vmatpush3.bf16.msra.mxu0 %v7359_v39  ;;  %7366 = vmatpush3.bf16.msra.mxu1 %v7365_v40 }
 0x864   :  { %7367 = vmatprep.subr.bf16.mxu0 %v7877_v0  ;;  %7373 = vmatprep.subr.bf16.mxu1 %v7877_v0 }
 0x866   :  { %6774 = vmatmul.mubr.msk.f32.vlgmr.msra.gmra.mrb[38].mxu0 %vm439_vm3, %v3007_v36  ;;  %6785 = vmatmul.mubr.msk.f32.vlgmr.msra.gmra.mrb[38].mxu1 %vm439_vm3, %v3007_v36 }
 0x867   :  { %7369 = vmatpush3.bf16.msra.mxu0 %v8355_v43  ;;  %7375 = vmatpush3.bf16.msra.mxu1 %v8357_v37 }
 0x868   :  { %7370 = vmatprep.subr.bf16.mxu0 %v7877_v0  ;;  %7376 = vmatprep.subr.bf16.mxu1 %v7877_v0 }
 0x869   :  { %6795 = vmatprep.mubr.msk.f32.mxu0 %vm7878_vm0, %v7879_v1  ;;  %6806 = vmatprep.mubr.msk.f32.mxu1 %vm7878_vm0, %v7879_v1 }
 0x86b   :  { %7372 = vmatpush3.bf16.msra.mxu0 %v8365_v47  ;;  %7378 = vmatpush3.bf16.msra.mxu1 %v8367_v48 }
 0x86c   :  { %7379 = vmatprep.subr.bf16.mxu0 %v7877_v0  ;;  %7385 = vmatprep.subr.bf16.mxu1 %v7877_v0 }
 0x86e   :  { %6796 = vmatmul.mubr.f32.vlgmr.msra.gmra.mrb[40].mxu0 %v7879_v1  ;;  %6807 = vmatmul.mubr.f32.vlgmr.msra.gmra.mrb[40].mxu1 %v7879_v1 }
 0x86f   :  { %7381 = vmatpush3.bf16.msra.mxu0 %v8377_v55  ;;  %7387 = vmatpush3.bf16.msra.mxu1 %v8379_v56 }
 0x870   :  { %7382 = vmatprep.subr.bf16.mxu0 %v7877_v0  ;;  %7388 = vmatprep.subr.bf16.mxu1 %v7877_v0 }
 0x871   :  { %6817 = vmatprep.mubr.msk.f32.mxu0 %vm7878_vm0, %v7879_v1  ;;  %6828 = vmatprep.mubr.msk.f32.mxu1 %vm7878_vm0, %v7879_v1 }
 0x873   :  { %7384 = vmatpush3.bf16.msra.mxu0 %v8387_v63  ;;  %7390 = vmatpush3.bf16.msra.mxu1 %v8389_v2 }
 0x874   :  { %7391 = vmatprep.subr.bf16.mxu0 %v7877_v0  ;;  %7397 = vmatprep.subr.bf16.mxu1 %v7877_v0 }
 0x876   :  { %6818 = vmatmul.mubr.f32.vlgmr.msra.gmra.mrb[42].mxu0 %v7879_v1  ;;  %6829 = vmatmul.mubr.f32.vlgmr.msra.gmra.mrb[42].mxu1 %v7879_v1 }
 0x877   :  { %7393 = vmatpush3.bf16.msra.mxu0 %v8355_v43  ;;  %7399 = vmatpush3.bf16.msra.mxu1 %v8357_v37 }
 0x878   :  { %7394 = vmatprep.subr.bf16.mxu0 %v7877_v0  ;;  %7400 = vmatprep.subr.bf16.mxu1 %v7877_v0 }
 0x879   :  { %6839 = vmatprep.mubr.msk.f32.mxu0 %vm7878_vm0, %v7879_v1  ;;  %6850 = vmatprep.mubr.msk.f32.mxu1 %vm7878_vm0, %v7879_v1 }
 0x87b   :  { %7396 = vmatpush3.bf16.msra.mxu0 %v8365_v47  ;;  %7402 = vmatpush3.bf16.msra.mxu1 %v8367_v48 }
 0x87c   :  { %7403 = vmatprep.subr.bf16.mxu0 %v7877_v0  ;;  %7409 = vmatprep.subr.bf16.mxu1 %v7877_v0 }
 0x931   :  { %v3088_v19 = vpop.f32.mrb[36].mxu0  ;;  %v3171_v20 = vpop.f32.mrb[36].mxu1 }
 0x932   :  { %v6753_v3 = vpop.f32.mrb[37].mxu0  ;;  %v6764_v4 = vpop.f32.mrb[37].mxu1  ;;  %v8421_v49 = vadd.f32 %v5972_v9, %v3088_v19  ;;  %v8423_v25 = vadd.f32 %v5975_v10, %v3171_v20 }
 0x939   :  { %v3254_v5 = vpop.f32.mrb[38].mxu0  ;;  %v3337_v6 = vpop.f32.mrb[38].mxu1 }
 0x93a   :  { %v6775_v7 = vpop.f32.mrb[39].mxu0  ;;  %v6786_v8 = vpop.f32.mrb[39].mxu1  ;;  %v8433_v18 = vadd.f32 %v5978_v17, %v3254_v5  ;;  %v8435_v62 = vadd.f32 %v5981_v61, %v3337_v6 }
 0x941   :  { %v3426_v50 = vpop.f32.mrb[40].mxu0  ;;  %v3497_v26 = vpop.f32.mrb[40].mxu1 }
 0x942   :  { %v3430_v11 = vadd.f32 %v3426_v50, %v8421_v49  ;;  %v3501_v12 = vadd.f32 %v3497_v26, %v8423_v25  ;;  %v6797_v13 = vpop.f32.mrb[41].mxu0  ;;  %v6808_v14 = vpop.f32.mrb[41].mxu1 }
 0x944   :  { %v3644_v15 = vmul.f32 0.5, %v3430_v11  ;;  %v3648_v16 = vmul.f32 0.5, %v3501_v12 }
 0x946   :  { %7650 = vtanh.f32 %v3644_v15 }
 0x947   :  { %7652 = vtanh.f32 %v3648_v16 }
 0x949   :  { %v3568_v21 = vpop.f32.mrb[42].mxu0  ;;  %v3639_v22 = vpop.f32.mrb[42].mxu1 }
 0x94a   :  { %v3572_v23 = vadd.f32 %v3568_v21, %v8433_v18  ;;  %v6819_v24 = vpop.f32.mrb[43].mxu0  ;;  %v6830_v27 = vpop.f32.mrb[43].mxu1  ;;  %v3643_v28 = vadd.f32 %v3639_v22, %v8435_v62 }
 0x94c   :  { %7654 = vtanh.f32 %v3572_v23  ;;  %v3653_v29 = vmul.f32 0.5, %v3643_v28 }
 0x94e   :  { %7656 = vtanh.f32 %v3653_v29 }
 0x950   :  { %v7651_v30 = vpop.eup %7650 }
 0x951   :  { %v7653_v33 = vpop.eup %7652  ;;  %v3646_v34 = vmul.f32 0.5, %v7651_v30 }
 0x952   :  { %v3650_v35 = vmul.f32 0.5, %v7653_v33 }
 0x953   :  { %v3647_v39 = vadd.f32 0.5, %v3646_v34 }
 0x954   :  { %v3651_v36 = vadd.f32 0.5, %v3650_v35 }
 0x956   :  { %v7655_v40 = vpop.eup %7654  ;;  %v3657_v41 = vmul.f32 0.0, %v3651_v36 }
 0x957   :  { %v3658_v42 = vmul.f32 %v7655_v40, %v3647_v39 }
 0x958   :  { %v7657_v32 = vpop.eup %7656 }
 0x959   :  { %v8439_v31 = vadd.f32 %v3658_v42, %v3657_v41  ;;  %v3655_v44 = vmul.f32 0.5, %v7657_v32 }
 0x95b   :  { %7658 = vtanh.f32 %v8439_v31  ;;  %v3656_v38 = vadd.f32 0.5, %v3655_v44  ;;  %v3976_v16 = vrot.slane %v8439_v31, 7 }
 0x965   :  { %v7659_v45 = vpop.eup %7658 }
 0x966   :  { %v3661_v46 = vmul.f32 %v7659_v45, %v3656_v38 }
 0x968   :  { %3662 = vst.msk [vmem:[#allocation12] sm:$0x1] %vm745_vm2, %v3661_v46  ;;  %6840 = vmatmul.mubr.msk.f32.vlgmr.msra.gmra.mrb[44].mxu0 %vm439_vm3, %v3661_v46  ;;  %6851 = vmatmul.mubr.msk.f32.vlgmr.msra.gmra.mrb[44].mxu1 %vm439_vm3, %v3661_v46 }
 0x969   :  { %7405 = vmatpush3.bf16.msra.mxu0 %v8377_v55  ;;  %7411 = vmatpush3.bf16.msra.mxu1 %v8379_v56 }
 0x96a   :  { %7406 = vmatprep.subr.bf16.mxu0 %v7877_v0  ;;  %7412 = vmatprep.subr.bf16.mxu1 %v7877_v0 }
 0x96b   :  { %6861 = vmatprep.mubr.msk.f32.mxu0 %vm7878_vm0, %v7879_v1  ;;  %6872 = vmatprep.mubr.msk.f32.mxu1 %vm7878_vm0, %v7879_v1 }
 0x96d   :  { %7408 = vmatpush3.bf16.msra.mxu0 %v8387_v63  ;;  %7414 = vmatpush3.bf16.msra.mxu1 %v8389_v2 }
 0x96e   :  { %7415 = vmatprep.subr.bf16.mxu0 %v7877_v0  ;;  %7421 = vmatprep.subr.bf16.mxu1 %v7877_v0 }
 0x970   :  { %6862 = vmatmul.mubr.msk.f32.vlgmr.msra.gmra.mrb[46].mxu0 %vm439_vm3, %v3661_v46  ;;  %6873 = vmatmul.mubr.msk.f32.vlgmr.msra.gmra.mrb[46].mxu1 %vm439_vm3, %v3661_v46 }
 0x971   :  { %7417 = vmatpush3.bf16.msra.mxu0 %v8355_v43  ;;  %7423 = vmatpush3.bf16.msra.mxu1 %v8357_v37 }
 0x972   :  { %7418 = vmatprep.subr.bf16.mxu0 %v7877_v0  ;;  %7424 = vmatprep.subr.bf16.mxu1 %v7877_v0 }
 0x973   :  { %6883 = vmatprep.mubr.msk.f32.mxu0 %vm7878_vm0, %v7879_v1  ;;  %6894 = vmatprep.mubr.msk.f32.mxu1 %vm7878_vm0, %v7879_v1 }
 0x975   :  { %7420 = vmatpush3.bf16.msra.mxu0 %v8365_v47  ;;  %7426 = vmatpush3.bf16.msra.mxu1 %v8367_v48 }
 0x976   :  { %7427 = vmatprep.subr.bf16.mxu0 %v7877_v0  ;;  %7433 = vmatprep.subr.bf16.mxu1 %v7877_v0 }
 0xa3b   :  { %v3732_v51 = vpop.f32.mrb[44].mxu0  ;;  %v3806_v52 = vpop.f32.mrb[44].mxu1 }
 0xa3c   :  { %v3737_v53 = vrot.slane %v3732_v51, 7  ;;  %v3811_v54 = vrot.slane %v3806_v52, 7  ;;  %v6841_v57 = vpop.f32.mrb[45].mxu0  ;;  %v6852_v58 = vpop.f32.mrb[45].mxu1 }
 0xa3e   :  { %v3739_v59 = vadd.f32 %v3737_v53, %v8421_v49  ;;  %v3813_v60 = vadd.f32 %v3811_v54, %v8423_v25 }
 0xa40   :  { %v3962_v19 = vmul.f32 0.5, %v3739_v59  ;;  %v3966_v20 = vmul.f32 0.5, %v3813_v60 }
 0xa42   :  { %7660 = vtanh.f32 %v3962_v19 }
 0xa43   :  { %7662 = vtanh.f32 %v3966_v20  ;;  %v3880_v3 = vpop.f32.mrb[46].mxu0  ;;  %v3954_v4 = vpop.f32.mrb[46].mxu1 }
 0xa44   :  { %v3885_v5 = vrot.slane %v3880_v3, 7  ;;  %v3959_v6 = vrot.slane %v3954_v4, 7  ;;  %v6863_v7 = vpop.f32.mrb[47].mxu0  ;;  %v6874_v8 = vpop.f32.mrb[47].mxu1 }
 0xa46   :  { %v3887_v9 = vadd.f32 %v3885_v5, %v8433_v18  ;;  %v3961_v10 = vadd.f32 %v3959_v6, %v8435_v62 }
 0xa48   :  { %7664 = vtanh.f32 %v3887_v9  ;;  %v3971_v50 = vmul.f32 0.5, %v3961_v10 }
 0xa4a   :  { %7666 = vtanh.f32 %v3971_v50 }
 0xa4c   :  { %v7661_v26 = vpop.eup %7660 }
 0xa4d   :  { %v7663_v11 = vpop.eup %7662  ;;  %v3964_v12 = vmul.f32 0.5, %v7661_v26 }
 0xa4e   :  { %v3968_v13 = vmul.f32 0.5, %v7663_v11 }
 0xa4f   :  { %v3965_v14 = vadd.f32 0.5, %v3964_v12 }
 0xa50   :  { %v3969_v15 = vadd.f32 0.5, %v3968_v13 }
 0xa52   :  { %v7665_v17 = vpop.eup %7664  ;;  %v3978_v61 = vmul.f32 %v3976_v16, %v3969_v15 }
 0xa53   :  { %v3979_v21 = vmul.f32 %v7665_v17, %v3965_v14 }
 0xa54   :  { %v7667_v23 = vpop.eup %7666 }
 0xa55   :  { %v8476_v22 = vadd.f32 %v3979_v21, %v3978_v61  ;;  %v3973_v24 = vmul.f32 0.5, %v7667_v23 }
 0xa57   :  { %7668 = vtanh.f32 %v8476_v22  ;;  %v3974_v27 = vadd.f32 0.5, %v3973_v24  ;;  %v4298_v4 = vrot.slane %v8476_v22, 7 }
 0xa61   :  { %v7669_v28 = vpop.eup %7668 }
 0xa62   :  { %v3982_v29 = vmul.f32 %v7669_v28, %v3974_v27 }
 0xa64   :  { %3983 = vst.msk [vmem:[#allocation12] sm:$0x2] %vm1067_vm4, %v3982_v29  ;;  %v3985_v30 = vrot.slane %v3982_v29, 1 }
 0xa66   :  { %6884 = vmatmul.mubr.msk.f32.vlgmr.msra.gmra.mrb[48].mxu0 %vm439_vm3, %v3985_v30  ;;  %6895 = vmatmul.mubr.msk.f32.vlgmr.msra.gmra.mrb[48].mxu1 %vm439_vm3, %v3985_v30 }
 0xa67   :  { %7429 = vmatpush3.bf16.msra.mxu0 %v8377_v55  ;;  %7435 = vmatpush3.bf16.msra.mxu1 %v8379_v56 }
 0xa68   :  { %7430 = vmatprep.subr.bf16.mxu0 %v7877_v0  ;;  %7436 = vmatprep.subr.bf16.mxu1 %v7877_v0 }
 0xa69   :  { %6905 = vmatprep.mubr.msk.f32.mxu0 %vm7878_vm0, %v7879_v1  ;;  %6916 = vmatprep.mubr.msk.f32.mxu1 %vm7878_vm0, %v7879_v1 }
 0xa6b   :  { %7432 = vmatpush3.bf16.msra.mxu0 %v8387_v63  ;;  %7438 = vmatpush3.bf16.msra.mxu1 %v8389_v2 }
 0xa6c   :  { %7439 = vmatprep.subr.bf16.mxu0 %v7877_v0  ;;  %7445 = vmatprep.subr.bf16.mxu1 %v7877_v0 }
 0xa6e   :  { %6906 = vmatmul.mubr.msk.f32.vlgmr.msra.gmra.mrb[50].mxu0 %vm439_vm3, %v3985_v30  ;;  %6917 = vmatmul.mubr.msk.f32.vlgmr.msra.gmra.mrb[50].mxu1 %vm439_vm3, %v3985_v30 }
 0xa6f   :  { %7441 = vmatpush3.bf16.msra.mxu0 %v8355_v43  ;;  %7447 = vmatpush3.bf16.msra.mxu1 %v8357_v37 }
 0xa70   :  { %7442 = vmatprep.subr.bf16.mxu0 %v7877_v0  ;;  %7448 = vmatprep.subr.bf16.mxu1 %v7877_v0 }
 0xa71   :  { %6927 = vmatprep.mubr.msk.f32.mxu0 %vm7878_vm0, %v7879_v1  ;;  %6938 = vmatprep.mubr.msk.f32.mxu1 %vm7878_vm0, %v7879_v1 }
 0xa73   :  { %7444 = vmatpush3.bf16.msra.mxu0 %v8365_v47  ;;  %7450 = vmatpush3.bf16.msra.mxu1 %v8367_v48 }
 0xa74   :  { %7451 = vmatprep.subr.bf16.mxu0 %v7877_v0  ;;  %7457 = vmatprep.subr.bf16.mxu1 %v7877_v0 }
 0xb39   :  { %v4054_v33 = vpop.f32.mrb[48].mxu0  ;;  %v4128_v34 = vpop.f32.mrb[48].mxu1 }
 0xb3a   :  { %v4059_v35 = vrot.slane %v4054_v33, 6  ;;  %v4133_v36 = vrot.slane %v4128_v34, 6  ;;  %v6885_v39 = vpop.f32.mrb[49].mxu0  ;;  %v6896_v40 = vpop.f32.mrb[49].mxu1 }
 0xb3c   :  { %v4061_v41 = vadd.f32 %v4059_v35, %v8421_v49  ;;  %v4135_v42 = vadd.f32 %v4133_v36, %v8423_v25 }
 0xb3e   :  { %v4284_v31 = vmul.f32 0.5, %v4061_v41  ;;  %v4288_v32 = vmul.f32 0.5, %v4135_v42 }
 0xb40   :  { %7670 = vtanh.f32 %v4284_v31 }
 0xb41   :  { %7672 = vtanh.f32 %v4288_v32  ;;  %v4202_v44 = vpop.f32.mrb[50].mxu0  ;;  %v4276_v38 = vpop.f32.mrb[50].mxu1 }
 0xb42   :  { %v4207_v45 = vrot.slane %v4202_v44, 6  ;;  %v4281_v46 = vrot.slane %v4276_v38, 6  ;;  %v6907_v51 = vpop.f32.mrb[51].mxu0  ;;  %v6918_v52 = vpop.f32.mrb[51].mxu1 }
 0xb44   :  { %v4209_v53 = vadd.f32 %v4207_v45, %v8433_v18  ;;  %v4283_v54 = vadd.f32 %v4281_v46, %v8435_v62 }
 0xb46   :  { %7674 = vtanh.f32 %v4209_v53  ;;  %v4293_v57 = vmul.f32 0.5, %v4283_v54 }
 0xb48   :  { %7676 = vtanh.f32 %v4293_v57 }
 0xb4a   :  { %v7671_v58 = vpop.eup %7670 }
 0xb4b   :  { %v7673_v59 = vpop.eup %7672  ;;  %v4286_v60 = vmul.f32 0.5, %v7671_v58 }
 0xb4c   :  { %v4290_v19 = vmul.f32 0.5, %v7673_v59 }
 0xb4d   :  { %v4287_v20 = vadd.f32 0.5, %v4286_v60 }
 0xb4e   :  { %v4291_v3 = vadd.f32 0.5, %v4290_v19 }
 0xb50   :  { %v7675_v5 = vpop.eup %7674  ;;  %v4300_v6 = vmul.f32 %v4298_v4, %v4291_v3 }
 0xb51   :  { %v4301_v7 = vmul.f32 %v7675_v5, %v4287_v20 }
 0xb52   :  { %v7677_v9 = vpop.eup %7676 }
 0xb53   :  { %v8513_v8 = vadd.f32 %v4301_v7, %v4300_v6  ;;  %v4295_v10 = vmul.f32 0.5, %v7677_v9 }
 0xb55   :  { %7678 = vtanh.f32 %v8513_v8  ;;  %v4296_v50 = vadd.f32 0.5, %v4295_v10  ;;  %v4620_v38 = vrot.slane %v8513_v8, 7 }
 0xb5f   :  { %v7679_v26 = vpop.eup %7678 }
 0xb60   :  { %v4304_v11 = vmul.f32 %v7679_v26, %v4296_v50 }
 0xb62   :  { %4305 = vst.msk [vmem:[#allocation12] sm:$0x4] %vm1390_vm5, %v4304_v11  ;;  %v4307_v12 = vrot.slane %v4304_v11, 2 }
 0xb64   :  { %6928 = vmatmul.mubr.msk.f32.vlgmr.msra.gmra.mrb[52].mxu0 %vm439_vm3, %v4307_v12  ;;  %6939 = vmatmul.mubr.msk.f32.vlgmr.msra.gmra.mrb[52].mxu1 %vm439_vm3, %v4307_v12 }
 0xb65   :  { %7453 = vmatpush3.bf16.msra.mxu0 %v8377_v55  ;;  %7459 = vmatpush3.bf16.msra.mxu1 %v8379_v56 }
 0xb66   :  { %7454 = vmatprep.subr.bf16.mxu0 %v7877_v0  ;;  %7460 = vmatprep.subr.bf16.mxu1 %v7877_v0 }
 0xb67   :  { %6949 = vmatprep.mubr.msk.f32.mxu0 %vm7878_vm0, %v7879_v1  ;;  %6960 = vmatprep.mubr.msk.f32.mxu1 %vm7878_vm0, %v7879_v1 }
 0xb69   :  { %7456 = vmatpush3.bf16.msra.mxu0 %v8387_v63  ;;  %7462 = vmatpush3.bf16.msra.mxu1 %v8389_v2 }
 0xb6a   :  { %7463 = vmatprep.subr.bf16.mxu0 %v7877_v0  ;;  %7469 = vmatprep.subr.bf16.mxu1 %v7877_v0 }
 0xb6c   :  { %6950 = vmatmul.mubr.msk.f32.vlgmr.msra.gmra.mrb[54].mxu0 %vm439_vm3, %v4307_v12  ;;  %6961 = vmatmul.mubr.msk.f32.vlgmr.msra.gmra.mrb[54].mxu1 %vm439_vm3, %v4307_v12 }
 0xb6d   :  { %7465 = vmatpush3.bf16.msra.mxu0 %v8355_v43  ;;  %7471 = vmatpush3.bf16.msra.mxu1 %v8357_v37 }
 0xb6e   :  { %7466 = vmatprep.subr.bf16.mxu0 %v7877_v0  ;;  %7472 = vmatprep.subr.bf16.mxu1 %v7877_v0 }
 0xb6f   :  { %6971 = vmatprep.mubr.msk.f32.mxu0 %vm7878_vm0, %v7879_v1  ;;  %6982 = vmatprep.mubr.msk.f32.mxu1 %vm7878_vm0, %v7879_v1 }
 0xb71   :  { %7468 = vmatpush3.bf16.msra.mxu0 %v8365_v47  ;;  %7474 = vmatpush3.bf16.msra.mxu1 %v8367_v48 }
 0xb72   :  { %7475 = vmatprep.subr.bf16.mxu0 %v7877_v0  ;;  %7481 = vmatprep.subr.bf16.mxu1 %v7877_v0 }
 0xc37   :  { %v4376_v13 = vpop.f32.mrb[52].mxu0  ;;  %v4450_v14 = vpop.f32.mrb[52].mxu1 }
 0xc38   :  { %v4381_v15 = vrot.slane %v4376_v13, 5  ;;  %v4455_v16 = vrot.slane %v4450_v14, 5  ;;  %v6929_v17 = vpop.f32.mrb[53].mxu0  ;;  %v6940_v61 = vpop.f32.mrb[53].mxu1 }
 0xc3a   :  { %v4383_v21 = vadd.f32 %v4381_v15, %v8421_v49  ;;  %v4457_v22 = vadd.f32 %v4455_v16, %v8423_v25 }
 0xc3c   :  { %v4606_v23 = vmul.f32 0.5, %v4383_v21  ;;  %v4610_v24 = vmul.f32 0.5, %v4457_v22 }
 0xc3e   :  { %7680 = vtanh.f32 %v4606_v23 }
 0xc3f   :  { %7682 = vtanh.f32 %v4610_v24  ;;  %v4524_v27 = vpop.f32.mrb[54].mxu0  ;;  %v4598_v28 = vpop.f32.mrb[54].mxu1 }
 0xc40   :  { %v4529_v29 = vrot.slane %v4524_v27, 5  ;;  %v4603_v30 = vrot.slane %v4598_v28, 5  ;;  %v6951_v33 = vpop.f32.mrb[55].mxu0  ;;  %v6962_v34 = vpop.f32.mrb[55].mxu1 }
 0xc42   :  { %v4531_v35 = vadd.f32 %v4529_v29, %v8433_v18  ;;  %v4605_v36 = vadd.f32 %v4603_v30, %v8435_v62 }
 0xc44   :  { %7684 = vtanh.f32 %v4531_v35  ;;  %v4615_v39 = vmul.f32 0.5, %v4605_v36 }
 0xc46   :  { %7686 = vtanh.f32 %v4615_v39 }
 0xc48   :  { %v7681_v40 = vpop.eup %7680 }
 0xc49   :  { %v7683_v41 = vpop.eup %7682  ;;  %v4608_v42 = vmul.f32 0.5, %v7681_v40 }
 0xc4a   :  { %v4612_v31 = vmul.f32 0.5, %v7683_v41 }
 0xc4b   :  { %v4609_v32 = vadd.f32 0.5, %v4608_v42 }
 0xc4c   :  { %v4613_v44 = vadd.f32 0.5, %v4612_v31 }
 0xc4e   :  { %v7685_v45 = vpop.eup %7684  ;;  %v4622_v46 = vmul.f32 %v4620_v38, %v4613_v44 }
 0xc4f   :  { %v4623_v51 = vmul.f32 %v7685_v45, %v4609_v32 }
 0xc50   :  { %v7687_v53 = vpop.eup %7686 }
 0xc51   :  { %v8550_v52 = vadd.f32 %v4623_v51, %v4622_v46  ;;  %v4617_v54 = vmul.f32 0.5, %v7687_v53 }
 0xc53   :  { %7688 = vtanh.f32 %v8550_v52  ;;  %v4618_v57 = vadd.f32 0.5, %v4617_v54  ;;  %v4942_v28 = vrot.slane %v8550_v52, 7 }
 0xc5d   :  { %v7689_v58 = vpop.eup %7688 }
 0xc5e   :  { %v4626_v59 = vmul.f32 %v7689_v58, %v4618_v57 }
 0xc60   :  { %4627 = vst.msk [vmem:[#allocation12] sm:$0x8] %vm1713_vm6, %v4626_v59  ;;  %v4629_v60 = vrot.slane %v4626_v59, 3 }
 0xc62   :  { %6972 = vmatmul.mubr.msk.f32.vlgmr.msra.gmra.mrb[56].mxu0 %vm439_vm3, %v4629_v60  ;;  %6983 = vmatmul.mubr.msk.f32.vlgmr.msra.gmra.mrb[56].mxu1 %vm439_vm3, %v4629_v60 }
 0xc63   :  { %7477 = vmatpush3.bf16.msra.mxu0 %v8377_v55  ;;  %7483 = vmatpush3.bf16.msra.mxu1 %v8379_v56 }
 0xc64   :  { %7478 = vmatprep.subr.bf16.mxu0 %v7877_v0  ;;  %7484 = vmatprep.subr.bf16.mxu1 %v7877_v0 }
 0xc65   :  { %6993 = vmatprep.mubr.msk.f32.mxu0 %vm7878_vm0, %v7879_v1  ;;  %7004 = vmatprep.mubr.msk.f32.mxu1 %vm7878_vm0, %v7879_v1 }
 0xc67   :  { %7480 = vmatpush3.bf16.msra.mxu0 %v8387_v63  ;;  %7486 = vmatpush3.bf16.msra.mxu1 %v8389_v2 }
 0xc68   :  { %7487 = vmatprep.subr.bf16.mxu0 %v7877_v0  ;;  %7493 = vmatprep.subr.bf16.mxu1 %v7877_v0 }
 0xc6a   :  { %6994 = vmatmul.mubr.msk.f32.vlgmr.msra.gmra.mrb[58].mxu0 %vm439_vm3, %v4629_v60  ;;  %7005 = vmatmul.mubr.msk.f32.vlgmr.msra.gmra.mrb[58].mxu1 %vm439_vm3, %v4629_v60 }
 0xc6b   :  { %7489 = vmatpush3.bf16.msra.mxu0 %v8355_v43  ;;  %7495 = vmatpush3.bf16.msra.mxu1 %v8357_v37 }
 0xc6c   :  { %7490 = vmatprep.subr.bf16.mxu0 %v7877_v0  ;;  %7496 = vmatprep.subr.bf16.mxu1 %v7877_v0 }
 0xc6d   :  { %7015 = vmatprep.mubr.msk.f32.mxu0 %vm7878_vm0, %v7879_v1  ;;  %7026 = vmatprep.mubr.msk.f32.mxu1 %vm7878_vm0, %v7879_v1 }
 0xc6f   :  { %7492 = vmatpush3.bf16.msra.mxu0 %v8365_v47  ;;  %7498 = vmatpush3.bf16.msra.mxu1 %v8367_v48 }
 0xc70   :  { %7499 = vmatprep.subr.bf16.mxu0 %v7877_v0  ;;  %7505 = vmatprep.subr.bf16.mxu1 %v7877_v0 }
 0xd35   :  { %v4698_v19 = vpop.f32.mrb[56].mxu0  ;;  %v4772_v20 = vpop.f32.mrb[56].mxu1 }
 0xd36   :  { %v4703_v3 = vrot.slane %v4698_v19, 4  ;;  %v4777_v4 = vrot.slane %v4772_v20, 4  ;;  %v6973_v5 = vpop.f32.mrb[57].mxu0  ;;  %v6984_v6 = vpop.f32.mrb[57].mxu1 }
 0xd38   :  { %v4705_v7 = vadd.f32 %v4703_v3, %v8421_v49  ;;  %v4779_v8 = vadd.f32 %v4777_v4, %v8423_v25 }
 0xd3a   :  { %v4928_v9 = vmul.f32 0.5, %v4705_v7  ;;  %v4932_v10 = vmul.f32 0.5, %v4779_v8 }
 0xd3c   :  { %7690 = vtanh.f32 %v4928_v9 }
 0xd3d   :  { %7692 = vtanh.f32 %v4932_v10  ;;  %v4846_v50 = vpop.f32.mrb[58].mxu0  ;;  %v4920_v26 = vpop.f32.mrb[58].mxu1 }
 0xd3e   :  { %v4851_v11 = vrot.slane %v4846_v50, 4  ;;  %v4925_v12 = vrot.slane %v4920_v26, 4  ;;  %v6995_v13 = vpop.f32.mrb[59].mxu0  ;;  %v7006_v14 = vpop.f32.mrb[59].mxu1 }
 0xd40   :  { %v4853_v15 = vadd.f32 %v4851_v11, %v8433_v18  ;;  %v4927_v16 = vadd.f32 %v4925_v12, %v8435_v62 }
 0xd42   :  { %7694 = vtanh.f32 %v4853_v15  ;;  %v4937_v17 = vmul.f32 0.5, %v4927_v16 }
 0xd44   :  { %7696 = vtanh.f32 %v4937_v17 }
 0xd46   :  { %v7691_v61 = vpop.eup %7690 }
 0xd47   :  { %v7693_v21 = vpop.eup %7692  ;;  %v4930_v22 = vmul.f32 0.5, %v7691_v61 }
 0xd48   :  { %v4934_v23 = vmul.f32 0.5, %v7693_v21 }
 0xd49   :  { %v4931_v24 = vadd.f32 0.5, %v4930_v22 }
 0xd4a   :  { %v4935_v27 = vadd.f32 0.5, %v4934_v23 }
 0xd4c   :  { %v7695_v29 = vpop.eup %7694  ;;  %v4944_v30 = vmul.f32 %v4942_v28, %v4935_v27 }
 0xd4d   :  { %v4945_v33 = vmul.f32 %v7695_v29, %v4931_v24 }
 0xd4e   :  { %v7697_v35 = vpop.eup %7696 }
 0xd4f   :  { %v8587_v34 = vadd.f32 %v4945_v33, %v4944_v30  ;;  %v4939_v36 = vmul.f32 0.5, %v7697_v35 }
 0xd51   :  { %7698 = vtanh.f32 %v8587_v34  ;;  %v4940_v39 = vadd.f32 0.5, %v4939_v36  ;;  %v5264_v26 = vrot.slane %v8587_v34, 7 }
 0xd5b   :  { %v7699_v40 = vpop.eup %7698 }
 0xd5c   :  { %v4948_v41 = vmul.f32 %v7699_v40, %v4940_v39 }
 0xd5e   :  { %4949 = vst.msk [vmem:[#allocation12] sm:$0x10] %vm2036_vm7, %v4948_v41  ;;  %v4951_v42 = vrot.slane %v4948_v41, 4 }
 0xd60   :  { %7016 = vmatmul.mubr.msk.f32.vlgmr.msra.gmra.mrb[60].mxu0 %vm439_vm3, %v4951_v42  ;;  %7027 = vmatmul.mubr.msk.f32.vlgmr.msra.gmra.mrb[60].mxu1 %vm439_vm3, %v4951_v42 }
 0xd61   :  { %7501 = vmatpush3.bf16.msra.mxu0 %v8377_v55  ;;  %7507 = vmatpush3.bf16.msra.mxu1 %v8379_v56 }
 0xd62   :  { %7502 = vmatprep.subr.bf16.mxu0 %v7877_v0  ;;  %7508 = vmatprep.subr.bf16.mxu1 %v7877_v0 }
 0xd63   :  { %7037 = vmatprep.mubr.msk.f32.mxu0 %vm7878_vm0, %v7879_v1  ;;  %7048 = vmatprep.mubr.msk.f32.mxu1 %vm7878_vm0, %v7879_v1 }
 0xd65   :  { %7504 = vmatpush3.bf16.msra.mxu0 %v8387_v63  ;;  %7510 = vmatpush3.bf16.msra.mxu1 %v8389_v2 }
 0xd66   :  { %7511 = vmatprep.subr.bf16.mxu0 %v7877_v0  ;;  %7517 = vmatprep.subr.bf16.mxu1 %v7877_v0 }
 0xd68   :  { %7038 = vmatmul.mubr.msk.f32.vlgmr.msra.gmra.mrb[62].mxu0 %vm439_vm3, %v4951_v42  ;;  %7049 = vmatmul.mubr.msk.f32.vlgmr.msra.gmra.mrb[62].mxu1 %vm439_vm3, %v4951_v42 }
 0xd69   :  { %7513 = vmatpush3.bf16.msra.mxu0 %v8355_v43  ;;  %7519 = vmatpush3.bf16.msra.mxu1 %v8357_v37 }
 0xd6a   :  { %7514 = vmatprep.subr.bf16.mxu0 %v7877_v0  ;;  %7520 = vmatprep.subr.bf16.mxu1 %v7877_v0 }
 0xd6b   :  { %7059 = vmatprep.mubr.msk.f32.mxu0 %vm7878_vm0, %v7879_v1  ;;  %7070 = vmatprep.mubr.msk.f32.mxu1 %vm7878_vm0, %v7879_v1 }
 0xd6d   :  { %7516 = vmatpush3.bf16.msra.mxu0 %v8365_v47  ;;  %7522 = vmatpush3.bf16.msra.mxu1 %v8367_v48 }
 0xd6e   :  { %7523 = vmatprep.subr.bf16.mxu0 %v7877_v0  ;;  %7529 = vmatprep.subr.bf16.mxu1 %v7877_v0 }
 0xe33   :  { %v5020_v31 = vpop.f32.mrb[60].mxu0  ;;  %v5094_v32 = vpop.f32.mrb[60].mxu1 }
 0xe34   :  { %v5025_v44 = vrot.slane %v5020_v31, 3  ;;  %v5099_v38 = vrot.slane %v5094_v32, 3  ;;  %v7017_v45 = vpop.f32.mrb[61].mxu0  ;;  %v7028_v46 = vpop.f32.mrb[61].mxu1 }
 0xe36   :  { %v5027_v51 = vadd.f32 %v5025_v44, %v8421_v49  ;;  %v5101_v52 = vadd.f32 %v5099_v38, %v8423_v25 }
 0xe38   :  { %v5250_v53 = vmul.f32 0.5, %v5027_v51  ;;  %v5254_v54 = vmul.f32 0.5, %v5101_v52 }
 0xe3a   :  { %7700 = vtanh.f32 %v5250_v53 }
 0xe3b   :  { %7702 = vtanh.f32 %v5254_v54  ;;  %v5168_v57 = vpop.f32.mrb[62].mxu0  ;;  %v5242_v58 = vpop.f32.mrb[62].mxu1 }
 0xe3c   :  { %v5173_v59 = vrot.slane %v5168_v57, 3  ;;  %v5247_v60 = vrot.slane %v5242_v58, 3  ;;  %v7039_v19 = vpop.f32.mrb[63].mxu0  ;;  %v7050_v20 = vpop.f32.mrb[63].mxu1 }
 0xe3e   :  { %v5175_v3 = vadd.f32 %v5173_v59, %v8433_v18  ;;  %v5249_v4 = vadd.f32 %v5247_v60, %v8435_v62 }
 0xe40   :  { %7704 = vtanh.f32 %v5175_v3  ;;  %v5259_v5 = vmul.f32 0.5, %v5249_v4 }
 0xe42   :  { %7706 = vtanh.f32 %v5259_v5 }
 0xe44   :  { %v7701_v6 = vpop.eup %7700 }
 0xe45   :  { %v7703_v7 = vpop.eup %7702  ;;  %v5252_v8 = vmul.f32 0.5, %v7701_v6 }
 0xe46   :  { %v5256_v9 = vmul.f32 0.5, %v7703_v7 }
 0xe47   :  { %v5253_v10 = vadd.f32 0.5, %v5252_v8 }
 0xe48   :  { %v5257_v50 = vadd.f32 0.5, %v5256_v9 }
 0xe4a   :  { %v7705_v11 = vpop.eup %7704  ;;  %v5266_v12 = vmul.f32 %v5264_v26, %v5257_v50 }
 0xe4b   :  { %v5267_v13 = vmul.f32 %v7705_v11, %v5253_v10 }
 0xe4c   :  { %v7707_v15 = vpop.eup %7706 }
 0xe4d   :  { %v8624_v14 = vadd.f32 %v5267_v13, %v5266_v12  ;;  %v5261_v16 = vmul.f32 0.5, %v7707_v15 }
 0xe4f   :  { %7708 = vtanh.f32 %v8624_v14  ;;  %v5262_v17 = vadd.f32 0.5, %v5261_v16  ;;  %v5586_v52 = vrot.slane %v8624_v14, 7 }
 0xe59   :  { %v7709_v61 = vpop.eup %7708 }
 0xe5a   :  { %v5270_v21 = vmul.f32 %v7709_v61, %v5262_v17 }
 0xe5c   :  { %5271 = vst.msk [vmem:[#allocation12] sm:$0x20] %vm2359_vm8, %v5270_v21  ;;  %v5273_v22 = vrot.slane %v5270_v21, 5 }
 0xe5e   :  { %7060 = vmatmul.mubr.msk.f32.vlgmr.msra.gmra.mrb[64].mxu0 %vm439_vm3, %v5273_v22  ;;  %7071 = vmatmul.mubr.msk.f32.vlgmr.msra.gmra.mrb[64].mxu1 %vm439_vm3, %v5273_v22 }
 0xe5f   :  { %7525 = vmatpush3.bf16.msra.mxu0 %v8377_v55  ;;  %7531 = vmatpush3.bf16.msra.mxu1 %v8379_v56 }
 0xe60   :  { %7526 = vmatprep.subr.bf16.mxu0 %v7877_v0  ;;  %7532 = vmatprep.subr.bf16.mxu1 %v7877_v0 }
 0xe61   :  { %7081 = vmatprep.mubr.msk.f32.mxu0 %vm7878_vm0, %v7879_v1  ;;  %7092 = vmatprep.mubr.msk.f32.mxu1 %vm7878_vm0, %v7879_v1 }
 0xe63   :  { %7528 = vmatpush3.bf16.msra.mxu0 %v8387_v63  ;;  %7534 = vmatpush3.bf16.msra.mxu1 %v8389_v2 }
 0xe64   :  { %7535 = vmatprep.subr.bf16.mxu0 %v7877_v0  ;;  %7541 = vmatprep.subr.bf16.mxu1 %v7877_v0 }
 0xe66   :  { %7082 = vmatmul.mubr.msk.f32.vlgmr.msra.gmra.mrb[66].mxu0 %vm439_vm3, %v5273_v22  ;;  %7093 = vmatmul.mubr.msk.f32.vlgmr.msra.gmra.mrb[66].mxu1 %vm439_vm3, %v5273_v22 }
 0xe67   :  { %7537 = vmatpush3.bf16.msra.mxu0 %v8355_v43  ;;  %7543 = vmatpush3.bf16.msra.mxu1 %v8357_v37 }
 0xe68   :  { %7538 = vmatprep.subr.bf16.mxu0 %v7877_v0  ;;  %7544 = vmatprep.subr.bf16.mxu1 %v7877_v0 }
 0xe69   :  { %7103 = vmatprep.mubr.msk.f32.mxu0 %vm7878_vm0, %v7879_v1  ;;  %7114 = vmatprep.mubr.msk.f32.mxu1 %vm7878_vm0, %v7879_v1 }
 0xe6b   :  { %7540 = vmatpush3.bf16.msra.mxu0 %v8365_v47  ;;  %7546 = vmatpush3.bf16.msra.mxu1 %v8367_v48 }
 0xe6c   :  { %7547 = vmatprep.subr.bf16.mxu0 %v7877_v0  ;;  %7553 = vmatprep.subr.bf16.mxu1 %v7877_v0 }
 0xf31   :  { %v5342_v43 = vpop.f32.mrb[64].mxu0  ;;  %v5416_v37 = vpop.f32.mrb[64].mxu1 }
 0xf32   :  { %v5347_v23 = vrot.slane %v5342_v43, 2  ;;  %v5421_v24 = vrot.slane %v5416_v37, 2  ;;  %v7061_v27 = vpop.f32.mrb[65].mxu0  ;;  %v7072_v28 = vpop.f32.mrb[65].mxu1 }
 0xf34   :  { %v5349_v29 = vadd.f32 %v5347_v23, %v8421_v49  ;;  %v5423_v30 = vadd.f32 %v5421_v24, %v8423_v25 }
 0xf36   :  { %v5572_v33 = vmul.f32 0.5, %v5349_v29  ;;  %v5576_v34 = vmul.f32 0.5, %v5423_v30 }
 0xf38   :  { %7710 = vtanh.f32 %v5572_v33 }
 0xf39   :  { %7712 = vtanh.f32 %v5576_v34  ;;  %v5490_v47 = vpop.f32.mrb[66].mxu0  ;;  %v5564_v48 = vpop.f32.mrb[66].mxu1 }
 0xf3a   :  { %v5495_v35 = vrot.slane %v5490_v47, 2  ;;  %v5569_v36 = vrot.slane %v5564_v48, 2  ;;  %v7083_v39 = vpop.f32.mrb[67].mxu0  ;;  %v7094_v40 = vpop.f32.mrb[67].mxu1 }
 0xf3c   :  { %v5497_v41 = vadd.f32 %v5495_v35, %v8433_v18  ;;  %v5571_v42 = vadd.f32 %v5569_v36, %v8435_v62 }
 0xf3e   :  { %7714 = vtanh.f32 %v5497_v41  ;;  %v5581_v31 = vmul.f32 0.5, %v5571_v42 }
 0xf40   :  { %7716 = vtanh.f32 %v5581_v31 }
 0xf42   :  { %v7711_v32 = vpop.eup %7710 }
 0xf43   :  { %v7713_v44 = vpop.eup %7712  ;;  %v5574_v38 = vmul.f32 0.5, %v7711_v32 }
 0xf44   :  { %v5578_v45 = vmul.f32 0.5, %v7713_v44 }
 0xf45   :  { %v5575_v46 = vadd.f32 0.5, %v5574_v38 }
 0xf46   :  { %v5579_v51 = vadd.f32 0.5, %v5578_v45 }
 0xf48   :  { %v7715_v53 = vpop.eup %7714  ;;  %v5588_v54 = vmul.f32 %v5586_v52, %v5579_v51 }
 0xf49   :  { %v5589_v57 = vmul.f32 %v7715_v53, %v5575_v46 }
 0xf4a   :  { %v7717_v59 = vpop.eup %7716 }
 0xf4b   :  { %v5590_v58 = vadd.f32 %v5589_v57, %v5588_v54  ;;  %v5583_v60 = vmul.f32 0.5, %v7717_v59 }
 0xf4d   :  { %7718 = vtanh.f32 %v5590_v58  ;;  %v5584_v19 = vadd.f32 0.5, %v5583_v60  ;;  %v5908_v22 = vrot.slane %v5590_v58, 7 }
 0xf57   :  { %v7719_v20 = vpop.eup %7718 }
 0xf58   :  { %v5592_v3 = vmul.f32 %v7719_v20, %v5584_v19 }
 0xf5a   :  { %5593 = vst.msk [vmem:[#allocation12] sm:$0x40] %vm2682_vm9, %v5592_v3  ;;  %v5595_v4 = vrot.slane %v5592_v3, 6 }
 0xf5c   :  { %7104 = vmatmul.mubr.msk.f32.vlgmr.msra.gmra.mrb[68].mxu0 %vm439_vm3, %v5595_v4  ;;  %7115 = vmatmul.mubr.msk.f32.vlgmr.msra.gmra.mrb[68].mxu1 %vm439_vm3, %v5595_v4 }
 0xf5d   :  { %7549 = vmatpush3.bf16.msra.mxu0 %v8377_v55  ;;  %7555 = vmatpush3.bf16.msra.mxu1 %v8379_v56 }
 0xf5e   :  { %7550 = vmatprep.subr.bf16.mxu0 %v7877_v0  ;;  %7556 = vmatprep.subr.bf16.mxu1 %v7877_v0 }
 0xf5f   :  { %7125 = vmatprep.mubr.msk.f32.mxu0 %vm7878_vm0, %v7879_v1  ;;  %7136 = vmatprep.mubr.msk.f32.mxu1 %vm7878_vm0, %v7879_v1 }
 0xf61   :  { %7552 = vmatpush3.bf16.msra.mxu0 %v8387_v63  ;;  %7558 = vmatpush3.bf16.msra.mxu1 %v8389_v2 }
 0xf64   :  { %7126 = vmatmul.mubr.msk.f32.vlgmr.msra.gmra.mrb[70].mxu0 %vm439_vm3, %v5595_v4  ;;  %7137 = vmatmul.mubr.msk.f32.vlgmr.msra.gmra.mrb[70].mxu1 %vm439_vm3, %v5595_v4 }
0x102f   :  { %v5664_v55 = vpop.f32.mrb[68].mxu0  ;;  %v5738_v56 = vpop.f32.mrb[68].mxu1 }
0x1030   :  { %v5669_v5 = vrot.slane %v5664_v55, 1  ;;  %v5743_v6 = vrot.slane %v5738_v56, 1  ;;  %v7105_v7 = vpop.f32.mrb[69].mxu0  ;;  %v7116_v0 = vpop.f32.mrb[69].mxu1 }
0x1032   :  { %v5671_v8 = vadd.f32 %v5669_v5, %v8421_v49  ;;  %v5745_v9 = vadd.f32 %v5743_v6, %v8423_v25 }
0x1034   :  { %v5894_v10 = vmul.f32 0.5, %v5671_v8  ;;  %v5898_v1 = vmul.f32 0.5, %v5745_v9 }
0x1036   :  { %7720 = vtanh.f32 %v5894_v10 }
0x1037   :  { %7722 = vtanh.f32 %v5898_v1  ;;  %v5812_v63 = vpop.f32.mrb[70].mxu0  ;;  %v5886_v2 = vpop.f32.mrb[70].mxu1 }
0x1038   :  { %v5817_v50 = vrot.slane %v5812_v63, 1  ;;  %v5891_v26 = vrot.slane %v5886_v2, 1  ;;  %v7127_v11 = vpop.f32.mrb[71].mxu0  ;;  %v7138_v12 = vpop.f32.mrb[71].mxu1 }
0x103a   :  { %v5819_v13 = vadd.f32 %v5817_v50, %v8433_v18  ;;  %v5893_v14 = vadd.f32 %v5891_v26, %v8435_v62 }
0x103c   :  { %7724 = vtanh.f32 %v5819_v13  ;;  %v5903_v15 = vmul.f32 0.5, %v5893_v14 }
0x103e   :  { %7726 = vtanh.f32 %v5903_v15 }
0x1040   :  { %v7721_v16 = vpop.eup %7720 }
0x1041   :  { %v7723_v49 = vpop.eup %7722  ;;  %v5896_v17 = vmul.f32 0.5, %v7721_v16 }
0x1042   :  { %v5900_v25 = vmul.f32 0.5, %v7723_v49 }
0x1043   :  { %v5897_v61 = vadd.f32 0.5, %v5896_v17 }
0x1044   :  { %v5901_v21 = vadd.f32 0.5, %v5900_v25 }
0x1046   :  { %v7725_v43 = vpop.eup %7724  ;;  %v5910_v37 = vmul.f32 %v5908_v22, %v5901_v21 }
0x1047   :  { %v5911_v23 = vmul.f32 %v7725_v43, %v5897_v61 }
0x1048   :  { %v7727_v27 = vpop.eup %7726 }
0x1049   :  { %v5912_v24 = vadd.f32 %v5911_v23, %v5910_v37  ;;  %v5905_v28 = vmul.f32 0.5, %v7727_v27 }
0x104b   :  { %7728 = vtanh.f32 %v5912_v24  ;;  %v5906_v18 = vadd.f32 0.5, %v5905_v28 }
0x1055   :  { %v7729_v62 = vpop.eup %7728 }
0x1056   :  { %v5914_v29 = vmul.f32 %v7729_v62, %v5906_v18 }
0x1058   :  { %5915 = vst.msk [vmem:[#allocation12] sm:$0x80] %vm3005_vm10, %v5914_v29 }
0x1059   :  { %7851 = shalt.err (!%p7848_p2)
}
0x105a   :  { %s7852_s29 = scalar_lea.hbm %s8700_s7, 128 }
0x105b   :  { %p7853_p3 = scmp.ne.s32.totalorder %s8700_s7, %s7852_s29  ;;  %p7856_p4 = scmp.lt.u32.totalorder %s7852_s29, %s8700_s7 }
0x105d   :  { %p7858_p5 = pnand %p7856_p4, %p7853_p3 }
0x105f   :  { %7861 = shalt.err (!%p7858_p5)
}
0x1060   :  { %5925 = dma.vmem_to_hbm [thread:$0]  %s5923_s0, 128, %s8700_s7, [#allocation5]  }
0x1061   :  { %7868 = dma.done.wait [#allocation5], 128  }
0x1062   :  { %7869 = vsyncadd [#allocation5], 4294967168 }
0x1063   :  { %5929 = vsyncpa [#allocation4], 1 }
0x1064   :  { %5930 = vsyncpa [#allocation7], 1 }
0x1065   :  { %5931 = vsyncpa [#allocation10], 1 }
0x1066   :  { %5932 = vsyncpa [#allocation5], 1 }

</bundles_post_ra>
